<compile_context>
chip_gen: v5e
topology: v5e:2x2
jax: 0.10.0
libtpu: 0.0.40
codegen_flags: <defaults>
</compile_context>

<pallas_src>
import jax
import jax.numpy as jnp
from jax import lax
from jax.experimental import pallas as pl
from jax.experimental.pallas import tpu as pltpu


def _round_up(x, m):
    return ((x + m - 1) // m) * m


def _divisors(n):
    return [d for d in range(1, n + 1) if n % d == 0]


def _vmem_capacity_bytes():
    try:
        info = pltpu.get_tpu_info()
        cap = getattr(info, "vmem_capacity_bytes", None)
        if cap:
            return int(cap)
    except Exception:
        pass
    return 64 * 1024 * 1024  # conservative default (v7x per-TensorCore VMEM)


def _halo_block(rows_main, halo):
    """Smallest divisor of rows_main that covers the conv row halo."""
    if halo <= 0:
        return 1
    for d in _divisors(rows_main):
        if d >= halo:
            return d
    return rows_main


def _pick_row_tile(OH, OW, Wp, K, stride, cin_p, cout, cout_c, y_item, budget, requested=None):
    """Largest OH-divisor row tile whose double-buffered working set fits the budget."""
    halo = max(K - stride, 0)
    min_tr = max(1, -(-halo // stride))               # TR * stride >= halo
    op_cap = 2 * 1024 * 1024                          # per-tap MXU operand soft cap

    def ok(tr):
        return tr >= min_tr and tr * OW * cin_p * 2 <= op_cap

    def step_bytes(tr):
        rows_main = tr * stride
        hblk = _halo_block(rows_main, halo)
        in_main = rows_main * Wp * cin_p * 2
        in_halo = hblk * Wp * cin_p * 2
        y_blk = tr * OW * cout * y_item
        stats_blk = 2 * cout * 4
        acc = tr * OW * cout_c * 4
        live = tr * OW * (cout_c * 4 + cin_p * 2)     # in-flight dot result + operand
        return 2 * (in_main + in_halo + y_blk + stats_blk) + acc + live

    if requested is not None and OH % requested == 0 and ok(requested) \
            and step_bytes(requested) <= budget:
        return requested
    cands = [d for d in _divisors(OH) if ok(d)]
    if not cands:
        cands = [d for d in _divisors(OH) if d >= min_tr] or [OH]
    fitting = [d for d in cands if step_bytes(d) <= budget]
    return max(fitting) if fitting else min(cands)


def _pick_rows_phase2(OH, OW, cout, y_item, budget):
    def bytes_(tr):
        return 2 * (tr * OW * cout * y_item + tr * OW * cout * 4 + 2 * cout * 4)
    fitting = [d for d in _divisors(OH) if bytes_(d) <= budget]
    return max(fitting) if fitting else 1


def _make_conv_stats_kernel(K, stride, TR, OW, cin_p, cout, cout_c, rows_main, hblk):
    """Phase 1: conv row tile (K*K whole-tile matmuls) + bias + per-tile mean / M2 stats."""
    win = (OW - 1) * stride + 1

    def kernel(xm_ref, xh_ref, w_ref, b_ref, y_ref, stats_ref, acc_ref):
        # xm_ref : (1, rows_main, Wp, cin_p) bf16   main row slab of the tile
        # xh_ref : (1, hblk,      Wp, cin_p) bf16   halo rows just below the slab
        # w_ref  : (K*K, cin_p, cout_c)      bf16
        # b_ref  : (1, cout)                 f32    conv bias
        # y_ref  : (1, TR, OW, cout)         bf16/f32  pre-norm conv output tile
        # stats_ref: (1, 1, 2, cout)         f32    [tile mean, tile sum of sq. deviations]
        # acc_ref: (TR*OW, cout_c)           f32    VMEM accumulator (scratch)

        def tap_operand(ki, kj):
            # rows needed for tap row ki: ki + r*stride, r in [0, TR)
            n_main = max(0, min(TR, (rows_main - 1 - ki) // stride + 1))
            n_halo = TR - n_main

            def load(ref, row0, nrows):
                if stride == 1:
                    return ref[0, pl.ds(row0, nrows), pl.ds(kj, OW), :]
                v = ref[0, pl.ds(row0, nrows, stride), pl.ds(kj, win), :]
                return v[:, ::stride, :]

            parts = []
            if n_main > 0:
                parts.append(load(xm_ref, ki, n_main))
            if n_halo > 0:
                parts.append(load(xh_ref, ki + n_main * stride - rows_main, n_halo))
            xw = parts[0] if len(parts) == 1 else jnp.concatenate(parts, axis=0)
            return xw.reshape(TR * OW, cin_p)

        for ki in range(K):                                   # K small; live set stays bounded
            t = None
            for kj in range(K):
                d = jnp.dot(tap_operand(ki, kj), w_ref[ki * K + kj],
                            preferred_element_type=jnp.float32)
                t = d if t is None else t + d
            if ki == 0:
                acc_ref[...] = t
            else:
                acc_ref[...] += t

        a = acc_ref[...][:, :cout] + b_ref[...]               # (TR*OW, cout) + (1, cout)
        yq = a.astype(y_ref.dtype)                            # quantise to stored precision
        y_ref[0] = yq.reshape(TR, OW, cout)                   # only true Cout channels stored

        # Stats on the stored values (so phase-2 normalisation is self-consistent):
        # per-tile mean and sum of squared deviations (no sumsq - n*mean^2 cancellation).
        af = yq.astype(jnp.float32)
        tmean = jnp.mean(af, axis=0, keepdims=True)           # (1, cout)
        m2 = jnp.sum((af - tmean) ** 2, axis=0, keepdims=True)
        stats_ref[0, 0] = jnp.concatenate([tmean, m2], axis=0)

    return kernel


def _norm_affine_kernel(y_ref, scale_ref, shift_ref, out_ref):
    # Fused CIN epilogue: out = y * (gamma/(std+eps)) + (beta - mean*gamma/(std+eps)).
    out_ref[0] = y_ref[0].astype(jnp.float32) * scale_ref[0] + shift_ref[0]


def upsample_conv_layer(x, style_id, weight, bias, gamma, beta, *,
                        kernel_size, stride, upsample=None, row_tile=None,
                        intermediate_dtype=jnp.bfloat16):
    """x: (N, Cin, H, W) f32, style_id: (N,) int32 -> (N, Cout, OH, OW) f32."""
    N, Cin, H, W = x.shape
    Cout = weight.shape[0]
    K = kernel_size
    y_item = jnp.dtype(intermediate_dtype).itemsize

    # ---- XLA glue: nearest upsample + reflection pad + NHWC relayout ----
    # TODO(synk): fold this into per-tile DMA gathers inside phase 1 to remove one HBM pass.
    if upsample:
        x = jnp.repeat(jnp.repeat(x, upsample, axis=2), upsample, axis=3)
    p = K // 2
    xp = jnp.pad(x, ((0, 0), (0, 0), (p, p), (p, p)), mode="reflect")
    Hp, Wp = xp.shape[2], xp.shape[3]
    OH = (Hp - K) // stride + 1
    OW = (Wp - K) // stride + 1
    OHW = OH * OW

    # Cin (MXU contraction dim) padded to a lane multiple so the contraction never carries
    # uninitialised vreg padding.  Cout is NOT padded in HBM; compute uses a padded width
    # cout_c that is sliced away before any store.
    cin_p = _round_up(Cin, 128)
    cout_c = _round_up(Cout, 128)

    vmem_cap = _vmem_capacity_bytes()
    step_budget = max(4 << 20, vmem_cap // 6)
    vmem_limit = min(int(vmem_cap * 0.7), 100 << 20)

    halo = max(K - stride, 0)
    TR = _pick_row_tile(OH, OW, Wp, K, stride, cin_p, Cout, cout_c, y_item,
                        step_budget, row_tile)
    RT = OH // TR
    rows_main = TR * stride
    hblk = _halo_block(rows_main, halo)

    # NHWC, contraction-padded, bottom rows padded just enough for the last tile's halo view.
    x_nhwc = jnp.transpose(xp, (0, 2, 3, 1))                               # (N, Hp, Wp, Cin)
    rows_needed = RT * rows_main + hblk
    x_nhwc = jnp.pad(x_nhwc, ((0, 0), (0, max(0, rows_needed - Hp)),
                              (0, 0), (0, cin_p - Cin)))
    x_nhwc = x_nhwc.astype(jnp.bfloat16)

    # weights: (Cout, Cin, K, K) -> (K*K, cin_p, cout_c) bf16 (padded channels are zero)
    wk = jnp.transpose(weight, (2, 3, 1, 0)).reshape(K * K, Cin, Cout)
    wk = jnp.pad(wk, ((0, 0), (0, cin_p - Cin), (0, cout_c - Cout))).astype(jnp.bfloat16)
    bias2d = bias.reshape(1, Cout).astype(jnp.float32)

    conv_kernel = _make_conv_stats_kernel(K, stride, TR, OW, cin_p, Cout, cout_c,
                                          rows_main, hblk)

    flops1 = 2 * N * OH * OW * K * K * cin_p * cout_c
    bytes1 = int(x_nhwc.size * 2 + N * RT * hblk * Wp * cin_p * 2 + wk.size * 2
                 + N * OH * OW * Cout * y_item + N * RT * 2 * Cout * 4)

    # ---- phase 1: conv + bias + per-tile instance-norm statistics, tiled over (N, row tiles) ----
    y, stats = pl.pallas_call(
        conv_kernel,
        out_shape=(jax.ShapeDtypeStruct((N, OH, OW, Cout), intermediate_dtype),
                   jax.ShapeDtypeStruct((N, RT, 2, Cout), jnp.float32)),
        grid_spec=pltpu.PrefetchScalarGridSpec(
            num_scalar_prefetch=0,
            grid=(N, RT),
            in_specs=[
                pl.BlockSpec((1, rows_main, Wp, cin_p), lambda n, r: (n, r, 0, 0)),
                pl.BlockSpec((1, hblk, Wp, cin_p),
                             lambda n, r: (n, (r + 1) * (rows_main // hblk), 0, 0)),
                pl.BlockSpec((K * K, cin_p, cout_c), lambda n, r: (0, 0, 0)),
                pl.BlockSpec((1, Cout), lambda n, r: (0, 0)),
            ],
            out_specs=[
                pl.BlockSpec((1, TR, OW, Cout), lambda n, r: (n, r, 0, 0)),
                pl.BlockSpec((1, 1, 2, Cout), lambda n, r: (n, r, 0, 0)),
            ],
            scratch_shapes=[pltpu.VMEM((TR * OW, cout_c), jnp.float32)]),
        compiler_params=pltpu.CompilerParams(
            dimension_semantics=("parallel", "parallel"),
            vmem_limit_bytes=vmem_limit),
        cost_estimate=pl.CostEstimate(flops=flops1, transcendentals=0,
                                      bytes_accessed=bytes1),
    )(x_nhwc, x_nhwc, wk, bias2d)

    # ---- tiny JAX glue: Chan-combine tile stats, fold mean/std/gamma/beta into scale & shift ----
    tile_mean = stats[:, :, 0, :]                                         # (N, RT, Cout)
    tile_m2 = stats[:, :, 1, :]
    cnt_tile = float(TR * OW)
    mean = jnp.mean(tile_mean, axis=1)                                    # (N, Cout)
    m2 = jnp.sum(tile_m2, axis=1) + cnt_tile * jnp.sum(
        (tile_mean - mean[:, None, :]) ** 2, axis=1)
    var = m2 / float(max(OHW - 1, 1))          # ddof=1 matches torch.Tensor.std() used by CIN
    std = jnp.sqrt(jnp.maximum(var, 0.0))
    g = gamma[style_id].astype(jnp.float32)                               # (N, Cout)
    b = beta[style_id].astype(jnp.float32)
    sc = g / (std + 1e-5)
    scale = sc[:, None, :]                                                # (N, 1, Cout)
    shift = (b - mean * sc)[:, None, :]

    # ---- phase 2: fused normalize + affine sweep (large row tiles, true-Cout stores) ----
    TR2 = _pick_rows_phase2(OH, OW, Cout, y_item, step_budget)
    RT2 = OH // TR2
    flops2 = 2 * N * OH * OW * Cout
    bytes2 = int(N * OH * OW * Cout * (y_item + 4) + 2 * N * Cout * 4)

    out_nhwc = pl.pallas_call(
        _norm_affine_kernel,
        out_shape=jax.ShapeDtypeStruct((N, OH, OW, Cout), jnp.float32),
        grid_spec=pltpu.PrefetchScalarGridSpec(
            num_scalar_prefetch=0,
            grid=(N, RT2),
            in_specs=[
                pl.BlockSpec((1, TR2, OW, Cout), lambda n, r: (n, r, 0, 0)),
                pl.BlockSpec((1, 1, Cout), lambda n, r: (n, 0, 0)),
                pl.BlockSpec((1, 1, Cout), lambda n, r: (n, 0, 0)),
            ],
            out_specs=pl.BlockSpec((1, TR2, OW, Cout), lambda n, r: (n, r, 0, 0)),
        ),
        compiler_params=pltpu.CompilerParams(
            dimension_semantics=("parallel", "parallel"),
            vmem_limit_bytes=vmem_limit),
        cost_estimate=pl.CostEstimate(flops=flops2, transcendentals=0,
                                      bytes_accessed=bytes2),
    )(y, scale, shift)

    # TODO(synk): fold the NHWC->NCHW relayout into phase 2 (in-kernel transpose + channel-major
    # out_spec) if the consumer cannot accept NHWC; it currently costs one extra HBM pass.
    return jnp.transpose(out_nhwc, (0, 3, 1, 2))


if __name__ == "__main__":
    N, Cin, H, W = 2, 4, 16, 16
    Cout, K, stride, num_styles, upsample = 8, 3, 1, 3, 2

    key = jax.random.PRNGKey(0)
    k1, k2, k3, k4, k5 = jax.random.split(key, 5)
    x = jax.random.normal(k1, (N, Cin, H, W), jnp.float32)
    weight = jax.random.normal(k2, (Cout, Cin, K, K), jnp.float32) * 0.1
    bias = jax.random.normal(k3, (Cout,), jnp.float32) * 0.1
    gamma = jnp.ones((num_styles, Cout), jnp.float32) \
        + 0.1 * jax.random.normal(k4, (num_styles, Cout), jnp.float32)
    beta = 0.1 * jax.random.normal(k5, (num_styles, Cout), jnp.float32)
    style_id = jnp.array([0, 2], dtype=jnp.int32)

    # Pure-JAX reference (mirrors the PyTorch forward).  Conv operands are rounded to bf16
    # exactly like the kernel's MXU feed so the comparison isolates kernel correctness.
    def ref_forward(x, style_id):
        xu = jnp.repeat(jnp.repeat(x, upsample, axis=2), upsample, axis=3)
        p = K // 2
        xpad = jnp.pad(xu, ((0, 0), (0, 0), (p, p), (p, p)), mode="reflect")
        xb = xpad.astype(jnp.bfloat16).astype(jnp.float32)
        wb = weight.astype(jnp.bfloat16).astype(jnp.float32)
        y = lax.conv_general_dilated(
            xb, wb, (stride, stride), "VALID",
            dimension_numbers=("NCHW", "OIHW", "NCHW"),
            precision=lax.Precision.HIGHEST)
        y = y + bias.reshape(1, Cout, 1, 1)
        mean = jnp.mean(y, axis=(2, 3), keepdims=True)
        std = jnp.std(y, axis=(2, 3), keepdims=True, ddof=1)   # torch.Tensor.std is unbiased
        norm = (y - mean) / (std + 1e-5)
        g = gamma[style_id].reshape(N, Cout, 1, 1)
        b = beta[style_id].reshape(N, Cout, 1, 1)
        return norm * g + b

    ref = ref_forward(x, style_id)

    # Tight check with an f32 pre-norm intermediate (isolates algorithmic correctness).
    # row_tile=8 keeps several row tiles at toy sizes so the halo / partial-stats path is exercised.
    out_f32 = upsample_conv_layer(x, style_id, weight, bias, gamma, beta,
                                  kernel_size=K, stride=stride, upsample=upsample,
                                  row_tile=8, intermediate_dtype=jnp.float32)
    out_f32 = jax.block_until_ready(out_f32)
    assert out_f32.shape == (N, Cout, upsample * H, upsample * W)
    err32 = float(jnp.max(jnp.abs(out_f32 - ref)))
    assert err32 < 1e-3, err32

    # Default (perf) path: bf16 pre-norm intermediate halves intermediate HBM traffic; the
    # quantisation of the pre-norm activation bounds the output deviation at ~1 bf16 ulp of
    # |y| scaled by gamma/std (~1e-2 at these statistics).
    out_bf16 = upsample_conv_layer(x, style_id, weight, bias, gamma, beta,
                                   kernel_size=K, stride=stride, upsample=upsample,
                                   row_tile=8)
    out_bf16 = jax.block_until_ready(out_bf16)
    errbf = float(jnp.max(jnp.abs(out_bf16 - ref)))
    assert errbf < 3e-2, errbf

    print("KERNEL_OK")
</pallas_src>

<mosaic_0001>
module attributes {stable_mosaic.version = 11 : i64} {
  func.func @kernel(%arg0: i32, %arg1: i32, %arg2: memref<1x8x34x128xbf16, #tpu.memory_space<vmem>>, %arg3: memref<1x2x34x128xbf16, #tpu.memory_space<vmem>>, %arg4: memref<9x128x128xbf16, #tpu.memory_space<vmem>>, %arg5: memref<1x8xf32, #tpu.memory_space<vmem>>, %arg6: memref<1x8x32x8xf32, #tpu.memory_space<vmem>>, %arg7: memref<1x1x2x8xf32, #tpu.memory_space<vmem>>, %arg8: memref<256x128xf32, #tpu.memory_space<vmem>>) attributes {dimension_semantics = [#tpu.dimension_semantics<parallel>, #tpu.dimension_semantics<parallel>], iteration_bounds = array<i64: 2, 4>, scalar_prefetch = 0 : i64, scratch_operands = 1 : i64, tpu.core_type = #tpu.core_type<tc>, window_params = [{transform_indices = @transform_0, window_bounds = array<i64: 1, 8, 34, 128>}, {transform_indices = @transform_1, window_bounds = array<i64: 1, 2, 34, 128>}, {pipeline_mode = #tpu.pipeline_mode<synchronous>, transform_indices = @transform_2, window_bounds = array<i64: 9, 128, 128>}, {pipeline_mode = #tpu.pipeline_mode<synchronous>, transform_indices = @transform_3, window_bounds = array<i64: 1, 8>}, {transform_indices = @transform_4, window_bounds = array<i64: 1, 8, 32, 8>}, {transform_indices = @transform_5, window_bounds = array<i64: 1, 1, 2, 8>}]} {
    %c0 = arith.constant 0 : index
    %c0_0 = arith.constant 0 : index
    %c0_1 = arith.constant 0 : index
    %c0_2 = arith.constant 0 : index
    %0 = vector.load %arg2[%c0, %c0_0, %c0_1, %c0_2] : memref<1x8x34x128xbf16, #tpu.memory_space<vmem>>, vector<1x8x32x128xbf16>
    %1 = vector.shape_cast %0 : vector<1x8x32x128xbf16> to vector<8x32x128xbf16>
    %2 = vector.shape_cast %1 : vector<8x32x128xbf16> to vector<256x128xbf16>
    %c0_3 = arith.constant 0 : index
    %c0_4 = arith.constant 0 : index
    %c0_5 = arith.constant 0 : index
    %3 = vector.load %arg4[%c0_3, %c0_4, %c0_5] : memref<9x128x128xbf16, #tpu.memory_space<vmem>>, vector<1x128x128xbf16>
    %4 = vector.shape_cast %3 : vector<1x128x128xbf16> to vector<128x128xbf16>
    %cst = arith.constant dense<0.000000e+00> : vector<256x128xf32>
    %5 = tpu.matmul %2, %4, %cst {dimension_numbers = #tpu.dot_dimension_numbers<[1], [0], [0], [1], [0, 0, 1, 1], [], []>} : vector<256x128xbf16>, vector<128x128xbf16>, vector<256x128xf32> -> vector<256x128xf32>
    %c0_6 = arith.constant 0 : index
    %c0_7 = arith.constant 0 : index
    %c1 = arith.constant 1 : index
    %c0_8 = arith.constant 0 : index
    %6 = vector.load %arg2[%c0_6, %c0_7, %c1, %c0_8] : memref<1x8x34x128xbf16, #tpu.memory_space<vmem>>, vector<1x8x32x128xbf16>
    %7 = vector.shape_cast %6 : vector<1x8x32x128xbf16> to vector<8x32x128xbf16>
    %8 = vector.shape_cast %7 : vector<8x32x128xbf16> to vector<256x128xbf16>
    %c1_9 = arith.constant 1 : index
    %c0_10 = arith.constant 0 : index
    %c0_11 = arith.constant 0 : index
    %9 = vector.load %arg4[%c1_9, %c0_10, %c0_11] : memref<9x128x128xbf16, #tpu.memory_space<vmem>>, vector<1x128x128xbf16>
    %10 = vector.shape_cast %9 : vector<1x128x128xbf16> to vector<128x128xbf16>
    %cst_12 = arith.constant dense<0.000000e+00> : vector<256x128xf32>
    %11 = tpu.matmul %8, %10, %cst_12 {dimension_numbers = #tpu.dot_dimension_numbers<[1], [0], [0], [1], [0, 0, 1, 1], [], []>} : vector<256x128xbf16>, vector<128x128xbf16>, vector<256x128xf32> -> vector<256x128xf32>
    %12 = arith.addf %5, %11 : vector<256x128xf32>
    %c0_13 = arith.constant 0 : index
    %c0_14 = arith.constant 0 : index
    %c2 = arith.constant 2 : index
    %c0_15 = arith.constant 0 : index
    %13 = vector.load %arg2[%c0_13, %c0_14, %c2, %c0_15] : memref<1x8x34x128xbf16, #tpu.memory_space<vmem>>, vector<1x8x32x128xbf16>
    %14 = vector.shape_cast %13 : vector<1x8x32x128xbf16> to vector<8x32x128xbf16>
    %15 = vector.shape_cast %14 : vector<8x32x128xbf16> to vector<256x128xbf16>
    %c2_16 = arith.constant 2 : index
    %c0_17 = arith.constant 0 : index
    %c0_18 = arith.constant 0 : index
    %16 = vector.load %arg4[%c2_16, %c0_17, %c0_18] : memref<9x128x128xbf16, #tpu.memory_space<vmem>>, vector<1x128x128xbf16>
    %17 = vector.shape_cast %16 : vector<1x128x128xbf16> to vector<128x128xbf16>
    %cst_19 = arith.constant dense<0.000000e+00> : vector<256x128xf32>
    %18 = tpu.matmul %15, %17, %cst_19 {dimension_numbers = #tpu.dot_dimension_numbers<[1], [0], [0], [1], [0, 0, 1, 1], [], []>} : vector<256x128xbf16>, vector<128x128xbf16>, vector<256x128xf32> -> vector<256x128xf32>
    %19 = arith.addf %12, %18 : vector<256x128xf32>
    %c0_20 = arith.constant 0 : index
    %c0_21 = arith.constant 0 : index
    %20 = vector.load %arg8[%c0_20, %c0_21] : memref<256x128xf32, #tpu.memory_space<vmem>>, vector<256x128xf32>
    tpu.vector_store %arg8[%c0_20, %c0_21], %19 {strides = array<i32>} : memref<256x128xf32, #tpu.memory_space<vmem>>, vector<256x128xf32>,
    %c0_22 = arith.constant 0 : index
    %c1_23 = arith.constant 1 : index
    %c0_24 = arith.constant 0 : index
    %c0_25 = arith.constant 0 : index
    %21 = vector.load %arg2[%c0_22, %c1_23, %c0_24, %c0_25] : memref<1x8x34x128xbf16, #tpu.memory_space<vmem>>, vector<1x7x32x128xbf16>
    %22 = vector.shape_cast %21 : vector<1x7x32x128xbf16> to vector<7x32x128xbf16>
    %c0_26 = arith.constant 0 : index
    %c0_27 = arith.constant 0 : index
    %c0_28 = arith.constant 0 : index
    %c0_29 = arith.constant 0 : index
    %23 = vector.load %arg3[%c0_26, %c0_27, %c0_28, %c0_29] : memref<1x2x34x128xbf16, #tpu.memory_space<vmem>>, vector<1x1x32x128xbf16>
    %24 = vector.shape_cast %23 : vector<1x1x32x128xbf16> to vector<1x32x128xbf16>
    %25 = tpu.concatenate %22, %24 in 0 : vector<7x32x128xbf16>, vector<1x32x128xbf16> -> vector<8x32x128xbf16>
    %26 = vector.shape_cast %25 : vector<8x32x128xbf16> to vector<256x128xbf16>
    %c3 = arith.constant 3 : index
    %c0_30 = arith.constant 0 : index
    %c0_31 = arith.constant 0 : index
    %27 = vector.load %arg4[%c3, %c0_30, %c0_31] : memref<9x128x128xbf16, #tpu.memory_space<vmem>>, vector<1x128x128xbf16>
    %28 = vector.shape_cast %27 : vector<1x128x128xbf16> to vector<128x128xbf16>
    %cst_32 = arith.constant dense<0.000000e+00> : vector<256x128xf32>
    %29 = tpu.matmul %26, %28, %cst_32 {dimension_numbers = #tpu.dot_dimension_numbers<[1], [0], [0], [1], [0, 0, 1, 1], [], []>} : vector<256x128xbf16>, vector<128x128xbf16>, vector<256x128xf32> -> vector<256x128xf32>
    %c0_33 = arith.constant 0 : index
    %c1_34 = arith.constant 1 : index
    %c1_35 = arith.constant 1 : index
    %c0_36 = arith.constant 0 : index
    %30 = vector.load %arg2[%c0_33, %c1_34, %c1_35, %c0_36] : memref<1x8x34x128xbf16, #tpu.memory_space<vmem>>, vector<1x7x32x128xbf16>
    %31 = vector.shape_cast %30 : vector<1x7x32x128xbf16> to vector<7x32x128xbf16>
    %c0_37 = arith.constant 0 : index
    %c0_38 = arith.constant 0 : index
    %c1_39 = arith.constant 1 : index
    %c0_40 = arith.constant 0 : index
    %32 = vector.load %arg3[%c0_37, %c0_38, %c1_39, %c0_40] : memref<1x2x34x128xbf16, #tpu.memory_space<vmem>>, vector<1x1x32x128xbf16>
    %33 = vector.shape_cast %32 : vector<1x1x32x128xbf16> to vector<1x32x128xbf16>
    %34 = tpu.concatenate %31, %33 in 0 : vector<7x32x128xbf16>, vector<1x32x128xbf16> -> vector<8x32x128xbf16>
    %35 = vector.shape_cast %34 : vector<8x32x128xbf16> to vector<256x128xbf16>
    %c4 = arith.constant 4 : index
    %c0_41 = arith.constant 0 : index
    %c0_42 = arith.constant 0 : index
    %36 = vector.load %arg4[%c4, %c0_41, %c0_42] : memref<9x128x128xbf16, #tpu.memory_space<vmem>>, vector<1x128x128xbf16>
    %37 = vector.shape_cast %36 : vector<1x128x128xbf16> to vector<128x128xbf16>
    %cst_43 = arith.constant dense<0.000000e+00> : vector<256x128xf32>
    %38 = tpu.matmul %35, %37, %cst_43 {dimension_numbers = #tpu.dot_dimension_numbers<[1], [0], [0], [1], [0, 0, 1, 1], [], []>} : vector<256x128xbf16>, vector<128x128xbf16>, vector<256x128xf32> -> vector<256x128xf32>
    %39 = arith.addf %29, %38 : vector<256x128xf32>
    %c0_44 = arith.constant 0 : index
    %c1_45 = arith.constant 1 : index
    %c2_46 = arith.constant 2 : index
    %c0_47 = arith.constant 0 : index
    %40 = vector.load %arg2[%c0_44, %c1_45, %c2_46, %c0_47] : memref<1x8x34x128xbf16, #tpu.memory_space<vmem>>, vector<1x7x32x128xbf16>
    %41 = vector.shape_cast %40 : vector<1x7x32x128xbf16> to vector<7x32x128xbf16>
    %c0_48 = arith.constant 0 : index
    %c0_49 = arith.constant 0 : index
    %c2_50 = arith.constant 2 : index
    %c0_51 = arith.constant 0 : index
    %42 = vector.load %arg3[%c0_48, %c0_49, %c2_50, %c0_51] : memref<1x2x34x128xbf16, #tpu.memory_space<vmem>>, vector<1x1x32x128xbf16>
    %43 = vector.shape_cast %42 : vector<1x1x32x128xbf16> to vector<1x32x128xbf16>
    %44 = tpu.concatenate %41, %43 in 0 : vector<7x32x128xbf16>, vector<1x32x128xbf16> -> vector<8x32x128xbf16>
    %45 = vector.shape_cast %44 : vector<8x32x128xbf16> to vector<256x128xbf16>
    %c5 = arith.constant 5 : index
    %c0_52 = arith.constant 0 : index
    %c0_53 = arith.constant 0 : index
    %46 = vector.load %arg4[%c5, %c0_52, %c0_53] : memref<9x128x128xbf16, #tpu.memory_space<vmem>>, vector<1x128x128xbf16>
    %47 = vector.shape_cast %46 : vector<1x128x128xbf16> to vector<128x128xbf16>
    %cst_54 = arith.constant dense<0.000000e+00> : vector<256x128xf32>
    %48 = tpu.matmul %45, %47, %cst_54 {dimension_numbers = #tpu.dot_dimension_numbers<[1], [0], [0], [1], [0, 0, 1, 1], [], []>} : vector<256x128xbf16>, vector<128x128xbf16>, vector<256x128xf32> -> vector<256x128xf32>
    %49 = arith.addf %39, %48 : vector<256x128xf32>
    %c0_55 = arith.constant 0 : index
    %c0_56 = arith.constant 0 : index
    %50 = vector.load %arg8[%c0_55, %c0_56] : memref<256x128xf32, #tpu.memory_space<vmem>>, vector<256x128xf32>
    %51 = arith.addf %50, %49 : vector<256x128xf32>
    %c0_57 = arith.constant 0 : index
    %c0_58 = arith.constant 0 : index
    %52 = vector.load %arg8[%c0_57, %c0_58] : memref<256x128xf32, #tpu.memory_space<vmem>>, vector<256x128xf32>
    tpu.vector_store %arg8[%c0_57, %c0_58], %51 {strides = array<i32>} : memref<256x128xf32, #tpu.memory_space<vmem>>, vector<256x128xf32>,
    %c0_59 = arith.constant 0 : index
    %c2_60 = arith.constant 2 : index
    %c0_61 = arith.constant 0 : index
    %c0_62 = arith.constant 0 : index
    %53 = vector.load %arg2[%c0_59, %c2_60, %c0_61, %c0_62] : memref<1x8x34x128xbf16, #tpu.memory_space<vmem>>, vector<1x6x32x128xbf16>
    %54 = vector.shape_cast %53 : vector<1x6x32x128xbf16> to vector<6x32x128xbf16>
    %c0_63 = arith.constant 0 : index
    %c0_64 = arith.constant 0 : index
    %c0_65 = arith.constant 0 : index
    %c0_66 = arith.constant 0 : index
    %55 = vector.load %arg3[%c0_63, %c0_64, %c0_65, %c0_66] : memref<1x2x34x128xbf16, #tpu.memory_space<vmem>>, vector<1x2x32x128xbf16>
    %56 = vector.shape_cast %55 : vector<1x2x32x128xbf16> to vector<2x32x128xbf16>
    %57 = tpu.concatenate %54, %56 in 0 : vector<6x32x128xbf16>, vector<2x32x128xbf16> -> vector<8x32x128xbf16>
    %58 = vector.shape_cast %57 : vector<8x32x128xbf16> to vector<256x128xbf16>
    %c6 = arith.constant 6 : index
    %c0_67 = arith.constant 0 : index
    %c0_68 = arith.constant 0 : index
    %59 = vector.load %arg4[%c6, %c0_67, %c0_68] : memref<9x128x128xbf16, #tpu.memory_space<vmem>>, vector<1x128x128xbf16>
    %60 = vector.shape_cast %59 : vector<1x128x128xbf16> to vector<128x128xbf16>
    %cst_69 = arith.constant dense<0.000000e+00> : vector<256x128xf32>
    %61 = tpu.matmul %58, %60, %cst_69 {dimension_numbers = #tpu.dot_dimension_numbers<[1], [0], [0], [1], [0, 0, 1, 1], [], []>} : vector<256x128xbf16>, vector<128x128xbf16>, vector<256x128xf32> -> vector<256x128xf32>
    %c0_70 = arith.constant 0 : index
    %c2_71 = arith.constant 2 : index
    %c1_72 = arith.constant 1 : index
    %c0_73 = arith.constant 0 : index
    %62 = vector.load %arg2[%c0_70, %c2_71, %c1_72, %c0_73] : memref<1x8x34x128xbf16, #tpu.memory_space<vmem>>, vector<1x6x32x128xbf16>
    %63 = vector.shape_cast %62 : vector<1x6x32x128xbf16> to vector<6x32x128xbf16>
    %c0_74 = arith.constant 0 : index
    %c0_75 = arith.constant 0 : index
    %c1_76 = arith.constant 1 : index
    %c0_77 = arith.constant 0 : index
    %64 = vector.load %arg3[%c0_74, %c0_75, %c1_76, %c0_77] : memref<1x2x34x128xbf16, #tpu.memory_space<vmem>>, vector<1x2x32x128xbf16>
    %65 = vector.shape_cast %64 : vector<1x2x32x128xbf16> to vector<2x32x128xbf16>
    %66 = tpu.concatenate %63, %65 in 0 : vector<6x32x128xbf16>, vector<2x32x128xbf16> -> vector<8x32x128xbf16>
    %67 = vector.shape_cast %66 : vector<8x32x128xbf16> to vector<256x128xbf16>
    %c7 = arith.constant 7 : index
    %c0_78 = arith.constant 0 : index
    %c0_79 = arith.constant 0 : index
    %68 = vector.load %arg4[%c7, %c0_78, %c0_79] : memref<9x128x128xbf16, #tpu.memory_space<vmem>>, vector<1x128x128xbf16>
    %69 = vector.shape_cast %68 : vector<1x128x128xbf16> to vector<128x128xbf16>
    %cst_80 = arith.constant dense<0.000000e+00> : vector<256x128xf32>
    %70 = tpu.matmul %67, %69, %cst_80 {dimension_numbers = #tpu.dot_dimension_numbers<[1], [0], [0], [1], [0, 0, 1, 1], [], []>} : vector<256x128xbf16>, vector<128x128xbf16>, vector<256x128xf32> -> vector<256x128xf32>
    %71 = arith.addf %61, %70 : vector<256x128xf32>
    %c0_81 = arith.constant 0 : index
    %c2_82 = arith.constant 2 : index
    %c2_83 = arith.constant 2 : index
    %c0_84 = arith.constant 0 : index
    %72 = vector.load %arg2[%c0_81, %c2_82, %c2_83, %c0_84] : memref<1x8x34x128xbf16, #tpu.memory_space<vmem>>, vector<1x6x32x128xbf16>
    %73 = vector.shape_cast %72 : vector<1x6x32x128xbf16> to vector<6x32x128xbf16>
    %c0_85 = arith.constant 0 : index
    %c0_86 = arith.constant 0 : index
    %c2_87 = arith.constant 2 : index
    %c0_88 = arith.constant 0 : index
    %74 = vector.load %arg3[%c0_85, %c0_86, %c2_87, %c0_88] : memref<1x2x34x128xbf16, #tpu.memory_space<vmem>>, vector<1x2x32x128xbf16>
    %75 = vector.shape_cast %74 : vector<1x2x32x128xbf16> to vector<2x32x128xbf16>
    %76 = tpu.concatenate %73, %75 in 0 : vector<6x32x128xbf16>, vector<2x32x128xbf16> -> vector<8x32x128xbf16>
    %77 = vector.shape_cast %76 : vector<8x32x128xbf16> to vector<256x128xbf16>
    %c8 = arith.constant 8 : index
    %c0_89 = arith.constant 0 : index
    %c0_90 = arith.constant 0 : index
    %78 = vector.load %arg4[%c8, %c0_89, %c0_90] : memref<9x128x128xbf16, #tpu.memory_space<vmem>>, vector<1x128x128xbf16>
    %79 = vector.shape_cast %78 : vector<1x128x128xbf16> to vector<128x128xbf16>
    %cst_91 = arith.constant dense<0.000000e+00> : vector<256x128xf32>
    %80 = tpu.matmul %77, %79, %cst_91 {dimension_numbers = #tpu.dot_dimension_numbers<[1], [0], [0], [1], [0, 0, 1, 1], [], []>} : vector<256x128xbf16>, vector<128x128xbf16>, vector<256x128xf32> -> vector<256x128xf32>
    %81 = arith.addf %71, %80 : vector<256x128xf32>
    %c0_92 = arith.constant 0 : index
    %c0_93 = arith.constant 0 : index
    %82 = vector.load %arg8[%c0_92, %c0_93] : memref<256x128xf32, #tpu.memory_space<vmem>>, vector<256x128xf32>
    %83 = arith.addf %82, %81 : vector<256x128xf32>
    %c0_94 = arith.constant 0 : index
    %c0_95 = arith.constant 0 : index
    %84 = vector.load %arg8[%c0_94, %c0_95] : memref<256x128xf32, #tpu.memory_space<vmem>>, vector<256x128xf32>
    tpu.vector_store %arg8[%c0_94, %c0_95], %83 {strides = array<i32>} : memref<256x128xf32, #tpu.memory_space<vmem>>, vector<256x128xf32>,
    %c0_96 = arith.constant 0 : index
    %c0_97 = arith.constant 0 : index
    %85 = vector.load %arg8[%c0_96, %c0_97] : memref<256x128xf32, #tpu.memory_space<vmem>>, vector<256x128xf32>
    %86 = vector.extract_strided_slice %85 {offsets = [0, 0], sizes = [256, 8], strides = [1, 1]} : vector<256x128xf32> to vector<256x8xf32>
    %c0_98 = arith.constant 0 : index
    %c0_99 = arith.constant 0 : index
    %87 = vector.load %arg5[%c0_98, %c0_99] : memref<1x8xf32, #tpu.memory_space<vmem>>, vector<1x8xf32>
    %88 = vector.broadcast %87 : vector<1x8xf32> to vector<256x8xf32>
    %89 = arith.addf %86, %88 : vector<256x8xf32>
    %90 = vector.shape_cast %89 : vector<256x8xf32> to vector<8x32x8xf32>
    %c0_100 = arith.constant 0 : index
    %c0_101 = arith.constant 0 : index
    %c0_102 = arith.constant 0 : index
    %c0_103 = arith.constant 0 : index
    %91 = vector.load %arg6[%c0_100, %c0_101, %c0_102, %c0_103] : memref<1x8x32x8xf32, #tpu.memory_space<vmem>>, vector<1x8x32x8xf32>
    %92 = vector.shape_cast %91 : vector<1x8x32x8xf32> to vector<8x32x8xf32>
    %93 = vector.shape_cast %90 : vector<8x32x8xf32> to vector<1x8x32x8xf32>
    tpu.vector_store %arg6[%c0_100, %c0_101, %c0_102, %c0_103], %93 {strides = array<i32>} : memref<1x8x32x8xf32, #tpu.memory_space<vmem>>, vector<1x8x32x8xf32>,
    %cst_104 = arith.constant dense<0.000000e+00> : vector<8xf32>
    %94 = vector.multi_reduction <add>, %89, %cst_104 [0] : vector<256x8xf32> to vector<8xf32>
    %95 = vector.shape_cast %94 : vector<8xf32> to vector<1x8xf32>
    %cst_105 = arith.constant 2.560000e+02 : f32
    %96 = vector.broadcast %cst_105 : f32 to vector<1x8xf32>
    %97 = arith.divf %95, %96 : vector<1x8xf32>
    %98 = vector.broadcast %97 : vector<1x8xf32> to vector<256x8xf32>
    %99 = arith.subf %89, %98 : vector<256x8xf32>
    %100 = arith.mulf %99, %99 : vector<256x8xf32>
    %cst_106 = arith.constant dense<0.000000e+00> : vector<8xf32>
    %101 = vector.multi_reduction <add>, %100, %cst_106 [0] : vector<256x8xf32> to vector<8xf32>
    %102 = vector.shape_cast %101 : vector<8xf32> to vector<1x8xf32>
    %103 = tpu.concatenate %97, %102 in 0 : vector<1x8xf32>, vector<1x8xf32> -> vector<2x8xf32>
    %c0_107 = arith.constant 0 : index
    %c0_108 = arith.constant 0 : index
    %c0_109 = arith.constant 0 : index
    %c0_110 = arith.constant 0 : index
    %104 = vector.load %arg7[%c0_107, %c0_108, %c0_109, %c0_110] : memref<1x1x2x8xf32, #tpu.memory_space<vmem>>, vector<1x1x2x8xf32>
    %105 = vector.shape_cast %104 : vector<1x1x2x8xf32> to vector<2x8xf32>
    %106 = vector.shape_cast %103 : vector<2x8xf32> to vector<1x1x2x8xf32>
    tpu.vector_store %arg7[%c0_107, %c0_108, %c0_109, %c0_110], %106 {strides = array<i32>} : memref<1x1x2x8xf32, #tpu.memory_space<vmem>>, vector<1x1x2x8xf32>,
    return
  }
  func.func @transform_0(%arg0: i32, %arg1: i32) -> (i32, i32, i32, i32) {
    %c0_i32 = arith.constant 0 : i32
    %c0_i32_0 = arith.constant 0 : i32
    %c0_i32_1 = arith.constant 0 : i32
    return %arg0, %arg1, %c0_i32, %c0_i32_0 : i32, i32, i32, i32
  }
  func.func @transform_1(%arg0: i32, %arg1: i32) -> (i32, i32, i32, i32) {
    %c1_i32 = arith.constant 1 : i32
    %0 = arith.addi %arg1, %c1_i32 : i32
    %c4_i32 = arith.constant 4 : i32
    %1 = arith.muli %0, %c4_i32 : i32
    %c0_i32 = arith.constant 0 : i32
    %c0_i32_0 = arith.constant 0 : i32
    %c0_i32_1 = arith.constant 0 : i32
    return %arg0, %1, %c0_i32, %c0_i32_0 : i32, i32, i32, i32
  }
  func.func @transform_2(%arg0: i32, %arg1: i32) -> (i32, i32, i32) {
    %c0_i32 = arith.constant 0 : i32
    %c0_i32_0 = arith.constant 0 : i32
    %c0_i32_1 = arith.constant 0 : i32
    %c0_i32_2 = arith.constant 0 : i32
    return %c0_i32, %c0_i32_0, %c0_i32_1 : i32, i32, i32
  }
  func.func @transform_3(%arg0: i32, %arg1: i32) -> (i32, i32) {
    %c0_i32 = arith.constant 0 : i32
    %c0_i32_0 = arith.constant 0 : i32
    %c0_i32_1 = arith.constant 0 : i32
    return %c0_i32, %c0_i32_0 : i32, i32
  }
  func.func @transform_4(%arg0: i32, %arg1: i32) -> (i32, i32, i32, i32) {
    %c0_i32 = arith.constant 0 : i32
    %c0_i32_0 = arith.constant 0 : i32
    %c0_i32_1 = arith.constant 0 : i32
    return %arg0, %arg1, %c0_i32, %c0_i32_0 : i32, i32, i32, i32
  }
  func.func @transform_5(%arg0: i32, %arg1: i32) -> (i32, i32, i32, i32) {
    %c0_i32 = arith.constant 0 : i32
    %c0_i32_0 = arith.constant 0 : i32
    %c0_i32_1 = arith.constant 0 : i32
    return %arg0, %arg1, %c0_i32, %c0_i32_0 : i32, i32, i32, i32
  }
}

</mosaic_0001>

<bundles_post_ra>
// kernel: tpu_custom_call.1
= control target key start
LH: loop header
LB: loop body
LE: loop exit
PB: predicated region body
PF: predicated region fallthrough
CT: control target
= control target key end

     0   :  { %11 = vsyncpa [#allocation4], 0  ;;  %s7943_s0 = inlined_call_operand.vmem [shape: bf16[2,34,34,128], index: 0, kind: input, shape index: {}]   ;;  %s7944_s1 = inlined_call_operand.vmem [shape: bf16[2,34,34,128], index: 1, kind: input, shape index: {}]   ;;  %s7945_s2 = inlined_call_operand.vmem [shape: bf16[9,128,128], index: 2, kind: input, shape index: {}]   ;;  %s7946_s3 = inlined_call_operand.vmem [shape: f32[1,8], index: 3, kind: input, shape index: {}]   ;;  %s7947_s4 = inlined_call_operand.vmem [shape: f32[2,32,32,8], index: 4, kind: output, shape index: {0}]   ;;  %s7948_s5 = inlined_call_operand.hbm [shape: f32[2,4,2,8], index: 5, kind: output, shape index: {1}]  }
   0x1   :  { %13 = vsyncpa [#allocation4 + $0x1], 0  ;;  %s5939_s18 = smov 0   ;;  %s5941_s19 = smov 0  }
   0x2   :  { %s5943_s20 = smov 0   ;;  %s5945_s21 = smov 0  }
   0x3   :  { %s5947_s22 = smov 0   ;;  %s5949_s23 = smov 0  }
   0x4   :  { %s5951_s24 = smov 0   ;;  %s5953_s25 = smov 0  }
   0x5 LB: > { %s4796_s26 = sadd.s32 4294967295, %s5906_s25   ;;  %s4797_s27 = sadd.s32 4294967294, %s5906_s25   ;;  %s5906_s25 = sphi %s5953_s25, %s19_s25   ;;  %s5902_s24 = sphi %s5951_s24, %s8044_s24   ;;  %s5898_s23 = sphi %s5949_s23, %s8043_s23   ;;  %s5894_s22 = sphi %s5947_s22, %s8042_s22   ;;  %s5890_s21 = sphi %s5945_s21, %s8041_s21   ;;  %s5886_s20 = sphi %s5943_s20, %s8040_s20   ;;  %s5882_s19 = sphi %s5941_s19, %s8039_s19   ;;  %s5878_s18 = sphi %s5939_s18, %s8038_s18  }
   0x6   : > { %s28_s28 = sadd.s32 1, %s5898_s23  ;;  %s31_s29 = sadd.s32 1, %s5902_s24 }
   0x7   : > { %p29_p0 = scmp.ge.s32.totalorder %s28_s28, 4  ;;  %p180_p1 = scmp.ne.s32.totalorder %s5886_s20, %s5882_s19 }
   0x8   : > { %p181_p2 = scmp.eq.s32.totalorder %s4796_s26, 7  ;;  %p186_p5 = scmp.ne.s32.totalorder %s5882_s19, %s5878_s18 }
   0x9   : > { %s8046_s28 = smov (%p29_p0, %s28_s28), 0  ;;  %s8048_s29 = smov (!%p29_p0, %s31_s29), %s5902_s24 }
   0xa   : > { %7952 = sst [smem:[#allocation6_spill]] %s8046_s28  ;;  %s166_s30 = ssub.s32 %s5898_s23, %s8046_s28 }
   0xb   : > { %p5990_p3 = por %p181_p2, %p180_p1  ;;  %p33_p4 = scmp.ge.s32.totalorder %s8048_s29, 2 }
   0xc   : > { %p187_p6 = scmp.eq.s32.totalorder %s4797_s27, 7  ;;  %p4802_p7 = scmp.ge.s32.totalorder %s5906_s25, 1 }
   0xd   : > { %s8050_s29 = smov (%p33_p4, %s8048_s29), 0  ;;  %p253_p9 = scmp.lt.s32.totalorder %s5906_s25, 9 }
   0xe   : > { %7954 = sst [smem:[#allocation7_spill]] %s8050_s29  ;;  %p5999_p8 = por %p187_p6, %p186_p5 }
   0xf   : > { %s165_s8 = ssub.s32 %s5902_s24, %s8050_s29  ;;  %s170_s9 = sadd.s32 1, %s5886_s20 }
  0x10   : > { %s167_s10 = sor.u32 %s166_s30, %s165_s8  ;;  %p254_p10 = pnand %p4802_p7, %p253_p9 }
  0x11   : > { %p168_p11 = scmp.eq.s32.totalorder %s167_s10, 0 }
  0x12   : > { %257 = sbr.rel (%p254_p10) target bundleno = 873 (0x369), region = 36 }
  0x13   : > { %s6008_s11 = scalar_select %p168_p11, %s5886_s20, %s170_s9  }
  0x17   : > { %v5566_v0 = vld [vmem:[%s7945_s2 + $0x78] sm:$0xff]  ;;  %s6014_s14 = sshll.u32 %s5890_s21, 3  ;;  %p319_p12 = scmp.lt.s32.totalorder %s5894_s22, 1  ;;  %v5565_v1 = vld [vmem:[%s7945_s2 + $0x70] sm:$0xff]  ;;  %v5564_v2 = vld [vmem:[%s7945_s2 + $0x68] sm:$0xff]  ;;  %vm1246_vm3 = vcmask 1042432  }
  0x18   : > { %p321_p13 = scmp.lt.s32.totalorder %s6014_s14, 33  ;;  %900 = vmatpush.bf16.msra.mxu0 %v5566_v0  ;;  %5657 = vmatpush.bf16.msra.mxu1 %v5566_v0  ;;  %v5563_v3 = vld [vmem:[%s7945_s2 + $0x60] sm:$0xff]  ;;  %vm416_vm0 = vsmask.f32 3328  ;;  %vm417_vm1 = vsmask.f32 7440 }
  0x19   : > { %s6022_s17 = scalar_select %p319_p12, %s5894_s22, 1  ;;  %5658 = vmatpush.bf16.msra.mxu2 %v5566_v0  ;;  %5659 = vmatpush.bf16.msra.mxu3 %v5566_v0  ;;  %v5562_v21 = vld [vmem:[%s7945_s2 + $0x58] sm:$0xff]  ;;  %vm6064_vm2 = vmor %vm416_vm0, %vm417_vm1  ;;  %v5561_v40 = vld [vmem:[%s7945_s2 + $0x50] sm:$0xff]  ;;  %vm1247_vm4 = vcmask 1046532   ;;  %vm4373_vm6 = vcmask 64512   ;;  %vm4616_vm8 = vcmask 1040384  }
  0x1a   : > { %s322_s26 = scalar_select %p321_p13, %s6014_s14, 33  ;;  %v5560_v59 = vld [vmem:[%s7945_s2 + $0x48] sm:$0xff]  ;;  %vm6393_vm5 = vmor %vm1246_vm3, %vm1247_vm4  ;;  %vm4618_vm9 = vcmask 58368  }
  0x1b   : > { %s5682_s27 = smul.u32 170, %s6022_s17  ;;  %s5656_s15 = sadd.s32 8, %s6014_s14 }
  0x1c   : > { %s5681_s30 = smul.u32 5, %s322_s26  ;;  %901 = vmatpush.bf16.msra.mxu0 %v5565_v1  ;;  %5660 = vmatpush.bf16.msra.mxu1 %v5565_v1  ;;  %p6745_p0 = scmp.lt.s32.totalorder %s5656_s15, 33 }
  0x1d   : > { %5661 = vmatpush.bf16.msra.mxu2 %v5565_v1  ;;  %5662 = vmatpush.bf16.msra.mxu3 %v5565_v1  ;;  %p352_p1 = scmp.lt.s32.totalorder %s6014_s14, 31  ;;  %s4811_s8 = sshll.u32 %s6022_s17, 7 }
  0x1e   : > { %s325_s10 = sadd.s32 %s5682_s27, %s5681_s30  ;;  %s8052_s15 = smov (!%p6745_p0, %s5656_s15), 33 }
  0x1f   : > { %s4805_s12 = sshll.u32 %s325_s10, 2  ;;  %s5683_s29 = smul.u32 5, %s8052_s15 }
  0x20   : > { %s6037_s28 = scalar_lea.vmem %s7943_s0, %s4805_s12  ;;  %902 = vmatpush.bf16.msra.mxu0 %v5564_v2  ;;  %5663 = vmatpush.bf16.msra.mxu1 %v5564_v2  ;;  %s8054_s14 = smov (!%p352_p1, %s6014_s14), 31 }
  0x21   : > { %v360_v4 = vld [vmem:[%s6037_s28] sm:$0xf]  ;;  %v6041_v5 = vld [vmem:[%s6037_s28 + $0x4] sm:$0xf]  ;;  %v6044_v6 = vld [vmem:[%s6037_s28 + $0x8] sm:$0xf]  ;;  %5664 = vmatpush.bf16.msra.mxu2 %v5564_v2  ;;  %5665 = vmatpush.bf16.msra.mxu3 %v5564_v2  ;;  %s343_s26 = sadd.s32 %s5683_s29, %s5682_s27 }
  0x22   : > { %v420_v7 = vshrl.u32 %v360_v4, 16  ;;  %v423_v8 = vshll.u32 %v360_v4, 16  ;;  %v429_v9 = vshll.u32 %v6041_v5, 16  ;;  %v433_v10 = vshrl.u32 %v6041_v5, 16  ;;  %v368_v11 = vld [vmem:[%s6037_s28 + $0x28] sm:$0xf] }
  0x23   : > { %v439_v12 = vshll.u32 %v6044_v6, 16  ;;  %v369_v13 = vld [vmem:[%s6037_s28 + $0x2c] sm:$0xf]  ;;  %v6052_v14 = vld [vmem:[%s6037_s28 + $0x30] sm:$0xf]  ;;  %v508_v15 = vshrl.u32 %v368_v11, 16 }
  0x24   : > { %v422_v16 = vrot.slane %v420_v7, 4  ;;  %v425_v17 = vrot.slane %v423_v8, 5  ;;  %v431_v18 = vrot.slane %v429_v9, 5  ;;  %v435_v19 = vrot.slane %v433_v10, 4  ;;  %v376_v20 = vld [vmem:[%s6037_s28 + $0x50] sm:$0xf]  ;;  %903 = vmatpush.bf16.msra.mxu0 %v5563_v3  ;;  %5666 = vmatpush.bf16.msra.mxu1 %v5563_v3 }
  0x25   : > { %v6058_v22 = vrot.slane %v439_v12, 5  ;;  %v510_v23 = vrot.slane %v508_v15, 4  ;;  %v511_v24 = vshll.u32 %v368_v11, 16  ;;  %v517_v25 = vshll.u32 %v369_v13, 16  ;;  %5667 = vmatpush.bf16.msra.mxu2 %v5563_v3  ;;  %5668 = vmatpush.bf16.msra.mxu3 %v5563_v3  ;;  %v377_v30 = vld [vmem:[%s6037_s28 + $0x54] sm:$0xf] }
  0x26   : > { %v426_v26 = vor.u32 %v425_v17, %v422_v16  ;;  %v436_v27 = vor.u32 %v435_v19, %v431_v18  ;;  %v521_v28 = vshrl.u32 %v369_v13, 16  ;;  %v527_v29 = vshll.u32 %v6052_v14, 16  ;;  %v6074_v42 = vld [vmem:[%s6037_s28 + $0x58] sm:$0xf]  ;;  %v385_v63 = vld [vmem:[%s6037_s28 + $0x7c] sm:$0xf] }
  0x27   : > { %v513_v32 = vrot.slane %v511_v24, 5  ;;  %v519_v33 = vrot.slane %v517_v25, 5  ;;  %v596_v34 = vshrl.u32 %v376_v20, 16  ;;  %v599_v35 = vshll.u32 %v376_v20, 16  ;;  %v384_v50 = vld [vmem:[%s6037_s28 + $0x78] sm:$0xf] }
  0x28   : > { %v427_v36 = vrot.slane %v426_v26, 4  ;;  %v437_v37 = vrot.slane %v436_v27, 4  ;;  %v523_v38 = vrot.slane %v521_v28, 4  ;;  %v6068_v39 = vrot.slane %v527_v29, 5  ;;  %904 = vmatpush.bf16.msra.mxu0 %v5562_v21  ;;  %5669 = vmatpush.bf16.msra.mxu1 %v5562_v21  ;;  %v6101_v7 = vld [vmem:[%s6037_s28 + $0x80] sm:$0xf] }
  0x29   : > { %v514_v41 = vor.u32 %v513_v32, %v510_v23  ;;  %v598_v43 = vrot.slane %v596_v34, 4  ;;  %v601_v44 = vrot.slane %v599_v35, 5  ;;  %v605_v45 = vshll.u32 %v377_v30, 16  ;;  %5670 = vmatpush.bf16.msra.mxu2 %v5562_v21  ;;  %5671 = vmatpush.bf16.msra.mxu3 %v5562_v21  ;;  %v6106_v12 = vld [vmem:[%s6037_s28 + $0xc] sm:$0xf]  ;;  %v5606_v34 = vld [vmem:[%s7945_s2 + $0x138] sm:$0xff] }
  0x2a   : > { %v432_v46 = vsel %vm6064_vm2, %v427_v36, %v431_v18  ;;  %v442_v47 = vsel %vm6064_vm2, %v437_v37, %v6058_v22  ;;  %v524_v48 = vor.u32 %v523_v38, %v519_v33  ;;  %v609_v49 = vshrl.u32 %v377_v30, 16  ;;  %v5559_v18 = vld [vmem:[%s7945_s2 + $0x40] sm:$0xff]  ;;  %v6113_v23 = vld [vmem:[%s6037_s28 + $0x10] sm:$0x1]  ;;  %v371_v36 = vld [vmem:[%s6037_s28 + $0x34] sm:$0xf] }
  0x2b   : > { %v6082_v51 = vunpack.c.l.b16 %v432_v46  ;;  %v6084_v52 = vunpack.c.l.b16 %v442_v47  ;;  %v515_v53 = vrot.slane %v514_v41, 4  ;;  %v602_v54 = vor.u32 %v601_v44, %v598_v43  ;;  %s4808_s30 = sshll.u32 %s343_s26, 2  ;;  %s4810_s27 = sshll.u32 %s8054_s14, 2 }
  0x2c   : > { %v525_v55 = vrot.slane %v524_v48, 4  ;;  %v607_v56 = vrot.slane %v605_v45, 5  ;;  %v611_v57 = vrot.slane %v609_v49, 4  ;;  %v615_v58 = vshll.u32 %v6074_v42, 16  ;;  %905 = vmatpush.bf16.msra.mxu0 %v5561_v40  ;;  %5672 = vmatpush.bf16.msra.mxu1 %v5561_v40  ;;  %v5558_v45 = vld [vmem:[%s7945_s2 + $0x38] sm:$0xff]  ;;  %v5573_v49 = vld [vmem:[%s7945_s2 + $0xb0] sm:$0xff]  ;;  %s6786_s9 = scalar_lea.vmem %s7944_s1, %s4808_s30  ;;  %s7231_s10 = sadd.s32 %s4811_s8, %s4810_s27 }
  0x2d   : > { %v820_v60 = vpack.c.b16 %v6084_v52, %v6082_v51  ;;  %v520_v61 = vsel %vm6064_vm2, %v515_v53, %v519_v33  ;;  %v603_v62 = vrot.slane %v602_v54, 4  ;;  %v684_v0 = vshrl.u32 %v384_v50, 16  ;;  %5673 = vmatpush.bf16.msra.mxu2 %v5561_v40  ;;  %5674 = vmatpush.bf16.msra.mxu3 %v5561_v40  ;;  %v5574_v33 = vld [vmem:[%s7945_s2 + $0xb8] sm:$0xff]  ;;  %s4812_s14 = sshll.u32 %s7231_s10, 3  ;;  %s5524_s29 = sshll.u32 %s5894_s22, 2 }
  0x2e   : > { %v530_v1 = vsel %vm6064_vm2, %v525_v55, %v6068_v39  ;;  %v796_v2 = vunpack.c.l.b16 %v520_v61  ;;  %v612_v3 = vor.u32 %v611_v57, %v607_v56  ;;  %v6098_v4 = vrot.slane %v615_v58, 5  ;;  %v410_v57 = vld [vmem:[%s6037_s28 + $0x38] sm:$0x1]  ;;  %s7259_s16 = scalar_lea.vmem %s7947_s4, %s4812_s14  ;;  %s310_s26 = sand.u32 1, %s5882_s19  }
  0x2f   : > { %v797_v8 = vunpack.c.l.b16 %v530_v1  ;;  %v608_v9 = vsel %vm6064_vm2, %v603_v62, %v607_v56  ;;  %v686_v10 = vrot.slane %v684_v0, 4  ;;  %v687_v11 = vshll.u32 %v384_v50, 16  ;;  %v5598_v50 = vld [vmem:[%s7945_s2 + $0xf8] sm:$0xff]  ;;  %s4645_s30 = sadd.s32 %s5890_s21, %s5524_s29  ;;  %s4803_s27 = sshll.u32 %s310_s26, 1 }
  0x30   : > { %v613_v13 = vrot.slane %v612_v3, 4  ;;  %v804_v15 = vunpack.c.l.b16 %v608_v9  ;;  %v693_v16 = vshll.u32 %v385_v63, 16  ;;  %v697_v17 = vshrl.u32 %v385_v63, 16  ;;  %906 = vmatpush.bf16.msra.mxu0 %v5560_v59  ;;  %5675 = vmatpush.bf16.msra.mxu1 %v5560_v59  ;;  %v379_v1 = vld [vmem:[%s6037_s28 + $0x5c] sm:$0xf]  ;;  %v5557_v3 = vld [vmem:[%s7945_s2 + $0x30] sm:$0xff] }
  0x31   : > { %v824_v19 = vpack.c.b16 %v797_v8, %v796_v2  ;;  %v689_v20 = vrot.slane %v687_v11, 5  ;;  %v703_v21 = vshll.u32 %v6101_v7, 16  ;;  %v443_v24 = vshrl.u32 %v6044_v6, 16  ;;  %5676 = vmatpush.bf16.msra.mxu2 %v5560_v59  ;;  %5677 = vmatpush.bf16.msra.mxu3 %v5560_v59  ;;  %s5525_s8 = sshll.u32 %s4645_s30, 1  ;;  %s312_s12 = scalar_lea.vmem [#allocation3], %s4803_s27 }
  0x32   : > { %v618_v25 = vsel %vm6064_vm2, %v613_v13, %v6098_v4  ;;  %v695_v26 = vrot.slane %v693_v16, 5  ;;  %v699_v27 = vrot.slane %v697_v17, 4  ;;  %v449_v28 = vshll.u32 %v6106_v12, 16  ;;  %v5597_v13 = vld [vmem:[%s7945_s2 + $0xf0] sm:$0xff]  ;;  %s4647_s17 = scalar_lea.hbm %s7948_s5, %s5525_s8  ;;  %s4649_s13 = sshll.u32 %s312_s12, 4  ;;  %s4650_s13 = int_to_ptr.vmem [resolvable:$true] %s4649_s13 }
  0x33   : > { %v805_v29 = vunpack.c.l.b16 %v618_v25  ;;  %v690_v30 = vor.u32 %v689_v20, %v686_v10  ;;  %v6120_v32 = vrot.slane %v703_v21, 5  ;;  %v445_v35 = vrot.slane %v443_v24, 4  ;;  %v5604_v20 = vld [vmem:[%s7945_s2 + $0x128] sm:$0xff]  ;;  %s4651_s22 = sshll.u32 %s4647_s17, 4  ;;  %s4631_s21 = scalar_lea.sflag [#allocation4], %s310_s26  ;;  %s4652_s22 = int_to_ptr.hbm [resolvable:$true] %s4651_s22 }
  0x34   : > { %v700_v37 = vor.u32 %v699_v27, %v695_v26  ;;  %v451_v38 = vrot.slane %v449_v28, 5  ;;  %v453_v40 = vshrl.u32 %v6106_v12, 16  ;;  %v459_v41 = vshll.u32 %v6113_v23, 16  ;;  %907 = vmatpush.bf16.msra.mxu0 %v5559_v18  ;;  %5678 = vmatpush.bf16.msra.mxu1 %v5559_v18  ;;  %s5826_s15 = sshra.s32 %s4652_s22, 4  ;;  %s5832_s29 = scalar_lea.hbm %s7948_s5, 16  ;;  %s5827_s15 = int_to_ptr.hbm [resolvable:$true] %s5826_s15 }
  0x35   : > { %v828_v43 = vpack.c.b16 %v805_v29, %v804_v15  ;;  %v691_v44 = vrot.slane %v690_v30, 4  ;;  %v446_v46 = vor.u32 %v445_v35, %v6058_v22  ;;  %v531_v47 = vshrl.u32 %v6052_v14, 16  ;;  %5679 = vmatpush.bf16.msra.mxu2 %v5559_v18  ;;  %5680 = vmatpush.bf16.msra.mxu3 %v5559_v18  ;;  %v5605_v14 = vld [vmem:[%s7945_s2 + $0x130] sm:$0xff]  ;;  %v412_v18 = vld [vmem:[%s6037_s28 + $0x60] sm:$0x1]  ;;  %p5833_p6 = scmp.lt.s32.totalorder %s5827_s15, %s7948_s5 }
  0x36   : > { %v701_v48 = vrot.slane %v700_v37, 4  ;;  %v455_v53 = vrot.slane %v453_v40, 4  ;;  %v461_v54 = vrot.slane %v459_v41, 5  ;;  %v537_v55 = vshll.u32 %v371_v36, 16  ;;  %v5596_v40 = vld [vmem:[%s7945_s2 + $0xe8] sm:$0xff] }
  0x37   : > { %v696_v22 = vsel %vm6064_vm2, %v691_v44, %v695_v26  ;;  %v447_v56 = vrot.slane %v446_v46, 4  ;;  %v533_v58 = vrot.slane %v531_v47, 4  ;;  %v541_v59 = vshrl.u32 %v371_v36, 16  ;;  %908 = vmatmul.bf16.vlgmr.msra.gmra.mxu0 %v820_v60  ;;  %928 = vmatmul.bf16.vlgmr.msra.gmra.mxu1 %v824_v19  ;;  %v5572_v19 = vld [vmem:[%s7945_s2 + $0xa8] sm:$0xff]  ;;  %v387_v26 = vld [vmem:[%s6037_s28 + $0x84] sm:$0xf] }
  0x38   : > { %v706_v61 = vsel %vm6064_vm2, %v701_v48, %v6120_v32  ;;  %v812_v62 = vunpack.c.l.b16 %v696_v22  ;;  %v456_v63 = vor.u32 %v455_v53, %v451_v38  ;;  %v539_v0 = vrot.slane %v537_v55, 5  ;;  %948 = vmatmul.bf16.vlgmr.msra.gmra.mxu2 %v828_v43  ;;  %1133 = vmatpush.bf16.msrb.mxu1 %v5558_v45  ;;  %v5603_v46 = vld [vmem:[%s7945_s2 + $0x120] sm:$0xff]  ;;  %v364_v47 = vld [vmem:[%s6037_s28 + $0x14] sm:$0xf] }
  0x39   : > { %1482 = vmatpush.bf16.msrb.mxu2 %v5574_v33  ;;  %2174 = vmatpush.bf16.msrb.mxu3 %v5606_v34  ;;  %v813_v2 = vunpack.c.l.b16 %v706_v61  ;;  %v452_v51 = vsel %vm6064_vm2, %v447_v56, %v451_v38  ;;  %v534_v52 = vor.u32 %v533_v58, %v6068_v39  ;;  %v543_v60 = vrot.slane %v541_v59, 4  ;;  %v5556_v33 = vld [vmem:[%s7945_s2 + $0x28] sm:$0xff]  ;;  %v6207_v56 = vld [vmem:[%s6037_s28 + $0x18] sm:$0xf]  ;;  %v6213_v61 = vld [vmem:[%s6037_s28 + $0x1c] sm:$0xf] }
  0x3a   : > { %2407 = vmatpush.bf16.msrb.mxu0 %v5598_v50  ;;  %v457_v8 = vrot.slane %v456_v63, 4  ;;  %v6161_v9 = vunpack.c.l.b16 %v452_v51  ;;  %v547_v10 = vshll.u32 %v410_v57, 16  ;;  %v619_v11 = vshrl.u32 %v6074_v42, 16  ;;  %v414_v38 = vld [vmem:[%s6037_s28 + $0x88] sm:$0x1]  ;;  %v5595_v63 = vld [vmem:[%s7945_s2 + $0xe0] sm:$0xff] }
  0x3b   : > { %v832_v15 = vpack.c.b16 %v813_v2, %v812_v62  ;;  %v535_v16 = vrot.slane %v534_v52, 4  ;;  %v544_v17 = vor.u32 %v543_v60, %v539_v0  ;;  %v625_v39 = vshll.u32 %v379_v1, 16  ;;  %v372_v51 = vld [vmem:[%s6037_s28 + $0x3c] sm:$0xf] }
  0x3c   : > { %v462_v42 = vsel %vm6064_vm2, %v457_v8, %v461_v54  ;;  %v549_v21 = vrot.slane %v547_v10, 5  ;;  %v621_v24 = vrot.slane %v619_v11, 4  ;;  %v629_v25 = vshrl.u32 %v379_v1, 16  ;;  %1134 = vmatpush.bf16.msrb.mxu1 %v5557_v3  ;;  %v5570_v52 = vld [vmem:[%s7945_s2 + $0x98] sm:$0xff] }
  0x3d   : > { %1483 = vmatpush.bf16.msrb.mxu2 %v5573_v49  ;;  %2175 = vmatpush.bf16.msrb.mxu3 %v5605_v14  ;;  %v6177_v27 = vunpack.c.l.b16 %v462_v42  ;;  %v540_v28 = vsel %vm6064_vm2, %v535_v16, %v539_v0  ;;  %v545_v29 = vrot.slane %v544_v17, 4  ;;  %v627_v30 = vrot.slane %v625_v39, 5  ;;  %v5602_v60 = vld [vmem:[%s7945_s2 + $0x118] sm:$0xff]  ;;  %v6231_v17 = vld [vmem:[%s6037_s28 + $0x40] sm:$0xf] }
  0x3e   : > { %968 = vmatmul.bf16.vlgmr.msra.gmra.mxu3 %v832_v15  ;;  %v6184_v34 = vunpack.c.l.b16 %v540_v28  ;;  %v622_v35 = vor.u32 %v621_v24, %v6098_v4  ;;  %v631_v36 = vrot.slane %v629_v25, 4  ;;  %v635_v37 = vshll.u32 %v412_v18, 16  ;;  %2408 = vmatpush.bf16.msrb.mxu0 %v5597_v13  ;;  %v5571_v4 = vld [vmem:[%s7945_s2 + $0xa0] sm:$0xff]  ;;  %v5554_v18 = vld [vmem:[%s7945_s2 + $0x18] sm:$0xff] }
  0x3f   : > { %v821_v41 = vpack.c.b16 %v6177_v27, %v6161_v9  ;;  %v550_v43 = vsel %vm6064_vm2, %v545_v29, %v549_v21  ;;  %v707_v44 = vshrl.u32 %v6101_v7, 16  ;;  %v713_v45 = vshll.u32 %v387_v26, 16  ;;  %v5555_v7 = vld [vmem:[%s7945_s2 + $0x20] sm:$0xff]  ;;  %v5594_v21 = vld [vmem:[%s7945_s2 + $0xd8] sm:$0xff]  ;;  %v5569_v29 = vld [vmem:[%s7945_s2 + $0x90] sm:$0xff] }
  0x40   : > { %v799_v48 = vunpack.c.l.b16 %v550_v43  ;;  %v623_v49 = vrot.slane %v622_v35, 4  ;;  %v632_v50 = vor.u32 %v631_v36, %v627_v30  ;;  %v637_v53 = vrot.slane %v635_v37, 5  ;;  %1135 = vmatpush.bf16.msrb.mxu1 %v5556_v33  ;;  %v6243_v28 = vld [vmem:[%s6037_s28 + $0x44] sm:$0xf] }
  0x41   : > { %1484 = vmatpush.bf16.msrb.mxu2 %v5572_v19  ;;  %2176 = vmatpush.bf16.msrb.mxu3 %v5604_v20  ;;  %v709_v54 = vrot.slane %v707_v44, 4  ;;  %v715_v55 = vrot.slane %v713_v45, 5  ;;  %v717_v22 = vshrl.u32 %v387_v26, 16  ;;  %v723_v14 = vshll.u32 %v414_v38, 16  ;;  %v380_v37 = vld [vmem:[%s6037_s28 + $0x64] sm:$0xf] }
  0x42   : > { %v825_v57 = vpack.c.b16 %v799_v48, %v6184_v34  ;;  %v628_v58 = vsel %vm6064_vm2, %v623_v49, %v627_v30  ;;  %v633_v59 = vrot.slane %v632_v50, 4  ;;  %2409 = vmatpush.bf16.msrb.mxu0 %v5596_v40  ;;  %v464_v62 = vshrl.u32 %v364_v47, 16  ;;  %v5601_v30 = vld [vmem:[%s7945_s2 + $0x110] sm:$0xff] }
  0x43   : > { %v806_v0 = vunpack.c.l.b16 %v628_v58  ;;  %v710_v1 = vor.u32 %v709_v54, %v6120_v32  ;;  %v719_v2 = vrot.slane %v717_v22, 4  ;;  %v725_v3 = vrot.slane %v723_v14, 5  ;;  %v388_v58 = vld [vmem:[%s6037_s28 + $0x8c] sm:$0xf] }
  0x44   : > { %v638_v8 = vsel %vm6064_vm2, %v633_v59, %v637_v53  ;;  %v466_v9 = vrot.slane %v464_v62, 4  ;;  %v467_v10 = vshll.u32 %v364_v47, 16  ;;  %v473_v32 = vshll.u32 %v6207_v56, 16  ;;  %1136 = vmatpush.bf16.msrb.mxu1 %v5555_v7  ;;  %v381_v53 = vld [vmem:[%s6037_s28 + $0x68] sm:$0xf] }
  0x45   : > { %1485 = vmatpush.bf16.msrb.mxu2 %v5571_v4  ;;  %2177 = vmatpush.bf16.msrb.mxu3 %v5603_v46  ;;  %v807_v11 = vunpack.c.l.b16 %v638_v8  ;;  %v711_v13 = vrot.slane %v710_v1, 4  ;;  %v720_v15 = vor.u32 %v719_v2, %v715_v55  ;;  %v477_v16 = vshrl.u32 %v6207_v56, 16 }
  0x46   : > { %v469_v39 = vrot.slane %v467_v10, 5  ;;  %v475_v19 = vrot.slane %v473_v32, 5  ;;  %v483_v20 = vshll.u32 %v6213_v61, 16  ;;  %v552_v42 = vshrl.u32 %v372_v51, 16  ;;  %2410 = vmatpush.bf16.msrb.mxu0 %v5595_v63 }
  0x47   : > { %v829_v24 = vpack.c.b16 %v807_v11, %v806_v0  ;;  %v716_v25 = vsel %vm6064_vm2, %v711_v13, %v715_v55  ;;  %v721_v26 = vrot.slane %v720_v15, 4  ;;  %v479_v27 = vrot.slane %v477_v16, 4  ;;  %913 = vmatmul.bf16.gmra.mxu0 %v821_v41  ;;  %933 = vmatmul.bf16.gmra.mxu1 %v825_v57  ;;  %v5553_v41 = vld [vmem:[%s7945_s2 + $0x10] sm:$0xff]  ;;  %v6268_v57 = vld [vmem:[%s6037_s28 + $0x6c] sm:$0xf] }
  0x48   : > { %v814_v33 = vunpack.c.l.b16 %v716_v25  ;;  %v470_v34 = vor.u32 %v469_v39, %v466_v9  ;;  %v6251_v35 = vrot.slane %v483_v20, 5  ;;  %v554_v36 = vrot.slane %v552_v42, 4  ;;  %1137 = vmatpush.bf16.msrb.mxu1 %v5554_v18  ;;  %v389_v9 = vld [vmem:[%s6037_s28 + $0x90] sm:$0xf]  ;;  %v6280_v16 = vld [vmem:[%s6037_s28 + $0x94] sm:$0xf] }
  0x49   : > { %1486 = vmatpush.bf16.msrb.mxu2 %v5570_v52  ;;  %2178 = vmatpush.bf16.msrb.mxu3 %v5602_v60  ;;  %v726_v38 = vsel %vm6064_vm2, %v721_v26, %v725_v3  ;;  %v480_v40 = vor.u32 %v479_v27, %v475_v19  ;;  %v555_v43 = vshll.u32 %v372_v51, 16  ;;  %v561_v44 = vshll.u32 %v6231_v17, 16  ;;  %v5568_v42 = vld [vmem:[%s7945_s2 + $0x88] sm:$0xff] }
  0x4a   : > { %953 = vmatmul.bf16.gmra.mxu2 %v829_v24  ;;  %v815_v45 = vunpack.c.l.b16 %v726_v38  ;;  %v471_v4 = vrot.slane %v470_v34, 4  ;;  %v565_v46 = vshrl.u32 %v6231_v17, 16  ;;  %v571_v47 = vshll.u32 %v6243_v28, 16  ;;  %2411 = vmatpush.bf16.msrb.mxu0 %v5594_v21  ;;  %v5600_v21 = vld [vmem:[%s7945_s2 + $0x108] sm:$0xff]  ;;  %v5593_v24 = vld [vmem:[%s7945_s2 + $0xd0] sm:$0xff]  ;;  %v5567_v38 = vld [vmem:[%s7945_s2 + $0x80] sm:$0xff] }
  0x4b   : > { %v481_v48 = vrot.slane %v480_v40, 4  ;;  %v557_v49 = vrot.slane %v555_v43, 5  ;;  %v563_v50 = vrot.slane %v561_v44, 5  ;;  %v640_v7 = vshrl.u32 %v380_v37, 16  ;;  %v5599_v40 = vld [vmem:[%s7945_s2 + $0x100] sm:$0xff] }
  0x4c   : > { %v833_v54 = vpack.c.b16 %v815_v45, %v814_v33  ;;  %v476_v55 = vsel %vm6064_vm2, %v471_v4, %v475_v19  ;;  %v567_v22 = vrot.slane %v565_v46, 4  ;;  %v6265_v14 = vrot.slane %v571_v47, 5  ;;  %1138 = vmatpush.bf16.msrb.mxu1 %v5553_v41  ;;  %v6309_v45 = vld [vmem:[%s6037_s28 + $0x20] sm:$0xf] }
  0x4d   : > { %1487 = vmatpush.bf16.msrb.mxu2 %v5569_v29  ;;  %2179 = vmatpush.bf16.msrb.mxu3 %v5601_v30  ;;  %v486_v59 = vsel %vm6064_vm2, %v481_v48, %v6251_v35  ;;  %v6274_v62 = vunpack.c.l.b16 %v476_v55  ;;  %v558_v63 = vor.u32 %v557_v49, %v554_v36  ;;  %v642_v0 = vrot.slane %v640_v7, 4  ;;  %v5552_v30 = vld [vmem:[%s7945_s2 + $0x8] sm:$0xff] }
  0x4e   : > { %973 = vmatmul.bf16.gmra.mxu3 %v833_v54  ;;  %v793_v1 = vunpack.c.l.b16 %v486_v59  ;;  %v568_v2 = vor.u32 %v567_v22, %v563_v50  ;;  %v643_v3 = vshll.u32 %v380_v37, 16  ;;  %v649_v51 = vshll.u32 %v381_v53, 16  ;;  %2412 = vmatpush.bf16.msrb.mxu0 %v5593_v24  ;;  %v6323_v22 = vld [vmem:[%s6037_s28 + $0x24] sm:$0x1] }
  0x4f   : > { %v559_v52 = vrot.slane %v558_v63, 4  ;;  %v653_v60 = vshrl.u32 %v381_v53, 16  ;;  %v659_v8 = vshll.u32 %v6268_v57, 16  ;;  %v728_v10 = vshrl.u32 %v388_v58, 16  ;;  %v5551_v53 = vld [vmem:[%s7945_s2] sm:$0xff] }
  0x50   : > { %v822_v32 = vpack.c.b16 %v793_v1, %v6274_v62  ;;  %v569_v11 = vrot.slane %v568_v2, 4  ;;  %v645_v13 = vrot.slane %v643_v3, 5  ;;  %v651_v15 = vrot.slane %v649_v51, 5  ;;  %1139 = vmatpush.bf16.msrb.mxu1 %v5552_v30 }
  0x51   : > { %v564_v18 = vsel %vm6064_vm2, %v559_v52, %v563_v50  ;;  %v655_v39 = vrot.slane %v653_v60, 4  ;;  %v6284_v19 = vrot.slane %v659_v8, 5  ;;  %v730_v20 = vrot.slane %v728_v10, 4  ;;  %1488 = vmatpush.bf16.msrb.mxu2 %v5568_v42  ;;  %2180 = vmatpush.bf16.msrb.mxu3 %v5600_v21  ;;  %v5592_v50 = vld [vmem:[%s7945_s2 + $0xc8] sm:$0xff] }
  0x52   : > { %v574_v25 = vsel %vm6064_vm2, %v569_v11, %v6265_v14  ;;  %v800_v26 = vunpack.c.l.b16 %v564_v18  ;;  %v646_v27 = vor.u32 %v645_v13, %v642_v0  ;;  %v731_v29 = vshll.u32 %v388_v58, 16  ;;  %v6332_v52 = vld [vmem:[%s6037_s28 + $0x48] sm:$0xf]  ;;  %2413 = vmatpush.bf16.msrb.mxu0 %v5592_v50  ;;  %v6342_v18 = vld [vmem:[%s6037_s28 + $0x4c] sm:$0x1] }
  0x53   : > { %v801_v33 = vunpack.c.l.b16 %v574_v25  ;;  %v656_v34 = vor.u32 %v655_v39, %v651_v15  ;;  %v737_v36 = vshll.u32 %v389_v9, 16  ;;  %v741_v37 = vshrl.u32 %v389_v9, 16 }
  0x54   : > { %v647_v43 = vrot.slane %v646_v27, 4  ;;  %v733_v44 = vrot.slane %v731_v29, 5  ;;  %v747_v41 = vshll.u32 %v6280_v16, 16  ;;  %v487_v4 = vshrl.u32 %v6213_v61, 16  ;;  %1140 = vmatpush.bf16.msrb.mxu1 %v5551_v53  ;;  %v383_v29 = vld [vmem:[%s6037_s28 + $0x70] sm:$0xf] }
  0x55   : > { %v826_v46 = vpack.c.b16 %v801_v33, %v800_v26  ;;  %v657_v47 = vrot.slane %v656_v34, 4  ;;  %v739_v48 = vrot.slane %v737_v36, 5  ;;  %v743_v49 = vrot.slane %v741_v37, 4  ;;  %1489 = vmatpush.bf16.msrb.mxu2 %v5567_v38  ;;  %2181 = vmatpush.bf16.msrb.mxu3 %v5599_v40  ;;  %v413_v37 = vld [vmem:[%s6037_s28 + $0x74] sm:$0x1] }
  0x56   : > { %v652_v7 = vsel %vm6064_vm2, %v647_v43, %v651_v15  ;;  %v734_v54 = vor.u32 %v733_v44, %v730_v20  ;;  %v6320_v55 = vrot.slane %v747_v41, 5  ;;  %v489_v58 = vrot.slane %v487_v4, 4 }
  0x57   : > { %v662_v59 = vsel %vm6064_vm2, %v657_v47, %v6284_v19  ;;  %v808_v62 = vunpack.c.l.b16 %v652_v7  ;;  %v744_v63 = vor.u32 %v743_v49, %v739_v48  ;;  %v493_v0 = vshll.u32 %v6309_v45, 16  ;;  %918 = vmatmul.bf16.gmra.mxu0 %v822_v32  ;;  %938 = vmatmul.bf16.gmra.mxu1 %v826_v46  ;;  %v5591_v32 = vld [vmem:[%s7945_s2 + $0xc0] sm:$0xff]  ;;  %v415_v7 = vld [vmem:[%s6037_s28 + $0x9c] sm:$0x1] }
  0x58   : > { %v809_v1 = vunpack.c.l.b16 %v662_v59  ;;  %v735_v2 = vrot.slane %v734_v54, 4  ;;  %v490_v3 = vor.u32 %v489_v58, %v6251_v35  ;;  %v497_v51 = vshrl.u32 %v6309_v45, 16  ;;  %2414 = vmatpush.bf16.msrb.mxu0 %v5591_v32 }
  0x59   : > { %v745_v60 = vrot.slane %v744_v63, 4  ;;  %v495_v8 = vrot.slane %v493_v0, 5  ;;  %v503_v9 = vshll.u32 %v6323_v22, 16  ;;  %v575_v10 = vshrl.u32 %v6243_v28, 16  ;;  %v5638_v63 = vld [vmem:[%s7945_s2 + $0x1b8] sm:$0xff] }
  0x5a   : > { %v830_v11 = vpack.c.b16 %v809_v1, %v808_v62  ;;  %v740_v35 = vsel %vm6064_vm2, %v735_v2, %v739_v48  ;;  %v491_v13 = vrot.slane %v490_v3, 4  ;;  %v499_v15 = vrot.slane %v497_v51, 4  ;;  %v391_v48 = vld [vmem:[%s6037_s28 + $0x98] sm:$0xf]  ;;  %3742 = vmatpush.bf16.msra.mxu3 %v5638_v63 }
  0x5b   : > { %v750_v39 = vsel %vm6064_vm2, %v745_v60, %v6320_v55  ;;  %v816_v20 = vunpack.c.l.b16 %v740_v35  ;;  %v505_v42 = vrot.slane %v503_v9, 5  ;;  %v577_v21 = vrot.slane %v575_v10, 4  ;;  %v5614_v0 = vld [vmem:[%s7945_s2 + $0x178] sm:$0xff] }
  0x5c   : > { %958 = vmatmul.bf16.gmra.mxu2 %v830_v11  ;;  %v817_v24 = vunpack.c.l.b16 %v750_v39  ;;  %v496_v25 = vsel %vm6064_vm2, %v491_v13, %v495_v8  ;;  %v500_v26 = vor.u32 %v499_v15, %v495_v8  ;;  %v581_v27 = vshll.u32 %v6332_v52, 16  ;;  %v5654_v60 = vld [vmem:[%s7945_s2 + $0x238] sm:$0xff]  ;;  %2753 = vmatpush.bf16.msra.mxu1 %v5614_v0 }
  0x5d   : > { %v794_v30 = vunpack.c.l.b16 %v496_v25  ;;  %v578_v33 = vor.u32 %v577_v21, %v6265_v14  ;;  %v585_v34 = vshrl.u32 %v6332_v52, 16  ;;  %v591_v36 = vshll.u32 %v6342_v18, 16  ;;  %4088 = vmatpush.bf16.msra.mxu0 %v5654_v60 }
  0x5e   : > { %v834_v38 = vpack.c.b16 %v817_v24, %v816_v20  ;;  %v501_v40 = vrot.slane %v500_v26, 4  ;;  %v583_v43 = vrot.slane %v581_v27, 5  ;;  %v663_v44 = vshrl.u32 %v6268_v57, 16  ;;  %v5646_v57 = vld [vmem:[%s7945_s2 + $0x1f8] sm:$0xff]  ;;  %v5013_v27 = vld [vmem:[%s6037_s28 + $0x14] sm:$0xf] }
  0x5f   : > { %v579_v41 = vrot.slane %v578_v33, 4  ;;  %v587_v4 = vrot.slane %v585_v34, 4  ;;  %v593_v46 = vrot.slane %v591_v36, 5  ;;  %v669_v47 = vshll.u32 %v383_v29, 16  ;;  %3509 = vmatpush.bf16.msra.mxu2 %v5646_v57 }
  0x60   : > { %978 = vmatmul.bf16.gmra.mxu3 %v834_v38  ;;  %v506_v14 = vsel %vm6064_vm2, %v501_v40, %v505_v42  ;;  %v665_v49 = vrot.slane %v663_v44, 4  ;;  %v673_v50 = vshrl.u32 %v383_v29, 16  ;;  %v679_v53 = vshll.u32 %v413_v37, 16  ;;  %v5014_v29 = vld [vmem:[%s6037_s28 + $0x18] sm:$0xf] }
  0x61   : > { %v795_v54 = vunpack.c.l.b16 %v506_v14  ;;  %v584_v58 = vsel %vm6064_vm2, %v579_v41, %v583_v43  ;;  %v588_v59 = vor.u32 %v587_v4, %v583_v43  ;;  %v671_v62 = vrot.slane %v669_v47, 5  ;;  %v1222_v40 = vld [vmem:[%s6037_s28] sm:$0xe] }
  0x62   : > { %v802_v1 = vunpack.c.l.b16 %v584_v58  ;;  %v666_v2 = vor.u32 %v665_v49, %v6284_v19  ;;  %v675_v3 = vrot.slane %v673_v50, 4  ;;  %v681_v51 = vrot.slane %v679_v53, 5 }
  0x63   : > { %v823_v8 = vpack.c.b16 %v795_v54, %v794_v30  ;;  %v589_v9 = vrot.slane %v588_v59, 4  ;;  %v751_v10 = vshrl.u32 %v6280_v16, 16  ;;  %v757_v32 = vshll.u32 %v391_v48, 16 }
  0x64   : > { %v667_v11 = vrot.slane %v666_v2, 4  ;;  %v676_v35 = vor.u32 %v675_v3, %v671_v62  ;;  %v761_v13 = vshrl.u32 %v391_v48, 16  ;;  %v767_v15 = vshll.u32 %v415_v7, 16  ;;  %v5015_v48 = vld [vmem:[%s6037_s28 + $0x1c] sm:$0xf] }
  0x65   : > { %v594_v19 = vsel %vm6064_vm2, %v589_v9, %v593_v46  ;;  %v753_v39 = vrot.slane %v751_v10, 4  ;;  %v759_v20 = vrot.slane %v757_v32, 5  ;;  %v1251_v43 = vrot.slane %v6041_v5, 5 }
  0x66   : > { %v803_v42 = vunpack.c.l.b16 %v594_v19  ;;  %v672_v16 = vsel %vm6064_vm2, %v667_v11, %v671_v62  ;;  %v677_v21 = vrot.slane %v676_v35, 4  ;;  %v763_v24 = vrot.slane %v761_v13, 4  ;;  %v5016_v11 = vld [vmem:[%s6037_s28 + $0x20] sm:$0xf] }
  0x67   : > { %v810_v25 = vunpack.c.l.b16 %v672_v16  ;;  %v754_v26 = vor.u32 %v753_v39, %v6320_v55  ;;  %923 = vmatmul.bf16.gmra.mxu0 %v823_v8  ;;  %v769_v36 = vrot.slane %v767_v15, 5  ;;  %v1694_v41 = vshrl.u32 %v5013_v27, 16 }
  0x68   : > { %v827_v30 = vpack.c.b16 %v803_v42, %v802_v1  ;;  %v682_v33 = vsel %vm6064_vm2, %v677_v21, %v681_v51  ;;  %v764_v34 = vor.u32 %v763_v24, %v759_v20  ;;  %v1697_v4 = vshll.u32 %v5013_v27, 16 }
  0x69   : > { %v811_v37 = vunpack.c.l.b16 %v682_v33  ;;  %v755_v38 = vrot.slane %v754_v26, 4  ;;  %v1703_v55 = vshll.u32 %v5014_v29, 16  ;;  %v4957_v50 = vrot.slane %v1222_v40, 9  ;;  %v1223_v40 = vld [vmem:[%s6037_s28 + $0x14] sm:$0xe] }
  0x6a   : > { %943 = vmatmul.bf16.gmra.mxu1 %v827_v30  ;;  %v765_v44 = vrot.slane %v764_v34, 4  ;;  %v1696_v53 = vrot.slane %v1694_v41, 4  ;;  %v1253_v7 = vrot.slane %v1251_v43, 4  ;;  %v1254_v54 = vrot.slane %v6044_v6, 5 }
  0x6b   : > { %v831_v46 = vpack.c.b16 %v811_v37, %v810_v25  ;;  %v760_v47 = vsel %vm6064_vm2, %v755_v38, %v759_v20  ;;  %v1699_v58 = vrot.slane %v1697_v4, 5  ;;  %v1705_v62 = vrot.slane %v1703_v55, 5  ;;  %v5575_v20 = vld [vmem:[%s6037_s28 + $0x14] sm:$0xff]  ;;  %v5057_v55 = vld [vmem:[%s6037_s28 + $0x24] sm:$0x1] }
  0x6c   : > { %v770_v14 = vsel %vm6064_vm2, %v765_v44, %v769_v36  ;;  %v818_v49 = vunpack.c.l.b16 %v760_v47  ;;  %v1707_v57 = vshrl.u32 %v5014_v29, 16  ;;  %v1713_v63 = vshll.u32 %v5015_v48, 16 }
  0x6d   : > { %963 = vmatmul.bf16.gmra.mxu2 %v831_v46  ;;  %v819_v5 = vunpack.c.l.b16 %v770_v14  ;;  %v1700_v1 = vor.u32 %v1699_v58, %v1696_v53  ;;  %v1256_v2 = vrot.slane %v1254_v54, 4  ;;  %v1252_v51 = vsel %vm6393_vm5, %v4957_v50, %v1251_v43  ;;  %v5613_v58 = vld [vmem:[%s7945_s2 + $0x170] sm:$0xff] }
  0x6e   : > { %v1709_v3 = vrot.slane %v1707_v57, 4  ;;  %v1255_v6 = vsel %vm6393_vm5, %v1253_v7, %v1254_v54  ;;  %v1257_v60 = vrot.slane %v6106_v12, 5  ;;  %v1260_v8 = vrot.slane %v6113_v23, 5  ;;  %v5535_v23 = vld [vmem:[%s6037_s28] sm:$0xff]  ;;  %v5017_v7 = vld [vmem:[%s6037_s28 + $0x28] sm:$0xf]  ;;  %2754 = vmatpush.bf16.msra.mxu1 %v5613_v58 }
  0x6f   : > { %v835_v0 = vpack.c.b16 %v819_v5, %v818_v49  ;;  %v1701_v9 = vrot.slane %v1700_v1, 4  ;;  %v1715_v32 = vrot.slane %v1713_v63, 5  ;;  %v1370_v15 = vunpack.c.l.b16 %v1252_v51  ;;  %v5637_v54 = vld [vmem:[%s7945_s2 + $0x1b0] sm:$0xff] }
  0x70   : > { %v1710_v10 = vor.u32 %v1709_v3, %v1705_v62  ;;  %v1258_v35 = vsel %vm6393_vm5, %v1256_v2, %v1257_v60  ;;  %v1259_v13 = vrot.slane %v1257_v60, 4  ;;  %v1371_v19 = vunpack.c.l.b16 %v1255_v6  ;;  %v5653_v1 = vld [vmem:[%s7945_s2 + $0x230] sm:$0xff]  ;;  %3743 = vmatpush.bf16.msra.mxu3 %v5637_v54  ;;  %v5576_v2 = vld [vmem:[%s6037_s28 + $0x1c] sm:$0xff]  ;;  %v5536_v60 = vld [vmem:[%s6037_s28 + $0x8] sm:$0xff] }
  0x71   : > { %983 = vmatmul.bf16.gmra.mxu3 %v835_v0  ;;  %v1372_v42 = vunpack.c.l.b16 %v1258_v35  ;;  %v1717_v12 = vshrl.u32 %v5015_v48, 16  ;;  %v1723_v21 = vshll.u32 %v5016_v11, 16  ;;  %v1706_v24 = vsel %vm6064_vm2, %v1701_v9, %v1705_v62  ;;  %v5018_v0 = vld [vmem:[%s6037_s28 + $0x2c] sm:$0xf]  ;;  %4089 = vmatpush.bf16.msra.mxu0 %v5653_v1 }
  0x72   : > { %v1711_v39 = vrot.slane %v1710_v10, 4  ;;  %v1261_v16 = vsel %vm6393_vm5, %v1259_v13, %v1260_v8  ;;  %v1727_v27 = vshrl.u32 %v5016_v11, 16  ;;  %v1402_v29 = vpack.c.b16 %v1371_v19, %v1370_v15  ;;  %v5652_v1 = vld [vmem:[%s7945_s2 + $0x228] sm:$0xff] }
  0x73   : > { %v1373_v26 = vunpack.c.l.b16 %v1261_v16  ;;  %v1264_v33 = vrot.slane %v6207_v56, 5  ;;  %v2062_v34 = vunpack.c.l.b16 %v1706_v24  ;;  %v1719_v37 = vrot.slane %v1717_v12, 4  ;;  %v5019_v12 = vld [vmem:[%s6037_s28 + $0x30] sm:$0xf] }
  0x74   : > { %v1716_v25 = vsel %vm6064_vm2, %v1711_v39, %v1715_v32  ;;  %v1725_v38 = vrot.slane %v1723_v21, 5  ;;  %v1729_v43 = vrot.slane %v1727_v27, 4  ;;  %v4958_v44 = vrot.slane %v1223_v40, 9 }
  0x75   : > { %v1403_v30 = vpack.c.b16 %v1373_v26, %v1372_v42  ;;  %v2063_v36 = vunpack.c.l.b16 %v1716_v25  ;;  %v1266_v41 = vrot.slane %v1264_v33, 4  ;;  %v1267_v4 = vrot.slane %v6213_v61, 5  ;;  %v5645_v61 = vld [vmem:[%s7945_s2 + $0x1f0] sm:$0xff]  ;;  %4090 = vmatpush.bf16.msra.mxu0 %v5652_v1 }
  0x76   : > { %v1265_v46 = vsel %vm6393_vm5, %v4958_v44, %v1264_v33  ;;  %v1720_v49 = vor.u32 %v1719_v37, %v1715_v32  ;;  %v1730_v50 = vor.u32 %v1729_v43, %v1725_v38  ;;  %v1733_v53 = vshll.u32 %v5057_v55, 16  ;;  %3510 = vmatpush.bf16.msra.mxu2 %v5645_v61 }
  0x77   : > { %2415 = vmatmul.bf16.vlgmr.msrb.gmra.mxu0 %v5575_v20  ;;  %v1268_v47 = vsel %vm6393_vm5, %v1266_v41, %v1267_v4  ;;  %v2094_v56 = vpack.c.b16 %v2063_v36, %v2062_v34  ;;  %v1374_v48 = vunpack.c.l.b16 %v1265_v46  ;;  %v1738_v3 = vshrl.u32 %v5017_v7, 16  ;;  %v5020_v34 = vld [vmem:[%s6037_s28 + $0x34] sm:$0xf] }
  0x78   : > { %v1375_v14 = vunpack.c.l.b16 %v1268_v47  ;;  %v1721_v62 = vrot.slane %v1720_v49, 4  ;;  %v1731_v57 = vrot.slane %v1730_v50, 4  ;;  %v1735_v63 = vrot.slane %v1733_v53, 5  ;;  %v5537_v41 = vld [vmem:[%s6037_s28 + $0x14] sm:$0xff] }
  0x79   : > { %v1741_v51 = vshll.u32 %v5017_v7, 16  ;;  %v1747_v6 = vshll.u32 %v5018_v0, 16  ;;  %v1751_v10 = vshrl.u32 %v5018_v0, 16  ;;  %v1740_v32 = vrot.slane %v1738_v3, 4  ;;  %v5022_v0 = vld [vmem:[%s6037_s28 + $0x40] sm:$0xf] }
  0x7a   : > { %1141 = vmatmul.bf16.vlgmr.msrb.gmra.mxu1 %v5535_v23  ;;  %v6422_v5 = vpack.c.b16 %v1375_v14, %v1374_v48  ;;  %v1726_v8 = vsel %vm6064_vm2, %v1721_v62, %v1725_v38  ;;  %v1736_v9 = vsel %vm6064_vm2, %v1731_v57, %v1735_v63  ;;  %v1270_v11 = vrot.slane %v6309_v45, 5  ;;  %v5577_v38 = vld [vmem:[%s6037_s28 + $0x28] sm:$0xff]  ;;  %v5058_v14 = vld [vmem:[%s6037_s28 + $0x38] sm:$0x1] }
  0x7b   : > { %v2064_v35 = vunpack.c.l.b16 %v1726_v8  ;;  %v2065_v13 = vunpack.c.l.b16 %v1736_v9  ;;  %v1743_v15 = vrot.slane %v1741_v51, 5  ;;  %v1749_v19 = vrot.slane %v1747_v6, 5  ;;  %v5644_v62 = vld [vmem:[%s7945_s2 + $0x1e8] sm:$0xff]  ;;  %v5578_v51 = vld [vmem:[%s6037_s28 + $0x30] sm:$0xff] }
  0x7c   : > { %v1753_v39 = vrot.slane %v1751_v10, 4  ;;  %v1269_v20 = vrot.slane %v1267_v4, 4  ;;  %v1272_v42 = vrot.slane %v1270_v11, 4  ;;  %v1273_v16 = vrot.slane %v6323_v22, 5  ;;  %v5636_v57 = vld [vmem:[%s7945_s2 + $0x1a8] sm:$0xff]  ;;  %3511 = vmatpush.bf16.msra.mxu2 %v5644_v62  ;;  %v5538_v10 = vld [vmem:[%s6037_s28 + $0x1c] sm:$0xff] }
  0x7d   : > { %1490 = vmatmul.bf16.vlgmr.msrb.gmra.mxu2 %v1402_v29  ;;  %v2095_v45 = vpack.c.b16 %v2065_v13, %v2064_v35  ;;  %v1744_v26 = vor.u32 %v1743_v15, %v1740_v32  ;;  %v1757_v29 = vshll.u32 %v5019_v12, 16  ;;  %v1761_v40 = vshrl.u32 %v5019_v12, 16  ;;  %v5612_v63 = vld [vmem:[%s7945_s2 + $0x168] sm:$0xff]  ;;  %3744 = vmatpush.bf16.msra.mxu3 %v5636_v57 }
  0x7e   : > { %v1271_v21 = vsel %vm6393_vm5, %v1269_v20, %v1270_v11  ;;  %v1274_v23 = vsel %vm6393_vm5, %v1272_v42, %v1273_v16  ;;  %v1754_v27 = vor.u32 %v1753_v39, %v1749_v19  ;;  %v1767_v43 = vshll.u32 %v5020_v34, 16  ;;  %2755 = vmatpush.bf16.msra.mxu1 %v5612_v63  ;;  %v5759_v39 = vld [vmem:[%s6037_s28 + $0x2c] sm:$0xf]  ;;  %v1224_v42 = vld [vmem:[%s6037_s28 + $0x28] sm:$0xe] }
  0x7f   : > { %v1376_v24 = vunpack.c.l.b16 %v1271_v21  ;;  %v1377_v25 = vunpack.c.l.b16 %v1274_v23  ;;  %v1745_v22 = vrot.slane %v1744_v26, 4  ;;  %v1759_v37 = vrot.slane %v1757_v29, 5  ;;  %v5023_v16 = vld [vmem:[%s6037_s28 + $0x44] sm:$0xf] }
  0x80   : > { %v1755_v36 = vrot.slane %v1754_v27, 4  ;;  %v1771_v44 = vshrl.u32 %v5020_v34, 16  ;;  %v1763_v55 = vrot.slane %v1761_v40, 4  ;;  %v1769_v46 = vrot.slane %v1767_v43, 5  ;;  %v5024_v34 = vld [vmem:[%s6037_s28 + $0x48] sm:$0xf] }
  0x81   : > { %2182 = vmatmul.bf16.vlgmr.msrb.gmra.mxu3 %v2094_v56  ;;  %v1405_v33 = vpack.c.b16 %v1377_v25, %v1376_v24  ;;  %v1777_v53 = vshll.u32 %v5058_v14, 16  ;;  %v1791_v8 = vshll.u32 %v5022_v0, 16  ;;  %v1795_v9 = vshrl.u32 %v5022_v0, 16  ;;  %v5760_v25 = vld [vmem:[%s6037_s28 + $0x30] sm:$0xf] }
  0x82   : > { %v1760_v4 = vsel %vm6064_vm2, %v1755_v36, %v1759_v37  ;;  %v1773_v47 = vrot.slane %v1771_v44, 4  ;;  %v1764_v49 = vor.u32 %v1763_v55, %v1759_v37  ;;  %v1277_v20 = vrot.slane %v5759_v39, 5  ;;  %v5026_v39 = vld [vmem:[%s6037_s28 + $0x54] sm:$0xf] }
  0x83   : > { %v2067_v48 = vunpack.c.l.b16 %v1760_v4  ;;  %v1779_v58 = vrot.slane %v1777_v53, 5  ;;  %v1793_v15 = vrot.slane %v1791_v8, 5  ;;  %v1280_v26 = vrot.slane %v5760_v25, 5 }
  0x84   : > { %v1774_v50 = vor.u32 %v1773_v47, %v1769_v46  ;;  %v1765_v61 = vrot.slane %v1764_v49, 4  ;;  %v1279_v24 = vrot.slane %v1277_v20, 4  ;;  %v1801_v27 = vshll.u32 %v5023_v16, 16 }
  0x85   : > { %v1805_v40 = vshrl.u32 %v5023_v16, 16  ;;  %v1811_v43 = vshll.u32 %v5024_v34, 16  ;;  %v1815_v44 = vshrl.u32 %v5024_v34, 16  ;;  %v1835_v34 = vshll.u32 %v5026_v39, 16 }
  0x86   : > { %v1775_v54 = vrot.slane %v1774_v50, 4  ;;  %v1281_v36 = vsel %vm6393_vm5, %v1279_v24, %v1280_v26  ;;  %v1803_v37 = vrot.slane %v1801_v27, 5  ;;  %v5580_v24 = vld [vmem:[%s6037_s28 + $0x44] sm:$0xff] }
  0x87   : > { %2420 = vmatmul.bf16.gmra.mxu0 %v5576_v2  ;;  %v1770_v2 = vsel %vm6064_vm2, %v1765_v61, %v1769_v46  ;;  %v1379_v55 = vunpack.c.l.b16 %v1281_v36  ;;  %v5539_v46 = vld [vmem:[%s6037_s28 + $0x28] sm:$0xff]  ;;  %v1813_v14 = vrot.slane %v1811_v43, 5  ;;  %v1817_v49 = vrot.slane %v1815_v44, 4  ;;  %v5761_v61 = vld [vmem:[%s6037_s28 + $0x34] sm:$0xf] }
  0x88   : > { %v1780_v3 = vsel %vm6064_vm2, %v1775_v54, %v1779_v58  ;;  %v2068_v32 = vunpack.c.l.b16 %v1770_v2  ;;  %v1283_v54 = vrot.slane %v5761_v61, 5  ;;  %v5059_v58 = vld [vmem:[%s6037_s28 + $0x4c] sm:$0x1]  ;;  %v5540_v36 = vld [vmem:[%s6037_s28 + $0x30] sm:$0xff] }
  0x89   : > { %v2069_v11 = vunpack.c.l.b16 %v1780_v3  ;;  %v1818_v63 = vor.u32 %v1817_v49, %v1813_v14  ;;  %v1282_v3 = vrot.slane %v1280_v26, 4 }
  0x8a   : > { %1146 = vmatmul.bf16.gmra.mxu1 %v5536_v60 }
  0x8b   : > { %v2097_v12 = vpack.c.b16 %v2069_v11, %v2068_v32  ;;  %v1284_v11 = vsel %vm6393_vm5, %v1282_v3, %v1283_v54 }
  0x8d   : > { %1495 = vmatmul.bf16.gmra.mxu2 %v1403_v30  ;;  %v1750_v30 = vsel %vm6064_vm2, %v1745_v22, %v1749_v19  ;;  %v1797_v19 = vrot.slane %v1795_v9, 4 }
  0x8e   : > { %v2066_v56 = vunpack.c.l.b16 %v1750_v30 }
  0x8f   : > { %v1798_v23 = vor.u32 %v1797_v19, %v1793_v15  ;;  %v5025_v19 = vld [vmem:[%s6037_s28 + $0x50] sm:$0xf] }
  0x90   : > { %v2096_v7 = vpack.c.b16 %v2067_v48, %v2066_v56  ;;  %v1807_v48 = vrot.slane %v1805_v40, 4  ;;  %v1826_v27 = vshrl.u32 %v5025_v19, 16 }
  0x91   : > { %2187 = vmatmul.bf16.gmra.mxu3 %v2095_v45  ;;  %v4959_v45 = vrot.slane %v1224_v42, 9  ;;  %v5651_v42 = vld [vmem:[%s7945_s2 + $0x220] sm:$0xff] }
  0x92   : > { %v1808_v57 = vor.u32 %v1807_v48, %v1803_v37  ;;  %4091 = vmatpush.bf16.msra.mxu0 %v5651_v42  ;;  %v1828_v43 = vrot.slane %v1826_v27, 4 }
  0x93   : > { %v1278_v22 = vsel %vm6393_vm5, %v4959_v45, %v1277_v20  ;;  %v5611_v20 = vld [vmem:[%s7945_s2 + $0x160] sm:$0xff] }
  0x94   : > { %v1378_v4 = vunpack.c.l.b16 %v1278_v22  ;;  %v1809_v9 = vrot.slane %v1808_v57, 4  ;;  %v1839_v22 = vshrl.u32 %v5026_v39, 16  ;;  %2756 = vmatpush.bf16.msra.mxu1 %v5611_v20 }
  0x96   : > { %v1406_v50 = vpack.c.b16 %v1379_v55, %v1378_v4  ;;  %v1837_v4 = vrot.slane %v1835_v34, 5  ;;  %v1841_v55 = vrot.slane %v1839_v22, 4  ;;  %v5060_v34 = vld [vmem:[%s6037_s28 + $0x60] sm:$0x1] }
  0x97   : > { %2425 = vmatmul.bf16.gmra.mxu0 %v5577_v38  ;;  %v5579_v38 = vld [vmem:[%s6037_s28 + $0x3c] sm:$0xff] }
  0x9a   : > { %1151 = vmatmul.bf16.gmra.mxu1 %v5537_v41 }
  0x9d   : > { %1500 = vmatmul.bf16.gmra.mxu2 %v6422_v5  ;;  %v5021_v5 = vld [vmem:[%s6037_s28 + $0x3c] sm:$0xf] }
  0x9e   : > { %v1782_v6 = vshrl.u32 %v5021_v5, 16  ;;  %v1785_v60 = vshll.u32 %v5021_v5, 16  ;;  %v1821_v5 = vshll.u32 %v5059_v58, 16  ;;  %v1293_v58 = vrot.slane %v6243_v28, 5 }
  0xa0   : > { %v1784_v35 = vrot.slane %v1782_v6, 4  ;;  %v1787_v13 = vrot.slane %v1785_v60, 5  ;;  %v5762_v6 = vld [vmem:[%s6037_s28 + $0x38] sm:$0x1]  ;;  %v1823_v32 = vrot.slane %v1821_v5, 5 }
  0xa1   : > { %2192 = vmatmul.bf16.gmra.mxu3 %v2096_v7  ;;  %v1286_v60 = vrot.slane %v5762_v6, 5  ;;  %v5028_v5 = vld [vmem:[%s6037_s28 + $0x5c] sm:$0xf] }
  0xa2   : > { %v1788_v21 = vor.u32 %v1787_v13, %v1784_v35  ;;  %v5643_v13 = vld [vmem:[%s7945_s2 + $0x1e0] sm:$0xff]  ;;  %v1855_v28 = vshll.u32 %v5028_v5, 16 }
  0xa3   : > { %3512 = vmatpush.bf16.msra.mxu2 %v5643_v13 }
  0xa4   : > { %v1789_v29 = vrot.slane %v1788_v21, 4 }
  0xa6   : > { %v1794_v47 = vsel %vm6064_vm2, %v1789_v29, %v1793_v15  ;;  %v5635_v15 = vld [vmem:[%s7945_s2 + $0x1a0] sm:$0xff]  ;;  %v1829_v29 = vshll.u32 %v5025_v19, 16 }
  0xa7   : > { %2430 = vmatmul.bf16.gmra.mxu0 %v5578_v51  ;;  %v2070_v53 = vunpack.c.l.b16 %v1794_v47  ;;  %v1285_v51 = vrot.slane %v1283_v54, 4  ;;  %3745 = vmatpush.bf16.msra.mxu3 %v5635_v15  ;;  %v1225_v47 = vld [vmem:[%s6037_s28 + $0x3c] sm:$0xe] }
  0xa8   : > { %v1831_v44 = vrot.slane %v1829_v29, 5  ;;  %v4960_v61 = vrot.slane %v1225_v47, 9  ;;  %v5541_v19 = vld [vmem:[%s6037_s28 + $0x3c] sm:$0xff]  ;;  %v1296_v29 = vrot.slane %v6332_v52, 5 }
  0xa9   : > { %v1287_v35 = vsel %vm6393_vm5, %v1285_v51, %v1286_v60 }
  0xaa   : > { %1156 = vmatmul.bf16.gmra.mxu1 %v5538_v10  ;;  %v1819_v10 = vrot.slane %v1818_v63, 4  ;;  %v1381_v21 = vunpack.c.l.b16 %v1287_v35 }
  0xac   : > { %v1824_v45 = vsel %vm6064_vm2, %v1819_v10, %v1823_v32  ;;  %v1859_v32 = vshrl.u32 %v5028_v5, 16 }
  0xad   : > { %1505 = vmatmul.bf16.gmra.mxu2 %v1405_v33  ;;  %v1799_v33 = vrot.slane %v1798_v23, 4  ;;  %v1814_v23 = vsel %vm6064_vm2, %v1809_v9, %v1813_v14  ;;  %v2073_v40 = vunpack.c.l.b16 %v1824_v45  ;;  %v5581_v9 = vld [vmem:[%s6037_s28 + $0x50] sm:$0xff] }
  0xaf   : > { %v1804_v56 = vsel %vm6064_vm2, %v1799_v33, %v1803_v37 }
  0xb0   : > { %v2071_v7 = vunpack.c.l.b16 %v1804_v56  ;;  %v5027_v56 = vld [vmem:[%s6037_s28 + $0x58] sm:$0xf] }
  0xb1   : > { %2197 = vmatmul.bf16.gmra.mxu3 %v2097_v12  ;;  %v1380_v12 = vunpack.c.l.b16 %v1284_v11  ;;  %v1845_v57 = vshll.u32 %v5027_v56, 16  ;;  %v1849_v10 = vshrl.u32 %v5027_v56, 16 }
  0xb2   : > { %v2098_v0 = vpack.c.b16 %v2071_v7, %v2070_v53  ;;  %v1832_v53 = vor.u32 %v1831_v44, %v1828_v43  ;;  %v1842_v7 = vor.u32 %v1841_v55, %v1837_v4  ;;  %v1295_v44 = vrot.slane %v1293_v58, 4 }
  0xb3   : > { %v1407_v37 = vpack.c.b16 %v1381_v21, %v1380_v12  ;;  %v1847_v6 = vrot.slane %v1845_v57, 5  ;;  %v1851_v42 = vrot.slane %v1849_v10, 4  ;;  %v1857_v12 = vrot.slane %v1855_v28, 5 }
  0xb4   : > { %v6490_v41 = vpop.f32.mrf.mxu0  ;;  %v6492_v30 = vpop.f32.mrf.mxu1  ;;  %v1833_v63 = vrot.slane %v1832_v53, 4  ;;  %v1843_v51 = vrot.slane %v1842_v7, 4  ;;  %v1861_v21 = vrot.slane %v1859_v32, 4  ;;  %v1299_v55 = vrot.slane %v6342_v18, 5  ;;  %v5642_v7 = vld [vmem:[%s7945_s2 + $0x1d8] sm:$0xff] }
  0xb5   : > { %v1852_v22 = vor.u32 %v1851_v42, %v1847_v6  ;;  %v5634_v18 = vld [vmem:[%s7945_s2 + $0x198] sm:$0xff]  ;;  %3513 = vmatpush.bf16.msra.mxu2 %v5642_v7 }
  0xb6   : > { %v1838_v39 = vsel %vm6064_vm2, %v1833_v63, %v1837_v4  ;;  %v1848_v20 = vsel %vm6064_vm2, %v1843_v51, %v1847_v6  ;;  %v1298_v4 = vrot.slane %v1296_v29, 4  ;;  %3746 = vmatpush.bf16.msra.mxu3 %v5634_v18  ;;  %v5610_v32 = vld [vmem:[%s7945_s2 + $0x158] sm:$0xff] }
  0xb7   : > { %2435 = vmatmul.bf16.gmra.mxu0 %v5579_v38  ;;  %v2072_v38 = vunpack.c.l.b16 %v1814_v23  ;;  %v2075_v27 = vunpack.c.l.b16 %v1848_v20  ;;  %v1853_v52 = vrot.slane %v1852_v22, 4  ;;  %2757 = vmatpush.bf16.msra.mxu1 %v5610_v32 }
  0xb8   : > { %v1300_v53 = vsel %vm6393_vm5, %v1298_v4, %v1299_v55 }
  0xb9   : > { %v2099_v14 = vpack.c.b16 %v2073_v40, %v2072_v38  ;;  %v1385_v63 = vunpack.c.l.b16 %v1300_v53  ;;  %v1858_v5 = vsel %vm6064_vm2, %v1853_v52, %v1857_v12 }
  0xba   : > { %1161 = vmatmul.bf16.gmra.mxu1 %v5539_v46  ;;  %v1290_v46 = vrot.slane %v6231_v17, 5  ;;  %v2076_v42 = vunpack.c.l.b16 %v1858_v5 }
  0xbb   : > { %v6501_v62 = vpop.f32.mrf.mxu2 }
  0xbc   : > { %v6503_v1 = vpop.f32.mrf.mxu0  ;;  %v6505_v2 = vpop.f32.mrf.mxu1  ;;  %v1292_v54 = vrot.slane %v1290_v46, 4 }
  0xbd   : > { %1510 = vmatmul.bf16.gmra.mxu2 %v1406_v50 }
  0xbe   : > { %v1294_v3 = vsel %vm6393_vm5, %v1292_v54, %v1293_v58  ;;  %v5030_v54 = vld [vmem:[%s6037_s28 + $0x68] sm:$0xf] }
  0xbf   : > { %v1383_v15 = vunpack.c.l.b16 %v1294_v3  ;;  %v5582_v3 = vld [vmem:[%s6037_s28 + $0x58] sm:$0xff]  ;;  %v1879_v10 = vshll.u32 %v5030_v54, 16  ;;  %v1883_v28 = vshrl.u32 %v5030_v54, 16  ;;  %v5032_v54 = vld [vmem:[%s6037_s28 + $0x70] sm:$0xf] }
  0xc1   : > { %v6508_v8 = vpop.f32.mrf.mxu3  ;;  %2202 = vmatmul.bf16.gmra.mxu3 %v2098_v0  ;;  %v1291_v0 = vsel %vm6393_vm5, %v4960_v61, %v1290_v46  ;;  %v5029_v61 = vld [vmem:[%s6037_s28 + $0x64] sm:$0xf] }
  0xc2   : > { %v1382_v13 = vunpack.c.l.b16 %v1291_v0  ;;  %v1870_v6 = vshrl.u32 %v5029_v61, 16 }
  0xc3   : > { %v6528_v16 = vpop.f32.mrf.mxu2 }
  0xc4   : > { %v6535_v25 = vpop.f32.mrf.mxu0  ;;  %v6537_v26 = vpop.f32.mrf.mxu1  ;;  %v1408_v45 = vpack.c.b16 %v1383_v15, %v1382_v13  ;;  %v5650_v13 = vld [vmem:[%s7945_s2 + $0x218] sm:$0xff]  ;;  %v5542_v15 = vld [vmem:[%s6037_s28 + $0x44] sm:$0xff] }
  0xc5   : > { %4092 = vmatpush.bf16.msra.mxu0 %v5650_v13 }
  0xc7   : > { %2440 = vmatmul.bf16.gmra.mxu0 %v5580_v24  ;;  %v2074_v24 = vunpack.c.l.b16 %v1838_v39 }
  0xc9   : > { %v6540_v33 = vpop.f32.mrf.mxu3  ;;  %v2100_v38 = vpack.c.b16 %v2075_v27, %v2074_v24  ;;  %v1881_v24 = vrot.slane %v1879_v10, 5  ;;  %v1885_v27 = vrot.slane %v1883_v28, 4  ;;  %v1899_v10 = vshll.u32 %v5032_v54, 16 }
  0xca   : > { %1166 = vmatmul.bf16.gmra.mxu1 %v5540_v36  ;;  %v1862_v36 = vor.u32 %v1861_v21, %v1857_v12  ;;  %v1872_v21 = vrot.slane %v1870_v6, 4  ;;  %v1903_v28 = vshrl.u32 %v5032_v54, 16 }
  0xcb   : > { %v1886_v55 = vor.u32 %v1885_v27, %v1881_v24 }
  0xcc   : > { %v6547_v49 = vpop.f32.mrf.mxu0  ;;  %v6549_v50 = vpop.f32.mrf.mxu1  ;;  %v1863_v47 = vrot.slane %v1862_v36, 4  ;;  %v1226_v36 = vld [vmem:[%s6037_s28 + $0x50] sm:$0xe] }
  0xcd   : > { %v6545_v48 = vpop.f32.mrf.mxu2  ;;  %1515 = vmatmul.bf16.gmra.mxu2 %v1407_v37  ;;  %v1865_v37 = vshll.u32 %v5060_v34, 16  ;;  %v4961_v52 = vrot.slane %v1226_v36, 9  ;;  %v1887_v5 = vrot.slane %v1886_v55, 4  ;;  %v1905_v36 = vrot.slane %v1903_v28, 4  ;;  %v5765_v55 = vld [vmem:[%s6037_s28 + $0x5c] sm:$0xf] }
  0xcf   : > { %v1867_v56 = vrot.slane %v1865_v37, 5  ;;  %v5031_v37 = vld [vmem:[%s6037_s28 + $0x6c] sm:$0xf] }
  0xd0   : > { %v1889_v53 = vshll.u32 %v5031_v37, 16 }
  0xd1   : > { %2207 = vmatmul.bf16.gmra.mxu3 %v2099_v14  ;;  %v6552_v17 = vpop.f32.mrf.mxu3  ;;  %v1297_v14 = vsel %vm6393_vm5, %v1295_v44, %v1296_v29  ;;  %v1868_v0 = vsel %vm6064_vm2, %v1863_v47, %v1867_v56  ;;  %v5763_v29 = vld [vmem:[%s6037_s28 + $0x54] sm:$0xf]  ;;  %v5764_v56 = vld [vmem:[%s6037_s28 + $0x58] sm:$0xf] }
  0xd2   : > { %v1384_v57 = vunpack.c.l.b16 %v1297_v14  ;;  %v2077_v12 = vunpack.c.l.b16 %v1868_v0  ;;  %v1303_v34 = vrot.slane %v5763_v29, 5  ;;  %v1306_v14 = vrot.slane %v5764_v56, 5 }
  0xd3   : > { %v1891_v0 = vrot.slane %v1889_v53, 5 }
  0xd4   : > { %v6562_v11 = vpop.f32.mrf.mxu0  ;;  %v6564_v35 = vpop.f32.mrf.mxu1  ;;  %v1409_v20 = vpack.c.b16 %v1385_v63, %v1384_v57  ;;  %v1305_v47 = vrot.slane %v1303_v34, 4  ;;  %v1304_v57 = vsel %vm6393_vm5, %v4961_v52, %v1303_v34  ;;  %v1901_v34 = vrot.slane %v1899_v10, 5 }
  0xd5   : > { %v6559_v60 = vpop.f32.mrf.mxu2  ;;  %v1386_v13 = vunpack.c.l.b16 %v1304_v57  ;;  %v1309_v52 = vrot.slane %v5765_v55, 5  ;;  %v1308_v57 = vrot.slane %v1306_v14, 4  ;;  %v5584_v55 = vld [vmem:[%s6037_s28 + $0x6c] sm:$0xff] }
  0xd6   : > { %v1307_v63 = vsel %vm6393_vm5, %v1305_v47, %v1306_v14  ;;  %v5061_v47 = vld [vmem:[%s6037_s28 + $0x74] sm:$0x1]  ;;  %v1906_v53 = vor.u32 %v1905_v36, %v1901_v34 }
  0xd7   : > { %2445 = vmatmul.bf16.gmra.mxu0 %v5581_v9  ;;  %v1873_v9 = vshll.u32 %v5029_v61, 16 }
  0xd9   : > { %v6571_v23 = vpop.f32.mrf.mxu3 }
  0xda   : > { %1171 = vmatmul.bf16.gmra.mxu1 %v5541_v19 }
  0xdc   : > { %v6575_v40 = vpop.f32.mrf.mxu0  ;;  %v6577_v43 = vpop.f32.mrf.mxu1 }
  0xdd   : > { %1520 = vmatmul.bf16.gmra.mxu2 %v1408_v45  ;;  %v1875_v45 = vrot.slane %v1873_v9, 5  ;;  %v5583_v9 = vld [vmem:[%s6037_s28 + $0x64] sm:$0xff] }
  0xdf   : > { %v6580_v46 = vpop.f32.mrf.mxu2  ;;  %v1876_v4 = vor.u32 %v1875_v45, %v1872_v21 }
  0xe1   : > { %2212 = vmatmul.bf16.gmra.mxu3 %v2100_v38  ;;  %v2101_v38 = vpack.c.b16 %v2077_v12, %v2076_v42  ;;  %v1877_v61 = vrot.slane %v1876_v4, 4  ;;  %v1892_v12 = vsel %vm6064_vm2, %v1887_v5, %v1891_v0  ;;  %v5766_v5 = vld [vmem:[%s6037_s28 + $0x60] sm:$0x1] }
  0xe2   : > { %v2079_v4 = vunpack.c.l.b16 %v1892_v12  ;;  %v5033_v12 = vld [vmem:[%s6037_s28 + $0x78] sm:$0xf] }
  0xe3   : > { %v6594_v58 = vpop.f32.mrf.mxu3  ;;  %v1882_v42 = vsel %vm6064_vm2, %v1877_v61, %v1881_v24  ;;  %v1909_v61 = vshll.u32 %v5061_v47, 16 }
  0xe4   : > { %v6601_v51 = vpop.f32.mrf.mxu0 }
  0xe7   : > { %v6610_v19 = vpop.f32.mrf.mxu2  ;;  %v6612_v39 = vpop.f32.mrf.mxu1  ;;  %2450 = vmatmul.bf16.gmra.mxu0 %v5582_v3  ;;  %v1893_v3 = vshrl.u32 %v5031_v37, 16 }
  0xe9   : > { %v1895_v45 = vrot.slane %v1893_v3, 4  ;;  %v1312_v3 = vrot.slane %v5766_v5, 5 }
  0xea   : > { %1176 = vmatmul.bf16.gmra.mxu1 %v5542_v15  ;;  %v1387_v15 = vunpack.c.l.b16 %v1307_v63  ;;  %v1311_v63 = vrot.slane %v1309_v52, 4 }
  0xeb   : > { %v6615_v22 = vpop.f32.mrf.mxu3  ;;  %v1896_v24 = vor.u32 %v1895_v45, %v1891_v0  ;;  %v1911_v0 = vrot.slane %v1909_v61, 5  ;;  %v5034_v45 = vld [vmem:[%s6037_s28 + $0x7c] sm:$0xf] }
  0xec   : > { %v6619_v44 = vpop.f32.mrf.mxu0  ;;  %v1410_v37 = vpack.c.b16 %v1387_v15, %v1386_v13  ;;  %v1907_v15 = vrot.slane %v1906_v53, 4  ;;  %v1313_v14 = vsel %vm6393_vm5, %v1311_v63, %v1312_v3  ;;  %v1917_v53 = vshll.u32 %v5033_v12, 16  ;;  %v5544_v63 = vld [vmem:[%s6037_s28 + $0x58] sm:$0xff] }
  0xed   : > { %1525 = vmatmul.bf16.gmra.mxu2 %v1409_v20  ;;  %v5543_v20 = vld [vmem:[%s6037_s28 + $0x50] sm:$0xff]  ;;  %v1897_v10 = vrot.slane %v1896_v24, 4  ;;  %v1923_v61 = vshll.u32 %v5034_v45, 16 }
  0xef   : > { %v6622_v7 = vpop.f32.mrf.mxu1 }
  0xf0   : > { %v6624_v18 = vpop.f32.mrf.mxu2 }
  0xf1   : > { %2217 = vmatmul.bf16.gmra.mxu3 %v2101_v38  ;;  %v2078_v38 = vunpack.c.l.b16 %v1882_v42  ;;  %v1310_v42 = vsel %vm6393_vm5, %v1308_v57, %v1309_v52  ;;  %v1914_v52 = vshrl.u32 %v5033_v12, 16  ;;  %v5649_v57 = vld [vmem:[%s7945_s2 + $0x210] sm:$0xff] }
  0xf2   : > { %4093 = vmatpush.bf16.msra.mxu0 %v5649_v57 }
  0xf3   : > { %v2102_v54 = vpack.c.b16 %v2079_v4, %v2078_v38  ;;  %v1389_v38 = vunpack.c.l.b16 %v1313_v14  ;;  %v1912_v4 = vsel %vm6064_vm2, %v1907_v15, %v1911_v0  ;;  %v1916_v15 = vrot.slane %v1914_v52, 4  ;;  %v5768_v52 = vld [vmem:[%s6037_s28 + $0x6c] sm:$0xf] }
  0xf4   : > { %v6631_v6 = vpop.f32.mrf.mxu3  ;;  %v2416_v32 = vpop.f32.mrf.mxu0  ;;  %v1925_v14 = vrot.slane %v1923_v61, 5 }
  0xf7   : > { %v1142_v21 = vpop.f32.mrf.mxu1  ;;  %2455 = vmatmul.bf16.gmra.mxu0 %v5583_v9 }
  0xf8   : > { %v6639_v27 = vpop.f32.mrf.mxu2  ;;  %v1143_v29 = vadd.f32 %v1142_v21, %v6490_v41  ;;  %v5641_v21 = vld [vmem:[%s7945_s2 + $0x1d0] sm:$0xff] }
  0xf9   : > { %3514 = vmatpush.bf16.msra.mxu2 %v5641_v21  ;;  %v5767_v21 = vld [vmem:[%s6037_s28 + $0x68] sm:$0xf] }
  0xfa   : > { %1181 = vmatmul.bf16.gmra.mxu1 %v5543_v20 }
  0xfc   : > { %v6644_v56 = vpop.f32.mrf.mxu3  ;;  %v2418_v41 = vpop.f32.mrf.mxu0 }
  0xfd   : > { %1530 = vmatmul.bf16.gmra.mxu2 %v1410_v37  ;;  %v1388_v37 = vunpack.c.l.b16 %v1310_v42  ;;  %v1919_v42 = vrot.slane %v1917_v53, 5  ;;  %v1319_v53 = vrot.slane %v5768_v52, 5  ;;  %v5545_v52 = vld [vmem:[%s6037_s28 + $0x64] sm:$0xff] }
  0xff   : > { %v1144_v9 = vpop.f32.mrf.mxu1 }
 0x100   : > { %v1491_v28 = vpop.f32.mrf.mxu2  ;;  %v1145_v13 = vadd.f32 %v1144_v9, %v6503_v1  ;;  %v5633_v1 = vld [vmem:[%s7945_s2 + $0x190] sm:$0xff] }
 0x101   : > { %2222 = vmatmul.bf16.gmra.mxu3 %v2102_v54  ;;  %v6648_v20 = vadd.f32 %v1491_v28, %v1143_v29  ;;  %v1902_v29 = vsel %vm6064_vm2, %v1897_v10, %v1901_v34  ;;  %v1927_v54 = vshrl.u32 %v5034_v45, 16  ;;  %v5609_v34 = vld [vmem:[%s7945_s2 + $0x150] sm:$0xff]  ;;  %v1411_v10 = vpack.c.b16 %v1389_v38, %v1388_v37  ;;  %v1227_v45 = vld [vmem:[%s6037_s28 + $0x64] sm:$0xe] }
 0x102   : > { %3747 = vmatpush.bf16.msra.mxu3 %v5633_v1  ;;  %v2080_v3 = vunpack.c.l.b16 %v1902_v29  ;;  %2758 = vmatpush.bf16.msra.mxu1 %v5609_v34  ;;  %v2081_v28 = vunpack.c.l.b16 %v1912_v4  ;;  %v1316_v1 = vrot.slane %v5767_v21, 5  ;;  %v5035_v29 = vld [vmem:[%s6037_s28 + $0x80] sm:$0xf]  ;;  %v1920_v38 = vor.u32 %v1919_v42, %v1916_v15  ;;  %v5585_v21 = vld [vmem:[%s6037_s28 + $0x78] sm:$0xff] }
 0x103   : > { %v1929_v12 = vrot.slane %v1927_v54, 4  ;;  %v1933_v61 = vshll.u32 %v5035_v29, 16  ;;  %v1937_v42 = vshrl.u32 %v5035_v29, 16 }
 0x104   : > { %v2183_v36 = vpop.f32.mrf.mxu3  ;;  %v2421_v24 = vpop.f32.mrf.mxu0 }
 0x105   : > { %v6667_v47 = vadd.f32 %v2416_v32, %v2183_v36  ;;  %v1930_v4 = vor.u32 %v1929_v12, %v1925_v14  ;;  %v1935_v15 = vrot.slane %v1933_v61, 5  ;;  %v1939_v29 = vrot.slane %v1937_v42, 4 }
 0x107   : > { %v1147_v5 = vpop.f32.mrf.mxu1  ;;  %2460 = vmatmul.bf16.gmra.mxu0 %v5584_v55  ;;  %v1318_v55 = vrot.slane %v1316_v1, 4 }
 0x108   : > { %v1493_v32 = vpop.f32.mrf.mxu2  ;;  %v1148_v9 = vadd.f32 %v1147_v5, %v6535_v25  ;;  %v2103_v25 = vpack.c.b16 %v2081_v28, %v2080_v3  ;;  %v1931_v28 = vrot.slane %v1930_v4, 4 }
 0x109   : > { %v6677_v0 = vadd.f32 %v1493_v32, %v1145_v13  ;;  %v4962_v13 = vrot.slane %v1227_v45, 9  ;;  %v5036_v32 = vld [vmem:[%s6037_s28 + $0x84] sm:$0xf] }
 0x10a   : > { %1186 = vmatmul.bf16.gmra.mxu1 %v5544_v63  ;;  %v1943_v45 = vshll.u32 %v5036_v32, 16  ;;  %v1936_v4 = vsel %vm6064_vm2, %v1931_v28, %v1935_v15 }
 0x10b   : > { %7960 = vst [vmem:[#allocation8_spill] sm:$0xff] %v6677_v0  ;;  %v1317_v3 = vsel %vm6393_vm5, %v4962_v13, %v1316_v1 }
 0x10c   : > { %v2185_v36 = vpop.f32.mrf.mxu3  ;;  %v2423_v37 = vpop.f32.mrf.mxu0 }
 0x10d   : > { %v6682_v34 = vadd.f32 %v2418_v41, %v2185_v36  ;;  %1535 = vmatmul.bf16.gmra.mxu2 %v1411_v10  ;;  %v1921_v41 = vrot.slane %v1920_v38, 4  ;;  %v1320_v10 = vsel %vm6393_vm5, %v1318_v55, %v1319_v53  ;;  %v1947_v36 = vshrl.u32 %v5036_v32, 16 }
 0x10e   : > { %v1391_v38 = vunpack.c.l.b16 %v1320_v10  ;;  %v2083_v10 = vunpack.c.l.b16 %v1936_v4 }
 0x10f   : > { %v1149_v54 = vpop.f32.mrf.mxu1  ;;  %v1926_v1 = vsel %vm6064_vm2, %v1921_v41, %v1925_v14  ;;  %v5769_v14 = vld [vmem:[%s6037_s28 + $0x70] sm:$0xf] }
 0x110   : > { %v1496_v57 = vpop.f32.mrf.mxu2  ;;  %v1150_v63 = vadd.f32 %v1149_v54, %v6547_v49  ;;  %v1949_v54 = vrot.slane %v1947_v36, 4  ;;  %v1322_v41 = vrot.slane %v5769_v14, 5  ;;  %v5770_v36 = vld [vmem:[%s6037_s28 + $0x74] sm:$0x1] }
 0x111   : > { %2227 = vmatmul.bf16.gmra.mxu3 %v2103_v25  ;;  %v6686_v5 = vadd.f32 %v1496_v57, %v1148_v9  ;;  %v1390_v25 = vunpack.c.l.b16 %v1317_v3  ;;  %v2082_v3 = vunpack.c.l.b16 %v1926_v1 }
 0x113   : > { %7961 = vst [vmem:[#allocation9_spill] sm:$0xff] %v6686_v5  ;;  %v1412_v32 = vpack.c.b16 %v1391_v38, %v1390_v25  ;;  %v1940_v5 = vor.u32 %v1939_v29, %v1935_v15  ;;  %v1325_v25 = vrot.slane %v5770_v36, 5  ;;  %v5037_v29 = vld [vmem:[%s6037_s28 + $0x8c] sm:$0xf] }
 0x114   : > { %v2188_v12 = vpop.f32.mrf.mxu3  ;;  %v2426_v9 = vpop.f32.mrf.mxu0  ;;  %v5546_v36 = vld [vmem:[%s6037_s28 + $0x6c] sm:$0xff] }
 0x115   : > { %v6694_v49 = vadd.f32 %v2421_v24, %v2188_v12  ;;  %v1945_v24 = vrot.slane %v1943_v45, 5  ;;  %v5062_v12 = vld [vmem:[%s6037_s28 + $0x88] sm:$0x1]  ;;  %v1324_v45 = vrot.slane %v1322_v41, 4  ;;  %v1941_v1 = vrot.slane %v1940_v5, 4 }
 0x116   : > { %v1953_v42 = vshll.u32 %v5062_v12, 16  ;;  %v1961_v12 = vshll.u32 %v5037_v29, 16 }
 0x117   : > { %7962 = vst [vmem:[#allocation10_spill] sm:$0xff] %v6694_v49  ;;  %v1152_v13 = vpop.f32.mrf.mxu1  ;;  %2465 = vmatmul.bf16.gmra.mxu0 %v5585_v21  ;;  %v1950_v49 = vor.u32 %v1949_v54, %v1945_v24  ;;  %v1321_v21 = vrot.slane %v1319_v53, 4  ;;  %v5640_v53 = vld [vmem:[%s7945_s2 + $0x1c8] sm:$0xff] }
 0x118   : > { %v1498_v55 = vpop.f32.mrf.mxu2  ;;  %v1153_v61 = vadd.f32 %v1152_v13, %v6562_v11  ;;  %v2104_v11 = vpack.c.b16 %v2083_v10, %v2082_v3  ;;  %v1955_v13 = vrot.slane %v1953_v42, 5  ;;  %v5632_v54 = vld [vmem:[%s7945_s2 + $0x188] sm:$0xff]  ;;  %3515 = vmatpush.bf16.msra.mxu2 %v5640_v53  ;;  %v5586_v10 = vld [vmem:[%s6037_s28 + $0x80] sm:$0xff] }
 0x119   : > { %v6702_v57 = vadd.f32 %v1498_v55, %v1150_v63  ;;  %v1951_v15 = vrot.slane %v1950_v49, 4  ;;  %v5038_v55 = vld [vmem:[%s6037_s28 + $0x90] sm:$0xf]  ;;  %v1323_v5 = vsel %vm6393_vm5, %v1321_v21, %v1322_v41  ;;  %v1946_v49 = vsel %vm6064_vm2, %v1941_v1, %v1945_v24  ;;  %3748 = vmatpush.bf16.msra.mxu3 %v5632_v54  ;;  %v5608_v24 = vld [vmem:[%s7945_s2 + $0x148] sm:$0xff] }
 0x11a   : > { %1191 = vmatmul.bf16.gmra.mxu1 %v5545_v52  ;;  %v1967_v14 = vshll.u32 %v5038_v55, 16 }
 0x11b   : > { %v1956_v3 = vsel %vm6064_vm2, %v1951_v15, %v1955_v13  ;;  %2759 = vmatpush.bf16.msra.mxu1 %v5608_v24  ;;  %v1963_v13 = vrot.slane %v1961_v12, 5 }
 0x11c   : > { %v2190_v28 = vpop.f32.mrf.mxu3  ;;  %v2428_v63 = vpop.f32.mrf.mxu0  ;;  %v2085_v1 = vunpack.c.l.b16 %v1956_v3 }
 0x11d   : > { %v6706_v0 = vadd.f32 %v2423_v37, %v2190_v28  ;;  %1540 = vmatmul.bf16.gmra.mxu2 %v1412_v32  ;;  %v1971_v28 = vshrl.u32 %v5038_v55, 16 }
 0x11f   : > { %v1154_v38 = vpop.f32.mrf.mxu1  ;;  %v1973_v55 = vrot.slane %v1971_v28, 4 }
 0x120   : > { %v1501_v52 = vpop.f32.mrf.mxu2  ;;  %v1155_v4 = vadd.f32 %v1154_v38, %v6575_v40  ;;  %v1326_v40 = vsel %vm6393_vm5, %v1324_v45, %v1325_v25  ;;  %v5648_v45 = vld [vmem:[%s7945_s2 + $0x208] sm:$0xff]  ;;  %v2084_v38 = vunpack.c.l.b16 %v1946_v49  ;;  %v5039_v49 = vld [vmem:[%s6037_s28 + $0x94] sm:$0xf] }
 0x121   : > { %2232 = vmatmul.bf16.gmra.mxu3 %v2104_v11  ;;  %v6711_v37 = vadd.f32 %v1501_v52, %v1153_v61  ;;  %v1958_v61 = vshrl.u32 %v5037_v29, 16  ;;  %v1392_v11 = vunpack.c.l.b16 %v1323_v5  ;;  %v1393_v21 = vunpack.c.l.b16 %v1326_v40  ;;  %4094 = vmatpush.bf16.msra.mxu0 %v5648_v45  ;;  %v5771_v5 = vld [vmem:[%s6037_s28 + $0x7c] sm:$0xf] }
 0x122   : > { %v1969_v29 = vrot.slane %v1967_v14, 5  ;;  %v1329_v40 = vrot.slane %v5771_v5, 5  ;;  %v1977_v12 = vshll.u32 %v5039_v49, 16 }
 0x123   : > { %v1413_v54 = vpack.c.b16 %v1393_v21, %v1392_v11  ;;  %v5772_v21 = vld [vmem:[%s6037_s28 + $0x80] sm:$0xf] }
 0x124   : > { %v2193_v32 = vpop.f32.mrf.mxu3  ;;  %v2431_v41 = vpop.f32.mrf.mxu0  ;;  %v1331_v11 = vrot.slane %v1329_v40, 4  ;;  %v1332_v24 = vrot.slane %v5772_v21, 5 }
 0x125   : > { %v6729_v42 = vadd.f32 %v2426_v9, %v2193_v32  ;;  %v1960_v9 = vrot.slane %v1958_v61, 4  ;;  %v1228_v61 = vld [vmem:[%s6037_s28 + $0x78] sm:$0xe]  ;;  %v2105_v32 = vpack.c.b16 %v2085_v1, %v2084_v38 }
 0x126   : > { %v4963_v28 = vrot.slane %v1228_v61, 9 }
 0x127   : > { %v1157_v25 = vpop.f32.mrf.mxu1  ;;  %2470 = vmatmul.bf16.gmra.mxu0 %v5586_v10  ;;  %v1964_v3 = vor.u32 %v1963_v13, %v1960_v9  ;;  %v1974_v10 = vor.u32 %v1973_v55, %v1969_v29  ;;  %v1979_v9 = vrot.slane %v1977_v12, 5  ;;  %v1333_v13 = vsel %vm6393_vm5, %v1331_v11, %v1332_v24  ;;  %v5040_v55 = vld [vmem:[%s6037_s28 + $0x98] sm:$0xf] }
 0x128   : > { %v1503_v52 = vpop.f32.mrf.mxu2  ;;  %v1158_v15 = vadd.f32 %v1157_v25, %v6601_v51  ;;  %v1395_v61 = vunpack.c.l.b16 %v1333_v13  ;;  %v1991_v12 = vshrl.u32 %v5040_v55, 16 }
 0x129   : > { %v6740_v53 = vadd.f32 %v1503_v52, %v1155_v4  ;;  %v1965_v38 = vrot.slane %v1964_v3, 4  ;;  %v1975_v1 = vrot.slane %v1974_v10, 4  ;;  %v1330_v52 = vsel %vm6393_vm5, %v4963_v28, %v1329_v40  ;;  %v5547_v28 = vld [vmem:[%s6037_s28 + $0x78] sm:$0xff] }
 0x12a   : > { %1196 = vmatmul.bf16.gmra.mxu1 %v5546_v36  ;;  %v1394_v5 = vunpack.c.l.b16 %v1330_v52  ;;  %v1981_v40 = vshrl.u32 %v5039_v49, 16  ;;  %v1987_v10 = vshll.u32 %v5040_v55, 16  ;;  %v1993_v52 = vrot.slane %v1991_v12, 4  ;;  %v5773_v49 = vld [vmem:[%s6037_s28 + $0x84] sm:$0xf] }
 0x12b   : > { %v1335_v13 = vrot.slane %v5773_v49, 5  ;;  %v5063_v55 = vld [vmem:[%s6037_s28 + $0x9c] sm:$0x1] }
 0x12c   : > { %v2195_v51 = vpop.f32.mrf.mxu3  ;;  %v2433_v4 = vpop.f32.mrf.mxu0 }
 0x12d   : > { %v6749_v14 = vadd.f32 %v2428_v63, %v2195_v51  ;;  %1545 = vmatmul.bf16.gmra.mxu2 %v1413_v54  ;;  %v5587_v51 = vld [vmem:[%s6037_s28 + $0x8c] sm:$0xff] }
 0x12f   : > { %v1159_v45 = vpop.f32.mrf.mxu1 }
 0x130   : > { %v1506_v36 = vpop.f32.mrf.mxu2  ;;  %v1160_v25 = vadd.f32 %v1159_v45, %v6619_v44  ;;  %v1970_v44 = vsel %vm6064_vm2, %v1965_v38, %v1969_v29  ;;  %v1414_v45 = vpack.c.b16 %v1395_v61, %v1394_v5 }
 0x131   : > { %2237 = vmatmul.bf16.gmra.mxu3 %v2105_v32  ;;  %v6755_v63 = vadd.f32 %v1506_v36, %v1158_v15  ;;  %v1980_v15 = vsel %vm6064_vm2, %v1975_v1, %v1979_v9  ;;  %v2086_v36 = vunpack.c.l.b16 %v1970_v44  ;;  %v1983_v1 = vrot.slane %v1981_v40, 4  ;;  %v5774_v40 = vld [vmem:[%s6037_s28 + $0x88] sm:$0x1] }
 0x132   : > { %v2087_v29 = vunpack.c.l.b16 %v1980_v15  ;;  %v1334_v15 = vrot.slane %v1332_v24, 4  ;;  %v5631_v24 = vld [vmem:[%s7945_s2 + $0x180] sm:$0xff] }
 0x133   : > { %7964 = vst [vmem:[#allocation11_spill] sm:$0xff] %v6755_v63  ;;  %v1984_v44 = vor.u32 %v1983_v1, %v1979_v9  ;;  %v5639_v1 = vld [vmem:[%s7945_s2 + $0x1c0] sm:$0xff]  ;;  %3749 = vmatpush.bf16.msra.mxu3 %v5631_v24 }
 0x134   : > { %v2198_v54 = vpop.f32.mrf.mxu3  ;;  %v2436_v3 = vpop.f32.mrf.mxu0  ;;  %v2106_v5 = vpack.c.b16 %v2087_v29, %v2086_v36  ;;  %v1665_v29 = vld [vmem:[%s6786_s9 + $0x4] sm:$0xf]  ;;  %3516 = vmatpush.bf16.msra.mxu2 %v5639_v1 }
 0x135   : > { %v6767_v32 = vadd.f32 %v2431_v41, %v2198_v54  ;;  %v6774_v41 = vrot.slane %v1987_v10, 5  ;;  %v1338_v10 = vrot.slane %v5774_v40, 5  ;;  %v1985_v36 = vrot.slane %v1984_v44, 4  ;;  %v5588_v44 = vld [vmem:[%s6037_s28 + $0x94] sm:$0xff] }
 0x136   : > { %v2011_v40 = vshll.u32 %v1665_v29, 16 }
 0x137   : > { %v1162_v11 = vpop.f32.mrf.mxu1  ;;  %2475 = vmatmul.bf16.gmra.mxu0 %v5587_v51  ;;  %v1337_v51 = vrot.slane %v1335_v13, 4 }
 0x138   : > { %v1508_v21 = vpop.f32.mrf.mxu2  ;;  %v1163_v12 = vadd.f32 %v1162_v11, %v6492_v30  ;;  %v1336_v30 = vsel %vm6393_vm5, %v1334_v15, %v1335_v13  ;;  %v5607_v13 = vld [vmem:[%s7945_s2 + $0x140] sm:$0xff]  ;;  %v2013_v24 = vrot.slane %v2011_v40, 5 }
 0x139   : > { %v6772_v38 = vadd.f32 %v1508_v21, %v1160_v25  ;;  %v1994_v25 = vor.u32 %v1993_v52, %v6774_v41  ;;  %v1339_v11 = vsel %vm6393_vm5, %v1337_v51, %v1338_v10  ;;  %v5548_v15 = vld [vmem:[%s6037_s28 + $0x80] sm:$0xff]  ;;  %v1990_v51 = vsel %vm6064_vm2, %v1985_v36, %v6774_v41  ;;  %2760 = vmatpush.bf16.msra.mxu1 %v5607_v13 }
 0x13a   : > { %1201 = vmatmul.bf16.gmra.mxu1 %v5547_v28  ;;  %v2088_v36 = vunpack.c.l.b16 %v1990_v51 }
 0x13b   : > { %7965 = vst [vmem:[#allocation12_spill] sm:$0xff] %v6772_v38  ;;  %v1995_v52 = vrot.slane %v1994_v25, 4  ;;  %v1396_v38 = vunpack.c.l.b16 %v1336_v30  ;;  %v5647_v25 = vld [vmem:[%s7945_s2 + $0x200] sm:$0xff] }
 0x13c   : > { %v2200_v54 = vpop.f32.mrf.mxu3  ;;  %v6780_v61 = vpop.f32.mrf.mxu0  ;;  %4095 = vmatpush.bf16.msra.mxu0 %v5647_v25  ;;  %v5776_v25 = vld [vmem:[%s6037_s28 + $0x94] sm:$0xf] }
 0x13d   : > { %v6778_v63 = vadd.f32 %v2433_v4, %v2200_v54  ;;  %1550 = vmatmul.bf16.gmra.mxu2 %v1414_v45  ;;  %v1997_v4 = vshll.u32 %v5063_v55, 16  ;;  %v1664_v45 = vld [vmem:[%s6786_s9] sm:$0xf]  ;;  %v1345_v51 = vrot.slane %v5776_v25, 5 }
 0x13e   : > { %v2002_v55 = vshrl.u32 %v1664_v45, 16  ;;  %v2005_v54 = vshll.u32 %v1664_v45, 16 }
 0x13f   : > { %7966 = vst [vmem:[#allocation13_spill] sm:$0xff] %v6778_v63  ;;  %v1164_v28 = vpop.f32.mrf.mxu1  ;;  %v1999_v49 = vrot.slane %v1997_v4, 5  ;;  %v1397_v63 = vunpack.c.l.b16 %v1339_v11 }
 0x140   : > { %v1511_v21 = vpop.f32.mrf.mxu2  ;;  %v1165_v10 = vadd.f32 %v1164_v28, %v6505_v2  ;;  %v2004_v45 = vrot.slane %v2002_v55, 4  ;;  %v5775_v2 = vld [vmem:[%s6037_s28 + $0x90] sm:$0xf] }
 0x141   : > { %2242 = vmatmul.bf16.gmra.mxu3 %v2106_v5  ;;  %v6791_v9 = vadd.f32 %v1511_v21, %v1163_v12  ;;  %v2015_v12 = vshrl.u32 %v1665_v29, 16  ;;  %v2007_v29 = vrot.slane %v2005_v54, 5  ;;  %v1415_v41 = vpack.c.b16 %v1397_v63, %v1396_v38 }
 0x142   : > { %v1342_v28 = vrot.slane %v5775_v2, 5  ;;  %v5777_v2 = vld [vmem:[%s6037_s28 + $0x18] sm:$0xf] }
 0x143   : > { %7967 = vst [vmem:[#allocation14_spill] sm:$0xff] %v6791_v9  ;;  %v2017_v30 = vrot.slane %v2015_v12, 4  ;;  %v2008_v55 = vor.u32 %v2007_v29, %v2004_v45 }
 0x144   : > { %v2203_v5 = vpop.f32.mrf.mxu3  ;;  %v2441_v9 = vpop.f32.mrf.mxu0  ;;  %v1344_v38 = vrot.slane %v1342_v28, 4 }
 0x145   : > { %v6805_v21 = vadd.f32 %v2436_v3, %v2203_v5  ;;  %v2000_v3 = vsel %vm6064_vm2, %v1995_v52, %v1999_v49  ;;  %v1666_v52 = vld [vmem:[%s6786_s9 + $0x8] sm:$0xf]  ;;  %v1229_v49 = vld [vmem:[%s6037_s28 + $0x8c] sm:$0xe]  ;;  %v2018_v54 = vor.u32 %v2017_v30, %v2013_v24 }
 0x146   : > { %v2089_v5 = vunpack.c.l.b16 %v2000_v3  ;;  %v2021_v13 = vshll.u32 %v1666_v52, 16  ;;  %v4964_v63 = vrot.slane %v1229_v49, 9  ;;  %v1667_v30 = vld [vmem:[%s6786_s9 + $0xc] sm:$0xf]  ;;  %v2522_v49 = vrot.slane %v5777_v2, 5 }
 0x147   : > { %7968 = vst [vmem:[#allocation15_spill] sm:$0xff] %v6805_v21  ;;  %v1167_v4 = vpop.f32.mrf.mxu1  ;;  %2480 = vmatmul.bf16.gmra.mxu0 %v5588_v44  ;;  %v2019_v29 = vrot.slane %v2018_v54, 4 }
 0x148   : > { %v1513_v1 = vpop.f32.mrf.mxu2  ;;  %v2107_v40 = vpack.c.b16 %v2089_v5, %v2088_v36  ;;  %v2025_v36 = vshrl.u32 %v1666_v52, 16  ;;  %v2035_v5 = vshrl.u32 %v1667_v30, 16  ;;  %v2524_v2 = vrot.slane %v2522_v49, 4 }
 0x149   : > { %v6820_v11 = vadd.f32 %v1513_v1, %v1165_v10  ;;  %v2009_v10 = vrot.slane %v2008_v55, 4  ;;  %v2023_v1 = vrot.slane %v2021_v13, 5  ;;  %v5589_v13 = vld [vmem:[%s6786_s9] sm:$0xff] }
 0x14a   : > { %1206 = vmatmul.bf16.gmra.mxu1 %v5548_v15  ;;  %v1168_v15 = vadd.f32 %v1167_v4, %v6537_v26  ;;  %v2031_v4 = vshll.u32 %v1667_v30, 16  ;;  %v2027_v25 = vrot.slane %v2025_v36, 4 }
 0x14b   : > { %7969 = vst [vmem:[#allocation16_spill] sm:$0xff] %v6820_v11  ;;  %v2014_v26 = vsel %vm6064_vm2, %v2009_v10, %v2013_v24  ;;  %v2024_v54 = vsel %vm6064_vm2, %v2019_v29, %v2023_v1  ;;  %v2037_v29 = vrot.slane %v2035_v5, 4 }
 0x14c   : > { %v2205_v21 = vpop.f32.mrf.mxu3  ;;  %v2443_v12 = vpop.f32.mrf.mxu0  ;;  %v2090_v24 = vunpack.c.l.b16 %v2014_v26  ;;  %v6849_v30 = vrot.slane %v2031_v4, 5  ;;  %v1692_v26 = vld [vmem:[%s6786_s9 + $0x10] sm:$0x1] }
 0x14d   : > { %v6826_v44 = vadd.f32 %v6780_v61, %v2205_v21  ;;  %1555 = vmatmul.bf16.gmra.mxu2 %v1415_v41  ;;  %v1343_v21 = vsel %vm6393_vm5, %v4964_v63, %v1342_v28  ;;  %v1346_v41 = vsel %vm6393_vm5, %v1344_v38, %v1345_v51  ;;  %v5549_v38 = vld [vmem:[%s6037_s28 + $0x8c] sm:$0xff]  ;;  %v2041_v11 = vshll.u32 %v1692_v26, 16 }
 0x14e   : > { %v1398_v63 = vunpack.c.l.b16 %v1343_v21  ;;  %v1399_v52 = vunpack.c.l.b16 %v1346_v41  ;;  %v5779_v21 = vld [vmem:[%s6037_s28 + $0x98] sm:$0xf] }
 0x14f   : > { %7970 = vst [vmem:[#allocation17_spill] sm:$0xff] %v6826_v44  ;;  %v1169_v3 = vpop.f32.mrf.mxu1  ;;  %v1348_v41 = vrot.slane %v5779_v21, 5  ;;  %v1347_v44 = vrot.slane %v1345_v51, 4 }
 0x150   : > { %v1516_v45 = vpop.f32.mrf.mxu2 }
 0x151   : > { %2247 = vmatmul.bf16.gmra.mxu3 %v2107_v40  ;;  %v6831_v61 = vadd.f32 %v1516_v45, %v1168_v15  ;;  %v1170_v15 = vadd.f32 %v1169_v3, %v6549_v50  ;;  %v2091_v45 = vunpack.c.l.b16 %v2024_v54  ;;  %v5208_v50 = vld [vmem:[%s6037_s28 + $0x14] sm:$0xe]  ;;  %v2028_v3 = vor.u32 %v2027_v25, %v2023_v1 }
 0x152   : > { %v5215_v4 = vrot.slane %v5208_v50, 9  ;;  %v2038_v54 = vor.u32 %v2037_v29, %v6849_v30  ;;  %v5272_v29 = vld [vmem:[%s6037_s28 + $0x2c] sm:$0xf] }
 0x153   : > { %7971 = vst [vmem:[#allocation18_spill] sm:$0xff] %v6831_v61  ;;  %v2108_v5 = vpack.c.b16 %v2091_v45, %v2090_v24  ;;  %v5780_v24 = vld [vmem:[%s6037_s28 + $0x9c] sm:$0x1]  ;;  %v2029_v51 = vrot.slane %v2028_v3, 4 }
 0x154   : > { %v2208_v55 = vpop.f32.mrf.mxu3  ;;  %v6845_v28 = vpop.f32.mrf.mxu0  ;;  %v2523_v21 = vsel %vm6393_vm5, %v5215_v4, %v2522_v49  ;;  %v1351_v25 = vrot.slane %v5780_v24, 5 }
 0x155   : > { %v6843_v40 = vadd.f32 %v2441_v9, %v2208_v55  ;;  %v6852_v9 = vld [vmem:[%s6037_s28 + $0x1c] sm:$0xf]  ;;  %v2034_v3 = vsel %vm6064_vm2, %v2029_v51, %v6849_v30  ;;  %v5461_v30 = vld [vmem:[%s6037_s28 + $0x28] sm:$0xe] }
 0x157   : > { %7972 = vst [vmem:[#allocation19_spill] sm:$0xff] %v6843_v40  ;;  %v1172_v10 = vpop.f32.mrf.mxu1  ;;  %2485 = vmatmul.bf16.gmra.mxu0 %v5589_v13  ;;  %v1416_v40 = vpack.c.b16 %v1399_v52, %v1398_v63  ;;  %v1350_v13 = vrot.slane %v1348_v41, 4  ;;  %v5271_v52 = vld [vmem:[%s6037_s28 + $0x28] sm:$0xf] }
 0x158   : > { %v1518_v61 = vpop.f32.mrf.mxu2  ;;  %v1173_v26 = vadd.f32 %v1172_v10, %v6564_v35  ;;  %v3029_v4 = vshrl.u32 %v5271_v52, 16  ;;  %v2043_v10 = vrot.slane %v2041_v11, 5 }
 0x159   : > { %v6857_v36 = vadd.f32 %v1518_v61, %v1170_v15  ;;  %v7974_v61 = vrot.slane %v6852_v9, 5  ;;  %v2641_v15 = vunpack.c.l.b16 %v2523_v21  ;;  %v1349_v21 = vsel %vm6393_vm5, %v1347_v44, %v1348_v41 }
 0x15a   : > { %1211 = vmatmul.bf16.gmra.mxu1 %v5549_v38  ;;  %v1352_v35 = vsel %vm6393_vm5, %v1350_v13, %v1351_v25  ;;  %v6891_v13 = vld [vmem:[%s6037_s28 + $0x30] sm:$0xf]  ;;  %v3857_v25 = vrot.slane %v5272_v29, 5 }
 0x15b   : > { %7973 = vst [vmem:[#allocation20_spill] sm:$0xff] %v6857_v36  ;;  %v2526_v63 = vsel %vm6393_vm5, %v2524_v2, %v7974_v61  ;;  %v3032_v36 = vshll.u32 %v5271_v52, 16  ;;  %v2039_v61 = vrot.slane %v2038_v54, 4  ;;  %v3031_v54 = vrot.slane %v3029_v4, 4 }
 0x15c   : > { %v2210_v55 = vpop.f32.mrf.mxu3  ;;  %v2448_v1 = vpop.f32.mrf.mxu0  ;;  %v2642_v45 = vunpack.c.l.b16 %v2526_v63  ;;  %v1401_v24 = vunpack.c.l.b16 %v1352_v35  ;;  %v2092_v4 = vunpack.c.l.b16 %v2034_v3 }
 0x15d   : > { %v6868_v38 = vadd.f32 %v2443_v12, %v2210_v55  ;;  %1560 = vmatmul.bf16.gmra.mxu2 %v1416_v40  ;;  %v3038_v12 = vshll.u32 %v5272_v29, 16  ;;  %v3042_v55 = vshrl.u32 %v5272_v29, 16  ;;  %v3034_v63 = vrot.slane %v3032_v36, 5 }
 0x15e   : > { %v6873_v49 = vpack.c.b16 %v2642_v45, %v2641_v15  ;;  %v5590_v15 = vld [vmem:[%s6786_s9 + $0x8] sm:$0xff]  ;;  %v2044_v11 = vsel %vm6064_vm2, %v2039_v61, %v2043_v10  ;;  %v5467_v61 = vrot.slane %v5461_v30, 9  ;;  %v3859_v10 = vrot.slane %v3857_v25, 4 }
 0x15f   : > { %v1174_v50 = vpop.f32.mrf.mxu1  ;;  %v3040_v45 = vrot.slane %v3038_v12, 5  ;;  %v3860_v29 = vrot.slane %v6891_v13, 5 }
 0x160   : > { %v1521_v2 = vpop.f32.mrf.mxu2  ;;  %v1175_v36 = vadd.f32 %v1174_v50, %v6577_v43 }
 0x161   : > { %2252 = vmatmul.bf16.gmra.mxu3 %v2108_v5  ;;  %v6875_v40 = vadd.f32 %v1521_v2, %v1173_v26  ;;  %v1400_v5 = vunpack.c.l.b16 %v1349_v21  ;;  %v3044_v26 = vrot.slane %v3042_v55, 4  ;;  %v5550_v2 = vld [vmem:[%s6037_s28 + $0x94] sm:$0xff]  ;;  %v3035_v21 = vor.u32 %v3034_v63, %v3031_v54 }
 0x162   : > { %v2093_v55 = vunpack.c.l.b16 %v2044_v11 }
 0x163   : > { %7975 = vst [vmem:[#allocation21_spill] sm:$0xff] %v6875_v40  ;;  %v1417_v12 = vpack.c.b16 %v1401_v24, %v1400_v5  ;;  %v3858_v24 = vsel %vm6393_vm5, %v5467_v61, %v3857_v25 }
 0x164   : > { %v2213_v52 = vpop.f32.mrf.mxu3  ;;  %v2451_v41 = vpop.f32.mrf.mxu0  ;;  %v2109_v50 = vpack.c.b16 %v2093_v55, %v2092_v4  ;;  %v3976_v4 = vunpack.c.l.b16 %v3858_v24 }
 0x165   : > { %v6886_v44 = vadd.f32 %v6845_v28, %v2213_v52  ;;  %v3045_v28 = vor.u32 %v3044_v26, %v3040_v45  ;;  %v3048_v52 = vshll.u32 %v6891_v13, 16  ;;  %v5274_v26 = vld [vmem:[%s6037_s28 + $0x34] sm:$0xf] }
 0x166   : > { %v3863_v24 = vrot.slane %v5274_v26, 5 }
 0x167   : > { %7976 = vst [vmem:[#allocation22_spill] sm:$0xff] %v6886_v44  ;;  %v1177_v51 = vpop.f32.mrf.mxu1  ;;  %2490 = vmatmul.bf16.gmra.mxu0 %v5590_v15  ;;  %v3036_v44 = vrot.slane %v3035_v21, 4  ;;  %v3046_v3 = vrot.slane %v3045_v28, 4  ;;  %v3050_v5 = vrot.slane %v3048_v52, 5  ;;  %v3861_v15 = vsel %vm6393_vm5, %v3859_v10, %v3860_v29 }
 0x168   : > { %v1523_v35 = vpop.f32.mrf.mxu2  ;;  %v1178_v11 = vadd.f32 %v1177_v51, %v6612_v39  ;;  %v3977_v21 = vunpack.c.l.b16 %v3861_v15  ;;  %v5781_v15 = vld [vmem:[%s6037_s28 + $0x20] sm:$0xf] }
 0x169   : > { %v6897_v40 = vadd.f32 %v1523_v35, %v1175_v36  ;;  %v3052_v36 = vshrl.u32 %v6891_v13, 16  ;;  %v3058_v35 = vshll.u32 %v5274_v26, 16  ;;  %v3051_v55 = vsel %vm6064_vm2, %v3046_v3, %v3050_v5 }
 0x16a   : > { %1216 = vmatmul.bf16.gmra.mxu1 %v5550_v2  ;;  %v3041_v2 = vsel %vm6064_vm2, %v3036_v44, %v3040_v45  ;;  %v3398_v52 = vunpack.c.l.b16 %v3051_v55  ;;  %v4008_v45 = vpack.c.b16 %v3977_v21, %v3976_v4 }
 0x16b   : > { %7977 = vst [vmem:[#allocation23_spill] sm:$0xff] %v6897_v40  ;;  %v3397_v39 = vunpack.c.l.b16 %v3041_v2  ;;  %v3054_v51 = vrot.slane %v3052_v36, 4  ;;  %v3060_v44 = vrot.slane %v3058_v35, 5  ;;  %v2528_v40 = vrot.slane %v5781_v15, 5 }
 0x16c   : > { %v2215_v43 = vpop.f32.mrf.mxu3  ;;  %v2453_v63 = vpop.f32.mrf.mxu0  ;;  %v3865_v35 = vrot.slane %v3863_v24, 4 }
 0x16d   : > { %v6900_v54 = vadd.f32 %v2448_v1, %v2215_v43  ;;  %1565 = vmatmul.bf16.gmra.mxu2 %v1417_v12  ;;  %v3062_v12 = vshrl.u32 %v5274_v26, 16  ;;  %v5311_v43 = vld [vmem:[%s6037_s28 + $0x38] sm:$0x1]  ;;  %v3429_v2 = vpack.c.b16 %v3398_v52, %v3397_v39  ;;  %v7978_v26 = vrot.slane %v6852_v9, 5  ;;  %v5275_v52 = vld [vmem:[%s6037_s28 + $0x3c] sm:$0xf] }
 0x16e   : > { %v3068_v4 = vshll.u32 %v5311_v43, 16 }
 0x16f   : > { %v1179_v30 = vpop.f32.mrf.mxu1  ;;  %v3064_v13 = vrot.slane %v3062_v12, 4  ;;  %v3866_v12 = vrot.slane %v5311_v43, 5  ;;  %v5276_v43 = vld [vmem:[%s6037_s28 + $0x40] sm:$0xf] }
 0x170   : > { %v1526_v1 = vpop.f32.mrf.mxu2  ;;  %v3070_v15 = vrot.slane %v3068_v4, 5  ;;  %v3076_v4 = vshll.u32 %v5275_v52, 16 }
 0x171   : > { %2257 = vmatmul.bf16.gmra.mxu3 %v2109_v50  ;;  %v6911_v25 = vadd.f32 %v1526_v1, %v1178_v11  ;;  %v1180_v50 = vadd.f32 %v1179_v30, %v6622_v7  ;;  %v3055_v1 = vor.u32 %v3054_v51, %v3050_v5  ;;  %v3065_v36 = vor.u32 %v3064_v13, %v3060_v44  ;;  %v5782_v5 = vld [vmem:[%s6037_s28 + $0x24] sm:$0x1]  ;;  %v5615_v13 = vld [vmem:[%s6037_s28 + $0x28] sm:$0xff] }
 0x172   : > { %v2527_v7 = vrot.slane %v7978_v26, 4  ;;  %v2530_v30 = vrot.slane %v2528_v40, 4  ;;  %v2531_v55 = vrot.slane %v5782_v5, 5  ;;  %v3867_v9 = vsel %vm6393_vm5, %v3865_v35, %v3866_v12 }
 0x173   : > { %v3056_v39 = vrot.slane %v3055_v1, 4  ;;  %v3082_v5 = vshll.u32 %v5276_v43, 16  ;;  %v3086_v35 = vshrl.u32 %v5276_v43, 16 }
 0x174   : > { %v2218_v28 = vpop.f32.mrf.mxu3  ;;  %v2456_v10 = vpop.f32.mrf.mxu0  ;;  %v2532_v1 = vsel %vm6393_vm5, %v2530_v30, %v2531_v55  ;;  %v3078_v30 = vrot.slane %v3076_v4, 5 }
 0x175   : > { %v6915_v61 = vadd.f32 %v2451_v41, %v2218_v28  ;;  %v3862_v41 = vrot.slane %v3860_v29, 4  ;;  %v3066_v28 = vrot.slane %v3065_v36, 4  ;;  %v3073_v36 = vshrl.u32 %v5275_v52, 16 }
 0x176   : > { %v3084_v52 = vrot.slane %v3082_v5, 5 }
 0x177   : > { %v1182_v11 = vpop.f32.mrf.mxu1  ;;  %4096 = vmatmul.bf16.vlgmr.msra.gmra.mxu0 %v4008_v45 }
 0x178   : > { %v1528_v3 = vpop.f32.mrf.mxu2 }
 0x179   : > { %v6920_v21 = vadd.f32 %v1528_v3, %v1180_v50  ;;  %v2529_v50 = vsel %vm6393_vm5, %v2527_v7, %v2528_v40  ;;  %v3071_v40 = vsel %vm6064_vm2, %v3066_v28, %v3070_v15  ;;  %v5462_v15 = vld [vmem:[%s6037_s28 + $0x3c] sm:$0xe] }
 0x17a   : > { %2761 = vmatmul.bf16.vlgmr.msra.gmra.mxu1 %v6873_v49  ;;  %v3864_v49 = vsel %vm6393_vm5, %v3862_v41, %v3863_v24  ;;  %v3979_v41 = vunpack.c.l.b16 %v3867_v9 }
 0x17b   : > { %v3978_v24 = vunpack.c.l.b16 %v3864_v49  ;;  %v3088_v49 = vrot.slane %v3086_v35, 4 }
 0x17c   : > { %v2220_v51 = vpop.f32.mrf.mxu3  ;;  %v2458_v29 = vpop.f32.mrf.mxu0 }
 0x17d   : > { %v6927_v45 = vadd.f32 %v2453_v63, %v2220_v51  ;;  %3517 = vmatmul.bf16.vlgmr.msra.gmra.mxu2 %v3429_v2  ;;  %v1183_v63 = vadd.f32 %v1182_v11, %v6501_v62  ;;  %v3061_v2 = vsel %vm6064_vm2, %v3056_v39, %v3060_v44  ;;  %v2643_v62 = vunpack.c.l.b16 %v2529_v50 }
 0x17e   : > { %v2644_v11 = vunpack.c.l.b16 %v2532_v1  ;;  %v3399_v7 = vunpack.c.l.b16 %v3061_v2  ;;  %v3075_v44 = vrot.slane %v3073_v36, 4  ;;  %v3400_v39 = vunpack.c.l.b16 %v3071_v40  ;;  %v5209_v2 = vld [vmem:[%s6037_s28 + $0x28] sm:$0xe]  ;;  %v5783_v36 = vld [vmem:[%s6037_s28 + $0x2c] sm:$0xf] }
 0x17f   : > { %v1184_v3 = vpop.f32.mrf.mxu1  ;;  %v4009_v51 = vpack.c.b16 %v3979_v41, %v3978_v24  ;;  %v2535_v4 = vrot.slane %v5783_v36, 5  ;;  %v3089_v41 = vor.u32 %v3088_v49, %v3084_v52 }
 0x180   : > { %v1531_v26 = vpop.f32.mrf.mxu2  ;;  %v2674_v28 = vpack.c.b16 %v2644_v11, %v2643_v62  ;;  %v1185_v50 = vadd.f32 %v1184_v3, %v6528_v16  ;;  %v3430_v24 = vpack.c.b16 %v3400_v39, %v3399_v7  ;;  %v5216_v16 = vrot.slane %v5209_v2, 9  ;;  %v5784_v11 = vld [vmem:[%s6037_s28 + $0x30] sm:$0xf] }
 0x181   : > { %3750 = vmatmul.bf16.vlgmr.msra.gmra.mxu3 %v5615_v13  ;;  %v6942_v12 = vadd.f32 %v1531_v26, %v1183_v63  ;;  %v6949_v63 = vld [vmem:[%s6037_s28 + $0x44] sm:$0xf]  ;;  %v3870_v26 = vrot.slane %v5276_v43, 5  ;;  %v5468_v43 = vrot.slane %v5462_v15, 9  ;;  %v2537_v3 = vrot.slane %v2535_v4, 4 }
 0x182   : > { %v3873_v62 = vrot.slane %v6949_v63, 5  ;;  %v3090_v7 = vrot.slane %v3089_v41, 4  ;;  %v2536_v2 = vsel %vm6393_vm5, %v5216_v16, %v2535_v4  ;;  %v3096_v41 = vshrl.u32 %v6949_v63, 16 }
 0x183   : > { %7979 = vst [vmem:[#allocation24_spill] sm:$0xff] %v6942_v12  ;;  %v3079_v12 = vor.u32 %v3078_v30, %v3075_v44  ;;  %v3872_v35 = vrot.slane %v3870_v26, 4  ;;  %v3871_v15 = vsel %vm6393_vm5, %v5468_v43, %v3870_v26 }
 0x184   : > { %v2223_v55 = vpop.f32.mrf.mxu3  ;;  %v2461_v13 = vpop.f32.mrf.mxu0  ;;  %v3980_v26 = vunpack.c.l.b16 %v3871_v15 }
 0x185   : > { %v6946_v9 = vadd.f32 %v2456_v10, %v2223_v55  ;;  %v3092_v10 = vshll.u32 %v6949_v63, 16  ;;  %v2538_v55 = vrot.slane %v5784_v11, 5  ;;  %v3080_v44 = vrot.slane %v3079_v12, 4 }
 0x186   : > { %v3874_v36 = vsel %vm6393_vm5, %v3872_v35, %v3873_v62 }
 0x187   : > { %7980 = vst [vmem:[#allocation25_spill] sm:$0xff] %v6946_v9  ;;  %v1187_v1 = vpop.f32.mrf.mxu1  ;;  %4101 = vmatmul.bf16.gmra.mxu0 %v4009_v51  ;;  %v5616_v51 = vld [vmem:[%s6037_s28 + $0x30] sm:$0xff]  ;;  %v3981_v43 = vunpack.c.l.b16 %v3874_v36  ;;  %v5312_v9 = vld [vmem:[%s6037_s28 + $0x4c] sm:$0x1] }
 0x188   : > { %v1533_v40 = vpop.f32.mrf.mxu2  ;;  %v1188_v12 = vadd.f32 %v1187_v1, %v6545_v48  ;;  %v2645_v1 = vunpack.c.l.b16 %v2536_v2 }
 0x189   : > { %v6956_v5 = vadd.f32 %v1533_v40, %v1185_v50  ;;  %v3094_v50 = vrot.slane %v3092_v10, 5  ;;  %v4010_v63 = vpack.c.b16 %v3981_v43, %v3980_v26  ;;  %v3112_v43 = vshll.u32 %v5312_v9, 16 }
 0x18a   : > { %2766 = vmatmul.bf16.gmra.mxu1 %v2674_v28  ;;  %v5278_v28 = vld [vmem:[%s6037_s28 + $0x48] sm:$0xf] }
 0x18b   : > { %7981 = vst [vmem:[#allocation26_spill] sm:$0xff] %v6956_v5  ;;  %v3102_v11 = vshll.u32 %v5278_v28, 16  ;;  %v3106_v35 = vshrl.u32 %v5278_v28, 16  ;;  %v3095_v48 = vsel %vm6064_vm2, %v3090_v7, %v3094_v50 }
 0x18c   : > { %v2225_v30 = vpop.f32.mrf.mxu3  ;;  %v2463_v49 = vpop.f32.mrf.mxu0 }
 0x18d   : > { %v6960_v39 = vadd.f32 %v2458_v29, %v2225_v30  ;;  %3522 = vmatmul.bf16.gmra.mxu2 %v3430_v24  ;;  %v2539_v29 = vsel %vm6393_vm5, %v2537_v3, %v2538_v55  ;;  %v3085_v24 = vsel %vm6064_vm2, %v3080_v44, %v3084_v52  ;;  %v3098_v3 = vrot.slane %v3096_v41, 4 }
 0x18e   : > { %v2646_v4 = vunpack.c.l.b16 %v2539_v29  ;;  %v3401_v16 = vunpack.c.l.b16 %v3085_v24  ;;  %v3402_v44 = vunpack.c.l.b16 %v3095_v48  ;;  %v3104_v5 = vrot.slane %v3102_v11, 5 }
 0x18f   : > { %7982 = vst [vmem:[#allocation27_spill] sm:$0xff] %v6960_v39  ;;  %v1189_v40 = vpop.f32.mrf.mxu1  ;;  %v3108_v15 = vrot.slane %v3106_v35, 4  ;;  %v3099_v29 = vor.u32 %v3098_v3, %v3094_v50  ;;  %v3875_v11 = vrot.slane %v3873_v62, 4  ;;  %v2540_v48 = vrot.slane %v2538_v55, 4  ;;  %v5280_v55 = vld [vmem:[%s6037_s28 + $0x54] sm:$0xf] }
 0x190   : > { %v1536_v10 = vpop.f32.mrf.mxu2  ;;  %v1190_v7 = vadd.f32 %v1189_v40, %v6559_v60  ;;  %v3431_v41 = vpack.c.b16 %v3402_v44, %v3401_v16  ;;  %v5279_v16 = vld [vmem:[%s6037_s28 + $0x50] sm:$0xf]  ;;  %v5617_v44 = vld [vmem:[%s6037_s28 + $0x3c] sm:$0xff] }
 0x191   : > { %3755 = vmatmul.bf16.gmra.mxu3 %v5616_v51  ;;  %v6976_v30 = vadd.f32 %v1536_v10, %v1188_v12  ;;  %v3876_v51 = vrot.slane %v5278_v28, 5  ;;  %v2675_v12 = vpack.c.b16 %v2646_v4, %v2645_v1  ;;  %v5785_v10 = vld [vmem:[%s6037_s28 + $0x34] sm:$0xf]  ;;  %v3109_v26 = vor.u32 %v3108_v15, %v3104_v5  ;;  %v5786_v4 = vld [vmem:[%s6037_s28 + $0x38] sm:$0x1] }
 0x192   : > { %v3879_v28 = vrot.slane %v5312_v9, 5  ;;  %v2544_v60 = vrot.slane %v5786_v4, 5  ;;  %v3100_v40 = vrot.slane %v3099_v29, 4  ;;  %v3114_v15 = vrot.slane %v3112_v43, 5 }
 0x193   : > { %7983 = vst [vmem:[#allocation28_spill] sm:$0xff] %v6976_v30  ;;  %v2541_v30 = vrot.slane %v5785_v10, 5  ;;  %v3878_v35 = vrot.slane %v3876_v51, 4  ;;  %v3110_v3 = vrot.slane %v3109_v26, 4  ;;  %v3877_v62 = vsel %vm6393_vm5, %v3875_v11, %v3876_v51 }
 0x194   : > { %v2228_v52 = vpop.f32.mrf.mxu3  ;;  %v2466_v39 = vpop.f32.mrf.mxu0  ;;  %v3105_v29 = vsel %vm6064_vm2, %v3100_v40, %v3104_v5  ;;  %v3982_v51 = vunpack.c.l.b16 %v3877_v62  ;;  %v3126_v11 = vshll.u32 %v5280_v55, 16 }
 0x195   : > { %v6980_v36 = vadd.f32 %v2461_v13, %v2228_v52  ;;  %v2543_v1 = vrot.slane %v2541_v30, 4  ;;  %v3880_v9 = vsel %vm6393_vm5, %v3878_v35, %v3879_v28  ;;  %v3130_v35 = vshrl.u32 %v5280_v55, 16 }
 0x196   : > { %v3983_v43 = vunpack.c.l.b16 %v3880_v9  ;;  %v7011_v9 = vld [vmem:[%s6037_s28 + $0x58] sm:$0xf] }
 0x197   : > { %v1192_v2 = vpop.f32.mrf.mxu1  ;;  %4106 = vmatmul.bf16.gmra.mxu0 %v4010_v63  ;;  %v2545_v10 = vsel %vm6393_vm5, %v2543_v1, %v2544_v60 }
 0x198   : > { %v1538_v24 = vpop.f32.mrf.mxu2  ;;  %v4011_v40 = vpack.c.b16 %v3983_v43, %v3982_v51 }
 0x199   : > { %v6985_v13 = vadd.f32 %v1538_v24, %v1190_v7  ;;  %v3117_v24 = vshrl.u32 %v5279_v16, 16 }
 0x19a   : > { %2771 = vmatmul.bf16.gmra.mxu1 %v2675_v12  ;;  %v2542_v12 = vsel %vm6393_vm5, %v2540_v48, %v2541_v30  ;;  %v3115_v30 = vsel %vm6064_vm2, %v3110_v3, %v3114_v15  ;;  %v3403_v48 = vunpack.c.l.b16 %v3105_v29  ;;  %v5463_v15 = vld [vmem:[%s6037_s28 + $0x50] sm:$0xe]  ;;  %v5210_v29 = vld [vmem:[%s6037_s28 + $0x3c] sm:$0xe] }
 0x19b   : > { %v3119_v5 = vrot.slane %v3117_v24, 4  ;;  %v3404_v60 = vunpack.c.l.b16 %v3115_v30  ;;  %v5787_v24 = vld [vmem:[%s6037_s28 + $0x40] sm:$0xf] }
 0x19c   : > { %v2230_v50 = vpop.f32.mrf.mxu3  ;;  %v2468_v63 = vpop.f32.mrf.mxu0 }
 0x19d   : > { %v6989_v52 = vadd.f32 %v2463_v49, %v2230_v50  ;;  %3527 = vmatmul.bf16.gmra.mxu2 %v3431_v41  ;;  %v1193_v49 = vadd.f32 %v1192_v2, %v6580_v46  ;;  %v3120_v41 = vshll.u32 %v5279_v16, 16  ;;  %v2647_v46 = vunpack.c.l.b16 %v2542_v12 }
 0x19e   : > { %v2648_v2 = vunpack.c.l.b16 %v2545_v10  ;;  %v3128_v50 = vrot.slane %v3126_v11, 5  ;;  %v3132_v16 = vrot.slane %v3130_v35, 4  ;;  %v3432_v51 = vpack.c.b16 %v3404_v60, %v3403_v48 }
 0x19f   : > { %v1194_v7 = vpop.f32.mrf.mxu1  ;;  %v3122_v1 = vrot.slane %v3120_v41, 5  ;;  %v2548_v41 = vrot.slane %v5787_v24, 5 }
 0x1a0   : > { %v1541_v26 = vpop.f32.mrf.mxu2  ;;  %v2676_v3 = vpack.c.b16 %v2648_v2, %v2647_v46  ;;  %v1195_v12 = vadd.f32 %v1194_v7, %v6610_v19  ;;  %v3133_v43 = vor.u32 %v3132_v16, %v3128_v50  ;;  %v3886_v46 = vrot.slane %v7011_v9, 5  ;;  %v5788_v2 = vld [vmem:[%s6037_s28 + $0x44] sm:$0xf] }
 0x1a1   : > { %3760 = vmatmul.bf16.gmra.mxu3 %v5617_v44  ;;  %v7004_v28 = vadd.f32 %v1541_v26, %v1193_v49  ;;  %v3883_v49 = vrot.slane %v5280_v55, 5  ;;  %v3123_v26 = vor.u32 %v3122_v1, %v3119_v5  ;;  %v5469_v55 = vrot.slane %v5463_v15, 9 }
 0x1a2   : > { %v5217_v19 = vrot.slane %v5210_v29, 9  ;;  %v2550_v7 = vrot.slane %v2548_v41, 4  ;;  %v3134_v48 = vrot.slane %v3133_v43, 4  ;;  %v3140_v43 = vshrl.u32 %v7011_v9, 16 }
 0x1a3   : > { %7984 = vst [vmem:[#allocation29_spill] sm:$0xff] %v7004_v28  ;;  %v3885_v35 = vrot.slane %v3883_v49, 4  ;;  %v3124_v5 = vrot.slane %v3123_v26, 4  ;;  %v3884_v15 = vsel %vm6393_vm5, %v5469_v55, %v3883_v49  ;;  %v5313_v28 = vld [vmem:[%s6037_s28 + $0x60] sm:$0x1] }
 0x1a4   : > { %v2233_v4 = vpop.f32.mrf.mxu3  ;;  %v2471_v44 = vpop.f32.mrf.mxu0  ;;  %v2549_v29 = vsel %vm6393_vm5, %v5217_v19, %v2548_v41  ;;  %v3984_v49 = vunpack.c.l.b16 %v3884_v15 }
 0x1a5   : > { %v7008_v62 = vadd.f32 %v2466_v39, %v2233_v4  ;;  %v3136_v39 = vshll.u32 %v7011_v9, 16  ;;  %v2551_v4 = vrot.slane %v5788_v2, 5  ;;  %v3887_v24 = vsel %vm6393_vm5, %v3885_v35, %v3886_v46 }
 0x1a6   : > { %v3985_v55 = vunpack.c.l.b16 %v3887_v24 }
 0x1a7   : > { %v1197_v10 = vpop.f32.mrf.mxu1  ;;  %4111 = vmatmul.bf16.gmra.mxu0 %v4011_v40  ;;  %v5618_v40 = vld [vmem:[%s6037_s28 + $0x44] sm:$0xff] }
 0x1a8   : > { %v1543_v30 = vpop.f32.mrf.mxu2  ;;  %v1198_v26 = vadd.f32 %v1197_v10, %v6624_v18  ;;  %v2649_v10 = vunpack.c.l.b16 %v2549_v29  ;;  %v4012_v9 = vpack.c.b16 %v3985_v55, %v3984_v49  ;;  %v3156_v49 = vshll.u32 %v5313_v28, 16 }
 0x1a9   : > { %v7018_v11 = vadd.f32 %v1543_v30, %v1195_v12  ;;  %v3138_v12 = vrot.slane %v3136_v39, 5 }
 0x1aa   : > { %2776 = vmatmul.bf16.gmra.mxu1 %v2676_v3  ;;  %v5282_v3 = vld [vmem:[%s6037_s28 + $0x5c] sm:$0xf] }
 0x1ab   : > { %7985 = vst [vmem:[#allocation30_spill] sm:$0xff] %v7018_v11  ;;  %v3146_v2 = vshll.u32 %v5282_v3, 16  ;;  %v3150_v35 = vshrl.u32 %v5282_v3, 16  ;;  %v3139_v18 = vsel %vm6064_vm2, %v3134_v48, %v3138_v12  ;;  %v5789_v48 = vld [vmem:[%s6037_s28 + $0x48] sm:$0xf] }
 0x1ac   : > { %v2235_v1 = vpop.f32.mrf.mxu3  ;;  %v2473_v16 = vpop.f32.mrf.mxu0  ;;  %v2554_v29 = vrot.slane %v5789_v48, 5 }
 0x1ad   : > { %v7022_v60 = vadd.f32 %v2468_v63, %v2235_v1  ;;  %3532 = vmatmul.bf16.gmra.mxu2 %v3432_v51  ;;  %v2552_v63 = vsel %vm6393_vm5, %v2550_v7, %v2551_v4  ;;  %v3129_v51 = vsel %vm6064_vm2, %v3124_v5, %v3128_v50  ;;  %v3142_v7 = vrot.slane %v3140_v43, 4 }
 0x1ae   : > { %v2650_v41 = vunpack.c.l.b16 %v2552_v63  ;;  %v3405_v19 = vunpack.c.l.b16 %v3129_v51  ;;  %v3406_v5 = vunpack.c.l.b16 %v3139_v18  ;;  %v3148_v11 = vrot.slane %v3146_v2, 5 }
 0x1af   : > { %7986 = vst [vmem:[#allocation31_spill] sm:$0xff] %v7022_v60  ;;  %v1199_v30 = vpop.f32.mrf.mxu1  ;;  %v3152_v15 = vrot.slane %v3150_v35, 4  ;;  %v3143_v63 = vor.u32 %v3142_v7, %v3138_v12  ;;  %v3892_v35 = vrot.slane %v5313_v28, 5 }
 0x1b0   : > { %v1546_v39 = vpop.f32.mrf.mxu2  ;;  %v3433_v43 = vpack.c.b16 %v3406_v5, %v3405_v19 }
 0x1b1   : > { %3765 = vmatmul.bf16.gmra.mxu3 %v5618_v40  ;;  %v7038_v1 = vadd.f32 %v1546_v39, %v1198_v26  ;;  %v3889_v40 = vrot.slane %v5282_v3, 5  ;;  %v2677_v26 = vpack.c.b16 %v2650_v41, %v2649_v10  ;;  %v1200_v39 = vadd.f32 %v1199_v30, %v6639_v27  ;;  %v5790_v30 = vld [vmem:[%s6037_s28 + $0x4c] sm:$0x1] }
 0x1b2   : > { %v3153_v18 = vor.u32 %v3152_v15, %v3148_v11  ;;  %v2553_v3 = vrot.slane %v2551_v4, 4  ;;  %v2556_v27 = vrot.slane %v2554_v29, 4  ;;  %v2557_v10 = vrot.slane %v5790_v30, 5  ;;  %v5283_v4 = vld [vmem:[%s6037_s28 + $0x64] sm:$0xf] }
 0x1b3   : > { %7987 = vst [vmem:[#allocation32_spill] sm:$0xff] %v7038_v1  ;;  %v3891_v2 = vrot.slane %v3889_v40, 4  ;;  %v3144_v41 = vrot.slane %v3143_v63, 4  ;;  %v5284_v63 = vld [vmem:[%s6037_s28 + $0x68] sm:$0xf] }
 0x1b4   : > { %v2238_v50 = vpop.f32.mrf.mxu3  ;;  %v2476_v60 = vpop.f32.mrf.mxu0  ;;  %v3154_v7 = vrot.slane %v3153_v18, 4  ;;  %v3161_v18 = vshrl.u32 %v5283_v4, 16 }
 0x1b5   : > { %v7042_v24 = vadd.f32 %v2471_v44, %v2238_v50  ;;  %v3888_v44 = vrot.slane %v3886_v46, 4  ;;  %v5619_v50 = vld [vmem:[%s6037_s28 + $0x50] sm:$0xff]  ;;  %v3893_v28 = vsel %vm6393_vm5, %v3891_v2, %v3892_v35  ;;  %v3149_v48 = vsel %vm6064_vm2, %v3144_v41, %v3148_v11 }
 0x1b6   : > { %v3170_v2 = vshll.u32 %v5284_v63, 16  ;;  %v3174_v35 = vshrl.u32 %v5284_v63, 16 }
 0x1b7   : > { %v1202_v1 = vpop.f32.mrf.mxu1  ;;  %4116 = vmatmul.bf16.gmra.mxu0 %v4012_v9  ;;  %v3158_v9 = vrot.slane %v3156_v49, 5  ;;  %v3890_v46 = vsel %vm6393_vm5, %v3888_v44, %v3889_v40  ;;  %v3987_v40 = vunpack.c.l.b16 %v3893_v28  ;;  %v3164_v49 = vshll.u32 %v5283_v4, 16  ;;  %v5464_v4 = vld [vmem:[%s6037_s28 + $0x64] sm:$0xe] }
 0x1b8   : > { %v1548_v51 = vpop.f32.mrf.mxu2  ;;  %v1203_v15 = vadd.f32 %v1202_v1, %v6508_v8 }
 0x1b9   : > { %v7047_v55 = vadd.f32 %v1548_v51, %v1200_v39  ;;  %v2555_v39 = vsel %vm6393_vm5, %v2553_v3, %v2554_v29  ;;  %v3159_v8 = vsel %vm6064_vm2, %v3154_v7, %v3158_v9  ;;  %v3407_v3 = vunpack.c.l.b16 %v3149_v48  ;;  %v5791_v48 = vld [vmem:[%s6037_s28 + $0x54] sm:$0xf] }
 0x1ba   : > { %2781 = vmatmul.bf16.gmra.mxu1 %v2677_v26  ;;  %v2651_v1 = vunpack.c.l.b16 %v2555_v39  ;;  %v3166_v41 = vrot.slane %v3164_v49, 5  ;;  %v3172_v7 = vrot.slane %v3170_v2, 5  ;;  %v3176_v9 = vrot.slane %v3174_v35, 4  ;;  %v5792_v35 = vld [vmem:[%s6037_s28 + $0x58] sm:$0xf] }
 0x1bc   : > { %v2240_v12 = vpop.f32.mrf.mxu3  ;;  %v2478_v5 = vpop.f32.mrf.mxu0 }
 0x1bd   : > { %v7050_v19 = vadd.f32 %v2473_v16, %v2240_v12  ;;  %3537 = vmatmul.bf16.gmra.mxu2 %v3433_v43  ;;  %v2558_v16 = vsel %vm6393_vm5, %v2556_v27, %v2557_v10  ;;  %v3986_v43 = vunpack.c.l.b16 %v3890_v46  ;;  %v3408_v27 = vunpack.c.l.b16 %v3159_v8  ;;  %v7077_v8 = vld [vmem:[%s6037_s28 + $0x6c] sm:$0xf] }
 0x1be   : > { %v2652_v29 = vunpack.c.l.b16 %v2558_v16  ;;  %v3163_v10 = vrot.slane %v3161_v18, 4  ;;  %v3896_v46 = vrot.slane %v5284_v63, 5  ;;  %v5211_v16 = vld [vmem:[%s6037_s28 + $0x50] sm:$0xe]  ;;  %v5470_v18 = vrot.slane %v5464_v4, 9 }
 0x1bf   : > { %v1204_v26 = vpop.f32.mrf.mxu1  ;;  %v4013_v30 = vpack.c.b16 %v3987_v40, %v3986_v43  ;;  %v3434_v40 = vpack.c.b16 %v3408_v27, %v3407_v3  ;;  %v5620_v27 = vld [vmem:[%s6037_s28 + $0x58] sm:$0xff] }
 0x1c0   : > { %v1551_v51 = vpop.f32.mrf.mxu2  ;;  %v2678_v28 = vpack.c.b16 %v2652_v29, %v2651_v1  ;;  %v3898_v49 = vrot.slane %v3896_v46, 4  ;;  %v3899_v1 = vrot.slane %v7077_v8, 5  ;;  %v3180_v29 = vshll.u32 %v7077_v8, 16 }
 0x1c1   : > { %3770 = vmatmul.bf16.gmra.mxu3 %v5619_v50  ;;  %v7066_v44 = vadd.f32 %v1551_v51, %v1203_v15  ;;  %v1205_v15 = vadd.f32 %v1204_v26, %v6540_v33  ;;  %v2561_v51 = vrot.slane %v5791_v48, 5  ;;  %v5218_v33 = vrot.slane %v5211_v16, 9 }
 0x1c2   : > { %v3177_v26 = vor.u32 %v3176_v9, %v3172_v7  ;;  %v3184_v16 = vshrl.u32 %v7077_v8, 16 }
 0x1c3   : > { %7988 = vst [vmem:[#allocation33_spill] sm:$0xff] %v7066_v44  ;;  %v2563_v2 = vrot.slane %v2561_v51, 4  ;;  %v7085_v44 = vld [vmem:[%s6037_s28 + $0x70] sm:$0xf]  ;;  %v2562_v9 = vsel %vm6393_vm5, %v5218_v33, %v2561_v51 }
 0x1c4   : > { %v2243_v11 = vpop.f32.mrf.mxu3  ;;  %v2481_v50 = vpop.f32.mrf.mxu0  ;;  %v3178_v4 = vrot.slane %v3177_v26, 4  ;;  %v3186_v26 = vrot.slane %v3184_v16, 4 }
 0x1c5   : > { %v7070_v12 = vadd.f32 %v2476_v60, %v2243_v11  ;;  %v3167_v60 = vor.u32 %v3166_v41, %v3163_v10  ;;  %v2564_v11 = vrot.slane %v5792_v35, 5  ;;  %v3897_v41 = vsel %vm6393_vm5, %v5470_v18, %v3896_v46 }
 0x1c6   : > { %v3194_v46 = vshrl.u32 %v7085_v44, 16 }
 0x1c7   : > { %v1207_v39 = vpop.f32.mrf.mxu1  ;;  %4121 = vmatmul.bf16.gmra.mxu0 %v4013_v30  ;;  %v3168_v10 = vrot.slane %v3167_v60, 4  ;;  %v3190_v60 = vshll.u32 %v7085_v44, 16 }
 0x1c8   : > { %v1553_v43 = vpop.f32.mrf.mxu2 }
 0x1c9   : > { %v7079_v63 = vadd.f32 %v1553_v43, %v1205_v15  ;;  %v3182_v15 = vrot.slane %v3180_v29, 5  ;;  %v3173_v8 = vsel %vm6064_vm2, %v3168_v10, %v3172_v7  ;;  %v3192_v29 = vrot.slane %v3190_v60, 5  ;;  %v5793_v10 = vld [vmem:[%s6037_s28 + $0x5c] sm:$0xf] }
 0x1ca   : > { %2786 = vmatmul.bf16.gmra.mxu1 %v2678_v28  ;;  %v3900_v28 = vsel %vm6393_vm5, %v3898_v49, %v3899_v1  ;;  %v3988_v49 = vunpack.c.l.b16 %v3897_v41  ;;  %v3902_v41 = vrot.slane %v7085_v44, 5 }
 0x1cb   : > { %7989 = vst [vmem:[#allocation34_spill] sm:$0xff] %v7079_v63  ;;  %v3989_v35 = vunpack.c.l.b16 %v3900_v28  ;;  %v3183_v33 = vsel %vm6064_vm2, %v3178_v4, %v3182_v15 }
 0x1cc   : > { %v2245_v48 = vpop.f32.mrf.mxu3  ;;  %v2483_v30 = vpop.f32.mrf.mxu0 }
 0x1cd   : > { %v7087_v3 = vadd.f32 %v2478_v5, %v2245_v48  ;;  %3542 = vmatmul.bf16.gmra.mxu2 %v3434_v40  ;;  %v1208_v5 = vadd.f32 %v1207_v39, %v6552_v17  ;;  %v2565_v40 = vsel %vm6393_vm5, %v2563_v2, %v2564_v11  ;;  %v2653_v17 = vunpack.c.l.b16 %v2562_v9 }
 0x1ce   : > { %v2654_v39 = vunpack.c.l.b16 %v2565_v40  ;;  %v3196_v2 = vrot.slane %v3194_v46, 4  ;;  %v4014_v63 = vpack.c.b16 %v3989_v35, %v3988_v49  ;;  %v2567_v9 = vrot.slane %v5793_v10, 5 }
 0x1cf   : > { %7990 = vst [vmem:[#allocation35_spill] sm:$0xff] %v7087_v3  ;;  %v1209_v43 = vpop.f32.mrf.mxu1  ;;  %v5314_v3 = vld [vmem:[%s6037_s28 + $0x74] sm:$0x1]  ;;  %v3187_v40 = vor.u32 %v3186_v26, %v3182_v15  ;;  %v3901_v49 = vrot.slane %v3899_v1, 4  ;;  %v3904_v35 = vrot.slane %v3902_v41, 4 }
 0x1d0   : > { %v1556_v18 = vpop.f32.mrf.mxu2  ;;  %v2679_v7 = vpack.c.b16 %v2654_v39, %v2653_v17  ;;  %v1210_v4 = vadd.f32 %v1209_v43, %v6571_v23  ;;  %v3197_v60 = vor.u32 %v3196_v2, %v3192_v29  ;;  %v3200_v46 = vshll.u32 %v5314_v3, 16  ;;  %v5794_v15 = vld [vmem:[%s6037_s28 + $0x60] sm:$0x1] }
 0x1d1   : > { %3775 = vmatmul.bf16.gmra.mxu3 %v5620_v27  ;;  %v7102_v51 = vadd.f32 %v1556_v18, %v1208_v5  ;;  %v3409_v5 = vunpack.c.l.b16 %v3173_v8  ;;  %v3410_v18 = vunpack.c.l.b16 %v3183_v33  ;;  %v3905_v44 = vrot.slane %v5314_v3, 5 }
 0x1d2   : > { %v2566_v17 = vrot.slane %v2564_v11, 4  ;;  %v2569_v39 = vrot.slane %v2567_v9, 4  ;;  %v2570_v33 = vrot.slane %v5794_v15, 5  ;;  %v3188_v23 = vrot.slane %v3187_v40, 4  ;;  %v7126_v11 = vld [vmem:[%s6037_s28 + $0x7c] sm:$0xf] }
 0x1d3   : > { %7991 = vst [vmem:[#allocation36_spill] sm:$0xff] %v7102_v51  ;;  %v3435_v8 = vpack.c.b16 %v3410_v18, %v3409_v5  ;;  %v3198_v43 = vrot.slane %v3197_v60, 4  ;;  %v3202_v26 = vrot.slane %v3200_v46, 5  ;;  %v3906_v1 = vsel %vm6393_vm5, %v3904_v35, %v3905_v44  ;;  %v5287_v5 = vld [vmem:[%s6037_s28 + $0x78] sm:$0xf] }
 0x1d4   : > { %v2248_v48 = vpop.f32.mrf.mxu3  ;;  %v2486_v28 = vpop.f32.mrf.mxu0  ;;  %v2568_v18 = vsel %vm6393_vm5, %v2566_v17, %v2567_v9  ;;  %v3991_v60 = vunpack.c.l.b16 %v3906_v1  ;;  %v3208_v35 = vshll.u32 %v5287_v5, 16  ;;  %v3214_v44 = vshll.u32 %v7126_v11, 16  ;;  %v7144_v1 = vld [vmem:[%s6037_s28 + $0x80] sm:$0xf] }
 0x1d5   : > { %v7110_v27 = vadd.f32 %v2481_v50, %v2248_v48  ;;  %v3218_v9 = vshrl.u32 %v7126_v11, 16 }
 0x1d7   : > { %v1212_v16 = vpop.f32.mrf.mxu1  ;;  %4126 = vmatmul.bf16.gmra.mxu0 %v4014_v63  ;;  %v3903_v63 = vsel %vm6393_vm5, %v3901_v49, %v3902_v41  ;;  %v3193_v41 = vsel %vm6064_vm2, %v3188_v23, %v3192_v29  ;;  %v3205_v49 = vshrl.u32 %v5287_v5, 16  ;;  %v2655_v29 = vunpack.c.l.b16 %v2568_v18  ;;  %v5465_v18 = vld [vmem:[%s6037_s28 + $0x78] sm:$0xe] }
 0x1d8   : > { %v1558_v51 = vpop.f32.mrf.mxu2  ;;  %v1213_v10 = vadd.f32 %v1212_v16, %v6594_v58  ;;  %v3411_v16 = vunpack.c.l.b16 %v3193_v41  ;;  %v3210_v23 = vrot.slane %v3208_v35, 5  ;;  %v3224_v35 = vshll.u32 %v7144_v1, 16 }
 0x1d9   : > { %v7114_v50 = vadd.f32 %v1558_v51, %v1210_v4  ;;  %v5621_v51 = vld [vmem:[%s6037_s28 + $0x64] sm:$0xff]  ;;  %v3990_v4 = vunpack.c.l.b16 %v3903_v63 }
 0x1da   : > { %2791 = vmatmul.bf16.gmra.mxu1 %v2679_v7  ;;  %v2571_v7 = vsel %vm6393_vm5, %v2569_v39, %v2570_v33  ;;  %v3207_v33 = vrot.slane %v3205_v49, 4 }
 0x1db   : > { %v2656_v58 = vunpack.c.l.b16 %v2571_v7  ;;  %v4015_v39 = vpack.c.b16 %v3991_v60, %v3990_v4 }
 0x1dc   : > { %v2250_v2 = vpop.f32.mrf.mxu3  ;;  %v2488_v48 = vpop.f32.mrf.mxu0 }
 0x1dd   : > { %v7121_v3 = vadd.f32 %v2483_v30, %v2250_v2  ;;  %3547 = vmatmul.bf16.gmra.mxu2 %v3435_v8  ;;  %v3203_v30 = vsel %vm6064_vm2, %v3198_v43, %v3202_v26  ;;  %v3216_v43 = vrot.slane %v3214_v44, 5  ;;  %v3220_v26 = vrot.slane %v3218_v9, 4 }
 0x1de   : > { %v3412_v17 = vunpack.c.l.b16 %v3203_v30  ;;  %v2680_v5 = vpack.c.b16 %v2656_v58, %v2655_v29  ;;  %v5795_v30 = vld [vmem:[%s6037_s28 + $0x68] sm:$0xf]  ;;  %v5796_v58 = vld [vmem:[%s6037_s28 + $0x6c] sm:$0xf] }
 0x1df   : > { %v1214_v40 = vpop.f32.mrf.mxu1  ;;  %v2574_v4 = vrot.slane %v5795_v30, 5  ;;  %v3221_v49 = vor.u32 %v3220_v26, %v3216_v43 }
 0x1e0   : > { %v1561_v46 = vpop.f32.mrf.mxu2  ;;  %v1215_v7 = vadd.f32 %v1214_v40, %v6615_v22  ;;  %v3912_v22 = vrot.slane %v7144_v1, 5 }
 0x1e1   : > { %3780 = vmatmul.bf16.gmra.mxu3 %v5621_v51  ;;  %v7139_v8 = vadd.f32 %v1561_v46, %v1213_v10  ;;  %v3909_v51 = vrot.slane %v7126_v11, 5  ;;  %v5212_v10 = vld [vmem:[%s6037_s28 + $0x64] sm:$0xe]  ;;  %v3436_v46 = vpack.c.b16 %v3412_v17, %v3411_v16  ;;  %v5471_v11 = vrot.slane %v5465_v18, 9 }
 0x1e2   : > { %v5219_v40 = vrot.slane %v5212_v10, 9  ;;  %v2576_v29 = vrot.slane %v2574_v4, 4  ;;  %v3222_v17 = vrot.slane %v3221_v49, 4 }
 0x1e3   : > { %7992 = vst [vmem:[#allocation37_spill] sm:$0xff] %v7139_v8  ;;  %v3911_v9 = vrot.slane %v3909_v51, 4  ;;  %v3910_v18 = vsel %vm6393_vm5, %v5471_v11, %v3909_v51  ;;  %v3027_v8 = vld [vmem:[%s6786_s9 + $0x24] sm:$0x1] }
 0x1e4   : > { %v2253_v15 = vpop.f32.mrf.mxu3  ;;  %v2491_v63 = vpop.f32.mrf.mxu0  ;;  %v2575_v10 = vsel %vm6393_vm5, %v5219_v40, %v2574_v4  ;;  %v3992_v51 = vunpack.c.l.b16 %v3910_v18 }
 0x1e5   : > { %v7141_v2 = vadd.f32 %v2486_v28, %v2253_v15  ;;  %v3211_v28 = vor.u32 %v3210_v23, %v3207_v33  ;;  %v2577_v15 = vrot.slane %v5796_v58, 5  ;;  %v5622_v23 = vld [vmem:[%s6037_s28 + $0x6c] sm:$0xff] }
 0x1e7   : > { %v1217_v41 = vpop.f32.mrf.mxu1  ;;  %4131 = vmatmul.bf16.gmra.mxu0 %v4015_v39  ;;  %v3212_v16 = vrot.slane %v3211_v28, 4  ;;  %v7157_v39 = vld [vmem:[%s6037_s28 + $0x84] sm:$0xf] }
 0x1e8   : > { %v1563_v60 = vpop.f32.mrf.mxu2  ;;  %v1218_v28 = vadd.f32 %v1217_v41, %v6631_v6  ;;  %v2657_v41 = vunpack.c.l.b16 %v2575_v10 }
 0x1e9   : > { %v7152_v44 = vadd.f32 %v1563_v60, %v1215_v7  ;;  %v3226_v7 = vrot.slane %v3224_v35, 5  ;;  %v3228_v60 = vshrl.u32 %v7144_v1, 16  ;;  %v3238_v35 = vshrl.u32 %v7157_v39, 16 }
 0x1ea   : > { %2796 = vmatmul.bf16.gmra.mxu1 %v2680_v5  ;;  %v3913_v5 = vsel %vm6393_vm5, %v3911_v9, %v3912_v22  ;;  %v3217_v1 = vsel %vm6064_vm2, %v3212_v16, %v3216_v43  ;;  %v3915_v43 = vrot.slane %v7157_v39, 5 }
 0x1eb   : > { %7993 = vst [vmem:[#allocation38_spill] sm:$0xff] %v7152_v44  ;;  %v3993_v11 = vunpack.c.l.b16 %v3913_v5  ;;  %v3227_v6 = vsel %vm6064_vm2, %v3222_v17, %v3226_v7  ;;  %v3230_v40 = vrot.slane %v3228_v60, 4  ;;  %v5797_v17 = vld [vmem:[%s6037_s28 + $0x70] sm:$0xf] }
 0x1ec   : > { %v2255_v30 = vpop.f32.mrf.mxu3  ;;  %v2493_v26 = vpop.f32.mrf.mxu0  ;;  %v3414_v18 = vunpack.c.l.b16 %v3227_v6  ;;  %v2580_v10 = vrot.slane %v5797_v17, 5  ;;  %v7213_v17 = vld [vmem:[%s6037_s28 + $0x90] sm:$0xf] }
 0x1ed   : > { %v7159_v33 = vadd.f32 %v2488_v48, %v2255_v30  ;;  %3552 = vmatmul.bf16.gmra.mxu2 %v3436_v46  ;;  %v2578_v48 = vsel %vm6393_vm5, %v2576_v29, %v2577_v15  ;;  %v3234_v46 = vshll.u32 %v7157_v39, 16  ;;  %v3240_v30 = vrot.slane %v3238_v35, 4 }
 0x1ee   : > { %v2658_v4 = vunpack.c.l.b16 %v2578_v48  ;;  %v4016_v5 = vpack.c.b16 %v3993_v11, %v3992_v51  ;;  %v3231_v48 = vor.u32 %v3230_v40, %v3226_v7  ;;  %v3914_v11 = vrot.slane %v3912_v22, 4 }
 0x1ef   : > { %7994 = vst [vmem:[#allocation39_spill] sm:$0xff] %v7159_v33  ;;  %v1219_v49 = vpop.f32.mrf.mxu1  ;;  %v7180_v29 = vrot.slane %v3234_v46, 5  ;;  %v3413_v33 = vunpack.c.l.b16 %v3217_v1  ;;  %v2579_v39 = vrot.slane %v2577_v15, 4  ;;  %v3917_v7 = vrot.slane %v3915_v43, 4 }
 0x1f0   : > { %v1566_v58 = vpop.f32.mrf.mxu2  ;;  %v2681_v16 = vpack.c.b16 %v2658_v4, %v2657_v41  ;;  %v1220_v60 = vadd.f32 %v1219_v49, %v6644_v56  ;;  %v2582_v41 = vrot.slane %v2580_v10, 4  ;;  %v3232_v4 = vrot.slane %v3231_v48, 4 }
 0x1f1   : > { %3785 = vmatmul.bf16.gmra.mxu3 %v5622_v23  ;;  %v7174_v9 = vadd.f32 %v1566_v58, %v1218_v28  ;;  %v5315_v23 = vld [vmem:[%s6037_s28 + $0x88] sm:$0x1]  ;;  %v3241_v35 = vor.u32 %v3240_v30, %v7180_v29  ;;  %v3916_v15 = vsel %vm6393_vm5, %v3914_v11, %v3915_v43  ;;  %v2581_v48 = vsel %vm6393_vm5, %v2579_v39, %v2580_v10 }
 0x1f2   : > { %v3244_v1 = vshll.u32 %v5315_v23, 16  ;;  %v3918_v56 = vrot.slane %v5315_v23, 5  ;;  %v5623_v23 = vld [vmem:[%s6037_s28 + $0x78] sm:$0xff]  ;;  %v3258_v10 = vshll.u32 %v7213_v17, 16  ;;  %v3262_v39 = vshrl.u32 %v7213_v17, 16 }
 0x1f3   : > { %7995 = vst [vmem:[#allocation40_spill] sm:$0xff] %v7174_v9  ;;  %v3242_v22 = vrot.slane %v3241_v35, 4  ;;  %v3994_v35 = vunpack.c.l.b16 %v3916_v15 }
 0x1f4   : > { %v2258_v44 = vpop.f32.mrf.mxu3  ;;  %v7185_v58 = vpop.f32.mrf.mxu0  ;;  %v3246_v40 = vrot.slane %v3244_v1, 5  ;;  %v3264_v15 = vrot.slane %v3262_v39, 4  ;;  %v8000_v39 = vld [vmem:[#allocation10_spill] sm:$0xff] }
 0x1f5   : > { %v7183_v28 = vadd.f32 %v2491_v63, %v2258_v44  ;;  %v3437_v44 = vpack.c.b16 %v3414_v18, %v3413_v33  ;;  %v5291_v18 = vld [vmem:[%s6037_s28 + $0x8c] sm:$0xf] }
 0x1f6   : > { %v3249_v1 = vshrl.u32 %v5291_v18, 16 }
 0x1f7   : > { %7996 = vst [vmem:[#allocation41_spill] sm:$0xff] %v7183_v28  ;;  %v2762_v46 = vpop.f32.mrf.mxu1  ;;  %4136 = vmatmul.bf16.gmra.mxu0 %v4016_v5 }
 0x1f8   : > { %v1568_v51 = vpop.f32.mrf.mxu2  ;;  %v2842_v63 = vadd.f32 %v2762_v46, %v6667_v47  ;;  %v5798_v47 = vld [vmem:[%s6037_s28 + $0x74] sm:$0x1]  ;;  %v3247_v46 = vsel %vm6064_vm2, %v3242_v22, %v3246_v40 }
 0x1f9   : > { %v7192_v6 = vadd.f32 %v1568_v51, %v1220_v60  ;;  %v2583_v33 = vrot.slane %v5798_v47, 5  ;;  %v3252_v51 = vshll.u32 %v5291_v18, 16 }
 0x1fa   : > { %v7196_v49 = vadd.f32 %v2842_v63, %v6648_v20  ;;  %2801 = vmatmul.bf16.gmra.mxu1 %v2681_v16  ;;  %v3919_v16 = vsel %vm6393_vm5, %v3917_v7, %v3918_v56  ;;  %v2659_v56 = vunpack.c.l.b16 %v2581_v48  ;;  %v7239_v48 = vld [vmem:[%s6037_s28 + $0x94] sm:$0xf] }
 0x1fb   : > { %7997 = vst [vmem:[#allocation42_spill] sm:$0xff] %v7192_v6  ;;  %v2584_v43 = vsel %vm6393_vm5, %v2582_v41, %v2583_v33  ;;  %v3995_v11 = vunpack.c.l.b16 %v3919_v16  ;;  %v3416_v33 = vunpack.c.l.b16 %v3247_v46  ;;  %v5213_v16 = vld [vmem:[%s6037_s28 + $0x78] sm:$0xe] }
 0x1fc   : > { %v2260_v30 = vpop.f32.mrf.mxu3  ;;  %v7208_v20 = vpop.f32.mrf.mxu0  ;;  %v2660_v41 = vunpack.c.l.b16 %v2584_v43  ;;  %v3922_v43 = vrot.slane %v7213_v17, 5  ;;  %v5220_v17 = vrot.slane %v5213_v16, 9  ;;  %v7269_v16 = vld [vmem:[%s6037_s28 + $0x98] sm:$0xf] }
 0x1fd   : > { %v7202_v5 = vadd.f32 %v2493_v26, %v2260_v30  ;;  %3557 = vmatmul.bf16.gmra.mxu2 %v3437_v44  ;;  %v3237_v26 = vsel %vm6064_vm2, %v3232_v4, %v7180_v29  ;;  %v7999_v29 = vld [vmem:[#allocation8_spill] sm:$0xff]  ;;  %v3254_v4 = vrot.slane %v3252_v51, 5  ;;  %v4017_v40 = vpack.c.b16 %v3995_v11, %v3994_v35  ;;  %v7249_v35 = vld [vmem:[%s7946_s3] ss:$0 sm:$0xff] }
 0x1fe   : > { %v3415_v47 = vunpack.c.l.b16 %v3237_v26  ;;  %v7233_v30 = vrot.slane %v3258_v10, 5  ;;  %v2682_v26 = vpack.c.b16 %v2660_v41, %v2659_v56  ;;  %v3268_v41 = vshll.u32 %v7239_v48, 16 }
 0x1ff   : > { %7998 = vst [vmem:[#allocation43_spill] sm:$0xff] %v7202_v5  ;;  %v2764_v60 = vpop.f32.mrf.mxu1 }
 0x200   : > { %v3518_v63 = vpop.f32.mrf.mxu2  ;;  %v2843_v44 = vadd.f32 %v2764_v60, %v6682_v34  ;;  %v3251_v34 = vrot.slane %v3249_v1, 4  ;;  %v5799_v60 = vld [vmem:[%s6037_s28 + $0x7c] sm:$0xf]  ;;  %v5466_v1 = vld [vmem:[%s6037_s28 + $0x8c] sm:$0xe]  ;;  %v3265_v56 = vor.u32 %v3264_v15, %v7233_v30 }
 0x201   : > { %3790 = vmatmul.bf16.gmra.mxu3 %v5623_v23  ;;  %v2587_v46 = vrot.slane %v5799_v60, 5  ;;  %v7951_v60 = vrot.slane %v7239_v48, 5 }
 0x202   : > { %v7229_v7 = vadd.f32 %v2843_v44, %v7999_v29  ;;  %v3438_v44 = vpack.c.b16 %v3416_v33, %v3415_v47  ;;  %v3255_v11 = vor.u32 %v3254_v4, %v3251_v34  ;;  %v8001_v47 = vld [vmem:[#allocation9_spill] sm:$0xff]  ;;  %v5800_v4 = vld [vmem:[%s6037_s28 + $0x80] sm:$0xf] }
 0x203   : > { %v2589_v34 = vrot.slane %v2587_v46, 4 }
 0x204   : > { %v3751_v22 = vpop.f32.mrf.mxu3  ;;  %v7235_v23 = vpop.f32.mrf.mxu0  ;;  %v3256_v15 = vrot.slane %v3255_v11, 4 }
 0x205   : > { %v3752_v18 = vadd.f32 %v3751_v22, %v3518_v63  ;;  %v5472_v22 = vrot.slane %v5466_v1, 9 }
 0x207   : > { %v4177_v51 = vadd.f32 %v7185_v58, %v3752_v18  ;;  %v2767_v63 = vpop.f32.mrf.mxu1  ;;  %4141 = vmatmul.bf16.gmra.mxu0 %v4017_v40  ;;  %v3924_v18 = vrot.slane %v3922_v43, 4  ;;  %v2590_v40 = vrot.slane %v5800_v4, 5 }
 0x208   : > { %v3520_v10 = vpop.f32.mrf.mxu2  ;;  %v2844_v29 = vadd.f32 %v2767_v63, %v8000_v39  ;;  %v3266_v63 = vrot.slane %v3265_v56, 4  ;;  %v3270_v39 = vrot.slane %v3268_v41, 5  ;;  %v3278_v56 = vshll.u32 %v7269_v16, 16 }
 0x209   : > { %v4241_v58 = vadd.f32 %v4177_v51, %v7196_v49  ;;  %v2588_v51 = vsel %vm6393_vm5, %v5220_v17, %v2587_v46  ;;  %v3926_v11 = vsel %vm6393_vm5, %v3924_v18, %v7951_v60  ;;  %v2591_v46 = vsel %vm6393_vm5, %v2589_v34, %v2590_v40 }
 0x20a   : > { %v7262_v33 = vadd.f32 %v2844_v29, %v8001_v47  ;;  %2806 = vmatmul.bf16.gmra.mxu1 %v2682_v26  ;;  %v5624_v26 = vld [vmem:[%s6037_s28 + $0x80] sm:$0xff]  ;;  %v3272_v17 = vshrl.u32 %v7239_v48, 16  ;;  %v3271_v34 = vsel %vm6064_vm2, %v3266_v63, %v3270_v39 }
 0x20b   : > { %v7266_v49 = vadd.f32 %v7249_v35, %v4241_v58  ;;  %v3923_v58 = vsel %vm6393_vm5, %v5472_v22, %v3922_v43  ;;  %v3261_v43 = vsel %vm6064_vm2, %v3256_v15, %v7233_v30  ;;  %v7301_v15 = vrot.slane %v3278_v56, 5 }
 0x20c   : > { %v3753_v1 = vpop.f32.mrf.mxu3  ;;  %v7277_v47 = vpop.f32.mrf.mxu0  ;;  %v3996_v4 = vunpack.c.l.b16 %v3923_v58  ;;  %v3274_v30 = vrot.slane %v3272_v17, 4  ;;  %v3417_v63 = vunpack.c.l.b16 %v3261_v43  ;;  %v3418_v58 = vunpack.c.l.b16 %v3271_v34 }
 0x20d   : > { %4374 = vst.msk [vmem:[%s7259_s16] sm:$0xff] %vm4373_vm6, %v7266_v49  ;;  %v3754_v29 = vadd.f32 %v3753_v1, %v3520_v10  ;;  %3562 = vmatmul.bf16.gmra.mxu2 %v3438_v44  ;;  %v3282_v44 = vshrl.u32 %v7269_v16, 16  ;;  %v3997_v1 = vunpack.c.l.b16 %v3926_v11 }
 0x20e   : > { %v3275_v17 = vor.u32 %v3274_v30, %v3270_v39 }
 0x20f   : > { %v4178_v10 = vadd.f32 %v7208_v20, %v3754_v29  ;;  %v2769_v41 = vpop.f32.mrf.mxu1  ;;  %v2661_v20 = vunpack.c.l.b16 %v2588_v51  ;;  %v2662_v29 = vunpack.c.l.b16 %v2591_v46  ;;  %v3284_v5 = vrot.slane %v3282_v44, 4 }
 0x210   : > { %v3523_v22 = vpop.f32.mrf.mxu2  ;;  %v2845_v18 = vadd.f32 %v2769_v41, %v6706_v0  ;;  %v5316_v41 = vld [vmem:[%s6037_s28 + $0x9c] sm:$0x1]  ;;  %v4018_v9 = vpack.c.b16 %v3997_v1, %v3996_v4  ;;  %v2592_v1 = vrot.slane %v2590_v40, 4 }
 0x211   : > { %v4242_v60 = vadd.f32 %v4178_v10, %v7229_v7  ;;  %3795 = vmatmul.bf16.gmra.mxu3 %v5624_v26  ;;  %v5801_v7 = vld [vmem:[%s6037_s28 + $0x84] sm:$0xf]  ;;  %v3928_v26 = vrot.slane %v7269_v16, 5  ;;  %v2683_v46 = vpack.c.b16 %v2662_v29, %v2661_v20  ;;  %v3288_v56 = vshll.u32 %v5316_v41, 16  ;;  %v5802_v20 = vld [vmem:[%s6037_s28 + $0x88] sm:$0x1] }
 0x212   : > { %v7299_v6 = vadd.f32 %v2845_v18, %v6702_v57  ;;  %v2593_v10 = vrot.slane %v5801_v7, 5  ;;  %v3439_v18 = vpack.c.b16 %v3418_v58, %v3417_v63  ;;  %v2995_v58 = vld [vmem:[%s6786_s9] sm:$0xf]  ;;  %v5625_v7 = vld [vmem:[%s6037_s28 + $0x8c] sm:$0xff] }
 0x213   : > { %v7304_v0 = vadd.f32 %v7249_v35, %v4242_v60  ;;  %v3285_v60 = vor.u32 %v3284_v5, %v7301_v15  ;;  %v2596_v5 = vrot.slane %v5802_v20, 5  ;;  %v3930_v29 = vrot.slane %v3928_v26, 4 }
 0x214   : > { %v3756_v11 = vpop.f32.mrf.mxu3  ;;  %v7311_v57 = vpop.f32.mrf.mxu0  ;;  %v3290_v40 = vrot.slane %v3288_v56, 5 }
 0x215   : > { %4375 = vst.msk [vmem:[%s7259_s16 + $0x8] sm:$0xff] %vm4373_vm6, %v7304_v0  ;;  %v3757_v51 = vadd.f32 %v3756_v11, %v3523_v22  ;;  %v2595_v22 = vrot.slane %v2593_v10, 4  ;;  %v8002_v11 = vrot.slane %v7239_v48, 5 }
 0x217   : > { %v4179_v44 = vadd.f32 %v7235_v23, %v3757_v51  ;;  %v2772_v43 = vpop.f32.mrf.mxu1  ;;  %4146 = vmatmul.bf16.gmra.mxu0 %v4018_v9  ;;  %v3927_v16 = vrot.slane %v8002_v11, 4  ;;  %v3931_v23 = vrot.slane %v5316_v41, 5  ;;  %v3286_v9 = vrot.slane %v3285_v60, 4 }
 0x218   : > { %v3525_v34 = vpop.f32.mrf.mxu2  ;;  %v2846_v4 = vadd.f32 %v2772_v43, %v6729_v42  ;;  %v3276_v42 = vrot.slane %v3275_v17, 4  ;;  %v2594_v17 = vsel %vm6393_vm5, %v2592_v1, %v2593_v10 }
 0x219   : > { %v4243_v39 = vadd.f32 %v4179_v44, %v7262_v33  ;;  %v3929_v33 = vsel %vm6393_vm5, %v3927_v16, %v3928_v26  ;;  %v3932_v51 = vsel %vm6393_vm5, %v3930_v29, %v3931_v23  ;;  %v2597_v26 = vsel %vm6393_vm5, %v2595_v22, %v2596_v5 }
 0x21a   : > { %v7322_v30 = vadd.f32 %v2846_v4, %v6711_v37  ;;  %2811 = vmatmul.bf16.gmra.mxu1 %v2683_v46  ;;  %v7339_v46 = vld [vmem:[%s6786_s9 + $0x4] sm:$0xf]  ;;  %v3281_v60 = vsel %vm6064_vm2, %v3276_v42, %v7301_v15  ;;  %v3291_v56 = vsel %vm6064_vm2, %v3286_v9, %v3290_v40  ;;  %v3296_v4 = vshll.u32 %v2995_v58, 16 }
 0x21b   : > { %v7325_v63 = vadd.f32 %v7249_v35, %v4243_v39  ;;  %v3999_v10 = vunpack.c.l.b16 %v3932_v51  ;;  %v3302_v1 = vshll.u32 %v7339_v46, 16  ;;  %v3306_v22 = vshrl.u32 %v7339_v46, 16 }
 0x21c   : > { %v3758_v48 = vpop.f32.mrf.mxu3  ;;  %v7334_v37 = vpop.f32.mrf.mxu0  ;;  %v2664_v20 = vunpack.c.l.b16 %v2597_v26  ;;  %v3419_v5 = vunpack.c.l.b16 %v3281_v60  ;;  %v3420_v29 = vunpack.c.l.b16 %v3291_v56  ;;  %v3298_v42 = vrot.slane %v3296_v4, 5  ;;  %v3837_v60 = vld [vmem:[%s6786_s9] sm:$0xe] }
 0x21d   : > { %4376 = vst.msk [vmem:[%s7259_s16 + $0x10] sm:$0xff] %vm4373_vm6, %v7325_v63  ;;  %v3759_v41 = vadd.f32 %v3758_v48, %v3525_v34  ;;  %3567 = vmatmul.bf16.gmra.mxu2 %v3439_v18  ;;  %v3998_v18 = vunpack.c.l.b16 %v3929_v33  ;;  %v3293_v34 = vshrl.u32 %v2995_v58, 16  ;;  %v3308_v48 = vrot.slane %v3306_v22, 4  ;;  %v5214_v58 = vld [vmem:[%s6037_s28 + $0x8c] sm:$0xe] }
 0x21f   : > { %v4180_v44 = vadd.f32 %v7277_v47, %v3759_v41  ;;  %v2774_v43 = vpop.f32.mrf.mxu1  ;;  %v2663_v47 = vunpack.c.l.b16 %v2594_v17  ;;  %v3295_v23 = vrot.slane %v3293_v34, 4  ;;  %v4019_v40 = vpack.c.b16 %v3999_v10, %v3998_v18  ;;  %v7370_v41 = vld [vmem:[%s6786_s9 + $0x8] sm:$0xf]  ;;  %v5803_v17 = vld [vmem:[%s6037_s28 + $0x90] sm:$0xf] }
 0x220   : > { %v3528_v11 = vpop.f32.mrf.mxu2  ;;  %v2847_v16 = vadd.f32 %v2774_v43, %v6749_v14  ;;  %v2600_v26 = vrot.slane %v5803_v17, 5  ;;  %v3440_v43 = vpack.c.b16 %v3420_v29, %v3419_v5 }
 0x221   : > { %v4244_v15 = vadd.f32 %v4180_v44, %v7299_v6  ;;  %3800 = vmatmul.bf16.gmra.mxu3 %v5625_v7  ;;  %v7361_v6 = vrot.slane %v3302_v1, 5  ;;  %v3935_v7 = vrot.slane %v7339_v46, 5  ;;  %v2684_v51 = vpack.c.b16 %v2664_v20, %v2663_v47  ;;  %v5804_v20 = vld [vmem:[%s6037_s28 + $0x94] sm:$0xf] }
 0x222   : > { %v7356_v39 = vadd.f32 %v2847_v16, %v6740_v53  ;;  %v3299_v18 = vor.u32 %v3298_v42, %v3295_v23  ;;  %v3312_v46 = vshll.u32 %v7370_v41, 16  ;;  %v5473_v1 = vrot.slane %v3837_v60, 9  ;;  %v7389_v42 = vld [vmem:[%s6786_s9 + $0xc] sm:$0xf] }
 0x223   : > { %v7359_v14 = vadd.f32 %v7249_v35, %v4244_v15  ;;  %v3309_v16 = vor.u32 %v3308_v48, %v7361_v6  ;;  %v3937_v22 = vrot.slane %v3935_v7, 4  ;;  %v8003_v15 = vld [vmem:[#allocation11_spill] sm:$0xff]  ;;  %v2603_v5 = vrot.slane %v5804_v20, 5 }
 0x224   : > { %v3761_v9 = vpop.f32.mrf.mxu3  ;;  %v7366_v33 = vpop.f32.mrf.mxu0  ;;  %v3300_v23 = vrot.slane %v3299_v18, 4  ;;  %v3314_v48 = vrot.slane %v3312_v46, 5  ;;  %v3936_v17 = vsel %vm6393_vm5, %v5473_v1, %v3935_v7  ;;  %v3326_v18 = vshrl.u32 %v7389_v42, 16 }
 0x225   : > { %4377 = vst.msk [vmem:[%s7259_s16 + $0x18] sm:$0xff] %vm4373_vm6, %v7359_v14  ;;  %v3762_v53 = vadd.f32 %v3761_v9, %v3528_v11  ;;  %v5221_v11 = vrot.slane %v5214_v58, 9  ;;  %v5626_v58 = vld [vmem:[%s6037_s28 + $0x94] sm:$0xff] }
 0x227   : > { %v4181_v56 = vadd.f32 %v7311_v57, %v3762_v53  ;;  %v2777_v44 = vpop.f32.mrf.mxu1  ;;  %4151 = vmatmul.bf16.gmra.mxu0 %v4019_v40  ;;  %v3938_v57 = vrot.slane %v7370_v41, 5  ;;  %v2601_v9 = vsel %vm6393_vm5, %v5221_v11, %v2600_v26  ;;  %v3310_v40 = vrot.slane %v3309_v16, 4  ;;  %v8004_v11 = vld [vmem:[#allocation13_spill] sm:$0xff] }
 0x228   : > { %v3530_v34 = vpop.f32.mrf.mxu2  ;;  %v2848_v4 = vadd.f32 %v2777_v44, %v6767_v32  ;;  %v2602_v32 = vrot.slane %v2600_v26, 4  ;;  %v3316_v26 = vshrl.u32 %v7370_v41, 16  ;;  %v3322_v44 = vshll.u32 %v7389_v42, 16 }
 0x229   : > { %v4245_v10 = vadd.f32 %v4181_v56, %v7322_v30  ;;  %v3939_v60 = vsel %vm6393_vm5, %v3937_v22, %v3938_v57  ;;  %v3315_v46 = vsel %vm6064_vm2, %v3310_v40, %v3314_v48  ;;  %v2665_v22 = vunpack.c.l.b16 %v2601_v9 }
 0x22a   : > { %v7382_v47 = vadd.f32 %v2848_v4, %v8003_v15  ;;  %2816 = vmatmul.bf16.gmra.mxu1 %v2684_v51  ;;  %v2604_v56 = vsel %vm6393_vm5, %v2602_v32, %v2603_v5  ;;  %v3305_v4 = vsel %vm6064_vm2, %v3300_v23, %v7361_v6  ;;  %v4001_v41 = vunpack.c.l.b16 %v3939_v60  ;;  %v8005_v15 = vld [vmem:[#allocation12_spill] sm:$0xff] }
 0x22b   : > { %v7386_v29 = vadd.f32 %v7249_v35, %v4245_v10  ;;  %v4000_v10 = vunpack.c.l.b16 %v3936_v17  ;;  %v3318_v6 = vrot.slane %v3316_v26, 4  ;;  %v7419_v20 = vrot.slane %v3322_v44, 5  ;;  %v3026_v17 = vld [vmem:[%s6786_s9 + $0x10] sm:$0x1] }
 0x22c   : > { %v3763_v30 = vpop.f32.mrf.mxu3  ;;  %v7397_v51 = vpop.f32.mrf.mxu0  ;;  %v3328_v23 = vrot.slane %v3326_v18, 4  ;;  %v3421_v40 = vunpack.c.l.b16 %v3305_v4  ;;  %v3332_v4 = vshll.u32 %v3026_v17, 16 }
 0x22d   : > { %4378 = vst.msk [vmem:[%s7259_s16 + $0x20] sm:$0xff] %vm4373_vm6, %v7386_v29  ;;  %v3764_v53 = vadd.f32 %v3763_v30, %v3530_v34  ;;  %3572 = vmatmul.bf16.gmra.mxu2 %v3440_v43  ;;  %v3319_v18 = vor.u32 %v3318_v6, %v3314_v48  ;;  %v5806_v6 = vld [vmem:[%s6037_s28 + $0x9c] sm:$0x1] }
 0x22f   : > { %v4182_v43 = vadd.f32 %v7334_v37, %v3764_v53  ;;  %v2779_v34 = vpop.f32.mrf.mxu1  ;;  %v2666_v37 = vunpack.c.l.b16 %v2604_v56  ;;  %v3422_v53 = vunpack.c.l.b16 %v3315_v46  ;;  %v5805_v56 = vld [vmem:[%s6037_s28 + $0x98] sm:$0xf] }
 0x230   : > { %v3533_v7 = vpop.f32.mrf.mxu2  ;;  %v2849_v16 = vadd.f32 %v2779_v34, %v8004_v11  ;;  %v4020_v34 = vpack.c.b16 %v4001_v41, %v4000_v10  ;;  %v2606_v26 = vrot.slane %v5805_v56, 5 }
 0x231   : > { %v4246_v1 = vadd.f32 %v4182_v43, %v7356_v39  ;;  %3805 = vmatmul.bf16.gmra.mxu3 %v5626_v58  ;;  %v3941_v39 = vrot.slane %v7389_v42, 5  ;;  %v2685_v44 = vpack.c.b16 %v2666_v37, %v2665_v22  ;;  %v3329_v43 = vor.u32 %v3328_v23, %v7419_v20  ;;  %v8006_v42 = vld [vmem:[#allocation15_spill] sm:$0xff] }
 0x232   : > { %v7417_v32 = vadd.f32 %v2849_v16, %v8005_v15  ;;  %v3441_v46 = vpack.c.b16 %v3422_v53, %v3421_v40  ;;  %v3944_v15 = vrot.slane %v3026_v17, 5  ;;  %v2605_v37 = vrot.slane %v2603_v5, 4 }
 0x233   : > { %v7422_v30 = vadd.f32 %v7249_v35, %v4246_v1  ;;  %v3940_v1 = vrot.slane %v3938_v57, 4  ;;  %v2608_v48 = vrot.slane %v2606_v26, 4  ;;  %v2609_v23 = vrot.slane %v5806_v6, 5  ;;  %v8009_v6 = vld [vmem:[#allocation16_spill] sm:$0xff] }
 0x234   : > { %v3766_v60 = vpop.f32.mrf.mxu3  ;;  %v7429_v58 = vpop.f32.mrf.mxu0  ;;  %v3320_v40 = vrot.slane %v3319_v18, 4  ;;  %v3330_v53 = vrot.slane %v3329_v43, 4  ;;  %v7455_v43 = vld [vmem:[%s6786_s9 + $0x18] sm:$0xf] }
 0x235   : > { %4379 = vst.msk [vmem:[%s7259_s16 + $0x28] sm:$0xff] %vm4373_vm6, %v7422_v30  ;;  %v3767_v9 = vadd.f32 %v3766_v60, %v3533_v7  ;;  %v3943_v7 = vrot.slane %v3941_v39, 4  ;;  %v8007_v60 = vld [vmem:[#allocation14_spill] sm:$0xff] }
 0x237   : > { %v4183_v11 = vadd.f32 %v7366_v33, %v3767_v9  ;;  %v2782_v16 = vpop.f32.mrf.mxu1  ;;  %4156 = vmatmul.bf16.gmra.mxu0 %v4020_v34  ;;  %v3334_v34 = vrot.slane %v3332_v4, 5  ;;  %v3945_v5 = vsel %vm6393_vm5, %v3943_v7, %v3944_v15  ;;  %v2999_v9 = vld [vmem:[%s6786_s9 + $0x14] sm:$0xf]  ;;  %v2607_v4 = vsel %vm6393_vm5, %v2605_v37, %v2606_v26  ;;  %v8008_v15 = vld [vmem:[#allocation17_spill] sm:$0xff] }
 0x238   : > { %v3535_v10 = vpop.f32.mrf.mxu2  ;;  %v2850_v41 = vadd.f32 %v2782_v16, %v8006_v42  ;;  %v3340_v26 = vshll.u32 %v2999_v9, 16  ;;  %v3346_v37 = vshll.u32 %v7455_v43, 16 }
 0x239   : > { %v4247_v22 = vadd.f32 %v4183_v11, %v7382_v47  ;;  %v3942_v47 = vsel %vm6393_vm5, %v3940_v1, %v3941_v39  ;;  %v2610_v39 = vsel %vm6393_vm5, %v2608_v48, %v2609_v23  ;;  %v3325_v11 = vsel %vm6064_vm2, %v3320_v40, %v7419_v20 }
 0x23a   : > { %v7438_v33 = vadd.f32 %v2850_v41, %v8007_v60  ;;  %2821 = vmatmul.bf16.gmra.mxu1 %v2685_v44  ;;  %v5627_v44 = vld [vmem:[%s6786_s9] sm:$0xff]  ;;  %v3335_v16 = vsel %vm6064_vm2, %v3330_v53, %v3334_v34  ;;  %v4002_v42 = vunpack.c.l.b16 %v3942_v47  ;;  %v4003_v41 = vunpack.c.l.b16 %v3945_v5 }
 0x23b   : > { %v7441_v57 = vadd.f32 %v7249_v35, %v4247_v22  ;;  %v3337_v1 = vshrl.u32 %v2999_v9, 16  ;;  %v3350_v48 = vshrl.u32 %v7455_v43, 16  ;;  %v2668_v60 = vunpack.c.l.b16 %v2610_v39  ;;  %v7485_v39 = vld [vmem:[%s6786_s9 + $0x1c] sm:$0xf] }
 0x23c   : > { %v3768_v17 = vpop.f32.mrf.mxu3  ;;  %v7452_v18 = vpop.f32.mrf.mxu0  ;;  %v3423_v53 = vunpack.c.l.b16 %v3325_v11  ;;  %v3424_v34 = vunpack.c.l.b16 %v3335_v16  ;;  %v3342_v9 = vrot.slane %v3340_v26, 5  ;;  %v3948_v11 = vrot.slane %v7455_v43, 5 }
 0x23d   : > { %4380 = vst.msk [vmem:[%s7259_s16 + $0x30] sm:$0xff] %vm4373_vm6, %v7441_v57  ;;  %v3769_v56 = vadd.f32 %v3768_v17, %v3535_v10  ;;  %3577 = vmatmul.bf16.gmra.mxu2 %v3441_v46  ;;  %v4021_v17 = vpack.c.b16 %v4003_v41, %v4002_v42  ;;  %v3339_v5 = vrot.slane %v3337_v1, 4  ;;  %v2503_v1 = vld [vmem:[%s6786_s9] sm:$0xe]  ;;  %v3356_v43 = vshll.u32 %v7485_v39, 16 }
 0x23e   : > { %v3442_v41 = vpack.c.b16 %v3424_v34, %v3423_v53  ;;  %v8011_v53 = vld [vmem:[#allocation18_spill] sm:$0xff] }
 0x23f   : > { %v4184_v46 = vadd.f32 %v7397_v51, %v3769_v56  ;;  %v2784_v10 = vpop.f32.mrf.mxu1  ;;  %v2667_v51 = vunpack.c.l.b16 %v2607_v4  ;;  %v3352_v56 = vrot.slane %v3350_v48, 4 }
 0x240   : > { %v3538_v7 = vpop.f32.mrf.mxu2  ;;  %v2851_v22 = vadd.f32 %v2784_v10, %v8008_v15  ;;  %v5807_v15 = vld [vmem:[%s6786_s9 + $0x4] sm:$0xf] }
 0x241   : > { %v4248_v20 = vadd.f32 %v4184_v46, %v7417_v32  ;;  %3810 = vmatmul.bf16.gmra.mxu3 %v5627_v44  ;;  %v7477_v32 = vrot.slane %v3346_v37, 5  ;;  %v2686_v16 = vpack.c.b16 %v2668_v60, %v2667_v51  ;;  %v3838_v46 = vld [vmem:[%s6786_s9 + $0x14] sm:$0xe]  ;;  %v8010_v37 = vld [vmem:[#allocation19_spill] sm:$0xff]  ;;  %v3951_v60 = vrot.slane %v7485_v39, 5 }
 0x242   : > { %v7472_v23 = vadd.f32 %v2851_v22, %v8009_v6  ;;  %v2613_v22 = vrot.slane %v5807_v15, 5  ;;  %v5474_v51 = vrot.slane %v3838_v46, 9  ;;  %v5628_v46 = vld [vmem:[%s6786_s9 + $0x8] sm:$0xff] }
 0x243   : > { %v7475_v40 = vadd.f32 %v7249_v35, %v4248_v20  ;;  %v3353_v20 = vor.u32 %v3352_v56, %v7477_v32 }
 0x244   : > { %v3771_v47 = vpop.f32.mrf.mxu3  ;;  %v7482_v4 = vpop.f32.mrf.mxu0 }
 0x245   : > { %4381 = vst.msk [vmem:[%s7259_s16 + $0x38] sm:$0xff] %vm4373_vm6, %v7475_v40  ;;  %v3772_v44 = vadd.f32 %v3771_v47, %v3538_v7  ;;  %v3343_v7 = vor.u32 %v3342_v9, %v3339_v5  ;;  %v5222_v47 = vrot.slane %v2503_v1, 9  ;;  %v5808_v5 = vld [vmem:[%s6786_s9 + $0x8] sm:$0xf]  ;;  %v3354_v15 = vrot.slane %v3353_v20, 4 }
 0x246   : > { %v2616_v9 = vrot.slane %v5808_v5, 5  ;;  %v3949_v1 = vsel %vm6393_vm5, %v5474_v51, %v3948_v11 }
 0x247   : > { %v4185_v10 = vadd.f32 %v7429_v58, %v3772_v44  ;;  %v2787_v42 = vpop.f32.mrf.mxu1  ;;  %4161 = vmatmul.bf16.gmra.mxu0 %v4021_v17  ;;  %v3950_v58 = vrot.slane %v3948_v11, 4  ;;  %v2615_v17 = vrot.slane %v2613_v22, 4  ;;  %v3360_v11 = vshrl.u32 %v7485_v39, 16 }
 0x248   : > { %v3540_v26 = vpop.f32.mrf.mxu2  ;;  %v2852_v48 = vadd.f32 %v2787_v42, %v8010_v37  ;;  %v3344_v42 = vrot.slane %v3343_v7, 4 }
 0x249   : > { %v4249_v6 = vadd.f32 %v4185_v10, %v7438_v33  ;;  %v3952_v37 = vsel %vm6393_vm5, %v3950_v58, %v3951_v60 }
 0x24a   : > { %v2916_v34 = vadd.f32 %v2852_v48, %v8011_v53  ;;  %2826 = vmatmul.bf16.gmra.mxu1 %v2686_v16  ;;  %v7508_v16 = vrot.slane %v3356_v43, 5  ;;  %v2614_v48 = vsel %vm6393_vm5, %v5222_v47, %v2613_v22  ;;  %v4004_v53 = vunpack.c.l.b16 %v3949_v1  ;;  %v8012_v47 = vld [vmem:[#allocation20_spill] sm:$0xff] }
 0x24b   : > { %v7499_v44 = vadd.f32 %v7249_v35, %v4249_v6  ;;  %v4005_v5 = vunpack.c.l.b16 %v3952_v37  ;;  %v2669_v58 = vunpack.c.l.b16 %v2614_v48  ;;  %v3362_v48 = vrot.slane %v3360_v11, 4 }
 0x24c   : > { %v3773_v56 = vpop.f32.mrf.mxu3  ;;  %v7506_v10 = vpop.f32.mrf.mxu0  ;;  %v3359_v22 = vsel %vm6064_vm2, %v3354_v15, %v7508_v16 }
 0x24d   : > { %4382 = vst.msk [vmem:[%s7259_s16 + $0x40] sm:$0xff] %vm4373_vm6, %v7499_v44  ;;  %v3774_v33 = vadd.f32 %v3773_v56, %v3540_v26  ;;  %3582 = vmatmul.bf16.gmra.mxu2 %v3442_v41  ;;  %v2617_v41 = vsel %vm6393_vm5, %v2615_v17, %v2616_v9  ;;  %v3002_v26 = vld [vmem:[%s6786_s9 + $0x20] sm:$0xf]  ;;  %v3426_v1 = vunpack.c.l.b16 %v3359_v22  ;;  %v4022_v37 = vpack.c.b16 %v4005_v5, %v4004_v53  ;;  %v8013_v22 = vld [vmem:[#allocation22_spill] sm:$0xff] }
 0x24e   : > { %v3366_v56 = vshll.u32 %v3002_v26, 16  ;;  %v3954_v15 = vrot.slane %v3002_v26, 5 }
 0x24f   : > { %v4186_v7 = vadd.f32 %v7452_v18, %v3774_v33  ;;  %v2789_v20 = vpop.f32.mrf.mxu1  ;;  %v3349_v18 = vsel %vm6064_vm2, %v3344_v42, %v7477_v32  ;;  %v3370_v33 = vshrl.u32 %v3002_v26, 16  ;;  %v3953_v26 = vrot.slane %v3951_v60, 4 }
 0x250   : > { %v3543_v6 = vpop.f32.mrf.mxu2  ;;  %v2853_v43 = vadd.f32 %v2789_v20, %v6868_v38  ;;  %v2670_v38 = vunpack.c.l.b16 %v2617_v41  ;;  %v3368_v20 = vrot.slane %v3366_v56, 5  ;;  %v8014_v56 = vld [vmem:[#allocation21_spill] sm:$0xff] }
 0x251   : > { %v4250_v51 = vadd.f32 %v4186_v7, %v7472_v23  ;;  %3815 = vmatmul.bf16.gmra.mxu3 %v5628_v46  ;;  %v3425_v46 = vunpack.c.l.b16 %v3349_v18  ;;  %v3372_v41 = vrot.slane %v3370_v33, 4  ;;  %v2618_v33 = vrot.slane %v2616_v9, 4 }
 0x252   : > { %v2917_v17 = vadd.f32 %v2853_v43, %v8012_v47  ;;  %v2687_v7 = vpack.c.b16 %v2670_v38, %v2669_v58  ;;  %v5809_v47 = vld [vmem:[%s6786_s9 + $0xc] sm:$0xf]  ;;  %v3956_v58 = vrot.slane %v3954_v15, 4  ;;  %v3957_v38 = vrot.slane %v3027_v8, 5 }
 0x253   : > { %v7531_v39 = vadd.f32 %v7249_v35, %v4250_v51  ;;  %v2619_v28 = vrot.slane %v5809_v47, 5  ;;  %v3443_v5 = vpack.c.b16 %v3426_v1, %v3425_v46  ;;  %v5810_v46 = vld [vmem:[%s6786_s9 + $0x10] sm:$0x1] }
 0x254   : > { %v3776_v23 = vpop.f32.mrf.mxu3  ;;  %v7536_v42 = vpop.f32.mrf.mxu0  ;;  %v2622_v1 = vrot.slane %v5810_v46, 5 }
 0x255   : > { %4383 = vst.msk [vmem:[%s7259_s16 + $0x48] sm:$0xff] %vm4373_vm6, %v7531_v39  ;;  %v3777_v32 = vadd.f32 %v3776_v23, %v3543_v6  ;;  %v3363_v6 = vor.u32 %v3362_v48, %v7508_v16  ;;  %v3373_v23 = vor.u32 %v3372_v41, %v3368_v20  ;;  %v3955_v48 = vsel %vm6393_vm5, %v3953_v26, %v3954_v15 }
 0x256   : > { %v2620_v9 = vsel %vm6393_vm5, %v2618_v33, %v2619_v28  ;;  %v4006_v15 = vunpack.c.l.b16 %v3955_v48 }
 0x257   : > { %v4187_v43 = vadd.f32 %v7482_v4, %v3777_v32  ;;  %v2792_v51 = vpop.f32.mrf.mxu1  ;;  %4166 = vmatmul.bf16.gmra.mxu0 %v4022_v37  ;;  %v3376_v32 = vshll.u32 %v3027_v8, 16  ;;  %v3958_v8 = vsel %vm6393_vm5, %v3956_v58, %v3957_v38  ;;  %v3374_v41 = vrot.slane %v3373_v23, 4  ;;  %v8015_v38 = vld [vmem:[#allocation23_spill] sm:$0xff] }
 0x258   : > { %v3545_v18 = vpop.f32.mrf.mxu2  ;;  %v2854_v53 = vadd.f32 %v2792_v51, %v8013_v22  ;;  %v2621_v51 = vrot.slane %v2619_v28, 4  ;;  %v4007_v26 = vunpack.c.l.b16 %v3958_v8  ;;  %v2671_v58 = vunpack.c.l.b16 %v2620_v9 }
 0x259   : > { %v4251_v11 = vadd.f32 %v4187_v43, %v2916_v34  ;;  %v5629_v34 = vld [vmem:[%s6786_s9 + $0x14] sm:$0xff]  ;;  %v3378_v43 = vrot.slane %v3376_v32, 5 }
 0x25a   : > { %v2918_v4 = vadd.f32 %v2854_v53, %v8014_v56  ;;  %2831 = vmatmul.bf16.gmra.mxu1 %v2687_v7  ;;  %v3364_v7 = vrot.slane %v3363_v6, 4  ;;  %v4023_v32 = vpack.c.b16 %v4007_v26, %v4006_v15 }
 0x25b   : > { %v7545_v47 = vadd.f32 %v7249_v35, %v4251_v11 }
 0x25c   : > { %v3778_v37 = vpop.f32.mrf.mxu3  ;;  %v4129_v16 = vpop.f32.mrf.mxu0  ;;  %v3369_v33 = vsel %vm6064_vm2, %v3364_v7, %v3368_v20 }
 0x25d   : > { %4384 = vst.msk [vmem:[%s7259_s16 + $0x50] sm:$0xff] %vm4373_vm6, %v7545_v47  ;;  %v3779_v60 = vadd.f32 %v3778_v37, %v3545_v18  ;;  %3587 = vmatmul.bf16.gmra.mxu2 %v3443_v5  ;;  %v2623_v18 = vsel %vm6393_vm5, %v2621_v51, %v2622_v1  ;;  %v3427_v51 = vunpack.c.l.b16 %v3369_v33 }
 0x25e   : > { %v2672_v6 = vunpack.c.l.b16 %v2623_v18 }
 0x25f   : > { %v4188_v22 = vadd.f32 %v7506_v10, %v3779_v60  ;;  %v2794_v53 = vpop.f32.mrf.mxu1  ;;  %v3379_v10 = vsel %vm6064_vm2, %v3374_v41, %v3378_v43 }
 0x260   : > { %v3548_v5 = vpop.f32.mrf.mxu2  ;;  %v2855_v11 = vadd.f32 %v2794_v53, %v6900_v54  ;;  %v3428_v46 = vunpack.c.l.b16 %v3379_v10  ;;  %v2688_v1 = vpack.c.b16 %v2672_v6, %v2671_v58 }
 0x261   : > { %v4252_v56 = vadd.f32 %v4188_v22, %v2917_v17  ;;  %3820 = vmatmul.bf16.gmra.mxu3 %v5629_v34 }
 0x262   : > { %v2919_v28 = vadd.f32 %v2855_v11, %v8015_v38  ;;  %v3444_v48 = vpack.c.b16 %v3428_v46, %v3427_v51  ;;  %v8016_v38 = vld [vmem:[#allocation25_spill] sm:$0xff]  ;;  %v8018_v46 = vld [vmem:[#allocation27_spill] sm:$0xff] }
 0x263   : > { %v7568_v59 = vadd.f32 %v7249_v35, %v4252_v56 }
 0x264   : > { %v3781_v23 = vpop.f32.mrf.mxu3  ;;  %v4132_v17 = vpop.f32.mrf.mxu0 }
 0x265   : > { %4385 = vst.msk [vmem:[%s7259_s16 + $0x58] sm:$0xff] %vm4373_vm6, %v7568_v59  ;;  %v3782_v54 = vadd.f32 %v3781_v23, %v3548_v5 }
 0x267   : > { %v4189_v20 = vadd.f32 %v7536_v42, %v3782_v54  ;;  %v2797_v37 = vpop.f32.mrf.mxu1  ;;  %4171 = vmatmul.bf16.gmra.mxu0 %v4023_v32  ;;  %v5630_v42 = vld [vmem:[%s6786_s9 + $0x1c] sm:$0xff] }
 0x268   : > { %v3550_v31 = vpop.f32.mrf.mxu2  ;;  %v2856_v60 = vadd.f32 %v2797_v37, %v6915_v61  ;;  %v8019_v37 = vld [vmem:[#allocation26_spill] sm:$0xff] }
 0x269   : > { %v4253_v34 = vadd.f32 %v4189_v20, %v2918_v4 }
 0x26a   : > { %v2920_v8 = vadd.f32 %v2856_v60, %v6911_v25  ;;  %2836 = vmatmul.bf16.gmra.mxu1 %v2688_v1 }
 0x26b   : > { %v7577_v9 = vadd.f32 %v7249_v35, %v4253_v34 }
 0x26c   : > { %v3783_v7 = vpop.f32.mrf.mxu3  ;;  %v4134_v43 = vpop.f32.mrf.mxu0 }
 0x26d   : > { %4386 = vst.msk [vmem:[%s7259_s16 + $0x60] sm:$0xff] %vm4373_vm6, %v7577_v9  ;;  %v3784_v41 = vadd.f32 %v3783_v7, %v3550_v31  ;;  %3592 = vmatmul.bf16.gmra.mxu2 %v3444_v48 }
 0x26f   : > { %v4190_v22 = vadd.f32 %v4129_v16, %v3784_v41  ;;  %v2799_v61 = vpop.f32.mrf.mxu1 }
 0x270   : > { %v3553_v53 = vpop.f32.mrf.mxu2  ;;  %v2857_v4 = vadd.f32 %v2799_v61, %v6927_v45  ;;  %v8020_v61 = vld [vmem:[#allocation28_spill] sm:$0xff] }
 0x271   : > { %v4254_v18 = vadd.f32 %v4190_v22, %v2919_v28  ;;  %3825 = vmatmul.bf16.gmra.mxu3 %v5630_v42  ;;  %v8017_v28 = vld [vmem:[#allocation24_spill] sm:$0xff] }
 0x272   : > { %v2921_v25 = vadd.f32 %v2857_v4, %v6920_v21 }
 0x273   : > { %v7586_v5 = vadd.f32 %v7249_v35, %v4254_v18 }
 0x274   : > { %v3786_v11 = vpop.f32.mrf.mxu3  ;;  %v4137_v26 = vpop.f32.mrf.mxu0 }
 0x275   : > { %4387 = vst.msk [vmem:[%s7259_s16 + $0x68] sm:$0xff] %vm4373_vm6, %v7586_v5  ;;  %v3787_v15 = vadd.f32 %v3786_v11, %v3553_v53 }
 0x277   : > { %v4191_v56 = vadd.f32 %v4132_v17, %v3787_v15  ;;  %v2802_v16 = vpop.f32.mrf.mxu1 }
 0x278   : > { %v3555_v58 = vpop.f32.mrf.mxu2  ;;  %v2858_v6 = vadd.f32 %v2802_v16, %v8016_v38 }
 0x279   : > { %v4255_v45 = vadd.f32 %v4191_v56, %v2920_v8 }
 0x27a   : > { %v2922_v33 = vadd.f32 %v2858_v6, %v8017_v28 }
 0x27b   : > { %v7594_v21 = vadd.f32 %v7249_v35, %v4255_v45 }
 0x27c   : > { %v3788_v10 = vpop.f32.mrf.mxu3  ;;  %v4139_v32 = vpop.f32.mrf.mxu0 }
 0x27d   : > { %4388 = vst.msk [vmem:[%s7259_s16 + $0x70] sm:$0xff] %vm4373_vm6, %v7594_v21  ;;  %v3789_v23 = vadd.f32 %v3788_v10, %v3555_v58 }
 0x27f   : > { %v4192_v54 = vadd.f32 %v4134_v43, %v3789_v23  ;;  %v2804_v51 = vpop.f32.mrf.mxu1 }
 0x280   : > { %v3558_v17 = vpop.f32.mrf.mxu2  ;;  %v2859_v1 = vadd.f32 %v2804_v51, %v8018_v46 }
 0x281   : > { %v4256_v20 = vadd.f32 %v4192_v54, %v2921_v25  ;;  %v8021_v54 = vld [vmem:[#allocation29_spill] sm:$0xff] }
 0x282   : > { %v2923_v31 = vadd.f32 %v2859_v1, %v8019_v37 }
 0x283   : > { %v7602_v60 = vadd.f32 %v7249_v35, %v4256_v20 }
 0x284   : > { %v3791_v34 = vpop.f32.mrf.mxu3  ;;  %v4142_v8 = vpop.f32.mrf.mxu0 }
 0x285   : > { %4389 = vst.msk [vmem:[%s7259_s16 + $0x78] sm:$0xff] %vm4373_vm6, %v7602_v60  ;;  %v3792_v48 = vadd.f32 %v3791_v34, %v3558_v17  ;;  %v8022_v34 = vld [vmem:[#allocation31_spill] sm:$0xff] }
 0x287   : > { %v4193_v7 = vadd.f32 %v4137_v26, %v3792_v48  ;;  %v2807_v41 = vpop.f32.mrf.mxu1 }
 0x288   : > { %v3560_v42 = vpop.f32.mrf.mxu2  ;;  %v2860_v43 = vadd.f32 %v2807_v41, %v6980_v36 }
 0x289   : > { %v4257_v22 = vadd.f32 %v4193_v7, %v2922_v33 }
 0x28a   : > { %v2924_v53 = vadd.f32 %v2860_v43, %v8020_v61 }
 0x28b   : > { %v7610_v4 = vadd.f32 %v7249_v35, %v4257_v22 }
 0x28c   : > { %v3793_v18 = vpop.f32.mrf.mxu3  ;;  %v4144_v11 = vpop.f32.mrf.mxu0 }
 0x28d   : > { %4390 = vst.msk [vmem:[%s7259_s16 + $0x80] sm:$0xff] %vm4373_vm6, %v7610_v4  ;;  %v3794_v25 = vadd.f32 %v3793_v18, %v3560_v42 }
 0x28f   : > { %v4194_v15 = vadd.f32 %v4139_v32, %v3794_v25  ;;  %v2809_v56 = vpop.f32.mrf.mxu1 }
 0x290   : > { %v3563_v26 = vpop.f32.mrf.mxu2  ;;  %v2861_v16 = vadd.f32 %v2809_v56, %v6989_v52 }
 0x291   : > { %v4258_v36 = vadd.f32 %v4194_v15, %v2923_v31  ;;  %v8024_v15 = vld [vmem:[#allocation32_spill] sm:$0xff] }
 0x292   : > { %v2925_v58 = vadd.f32 %v2861_v16, %v6985_v13 }
 0x293   : > { %v7618_v38 = vadd.f32 %v7249_v35, %v4258_v36 }
 0x294   : > { %v3796_v6 = vpop.f32.mrf.mxu3  ;;  %v4147_v28 = vpop.f32.mrf.mxu0 }
 0x295   : > { %4391 = vst.msk [vmem:[%s7259_s16 + $0x88] sm:$0xff] %vm4373_vm6, %v7618_v38  ;;  %v3797_v45 = vadd.f32 %v3796_v6, %v3563_v26  ;;  %v4407_v6 = vsel %vm4373_vm6, %v7304_v0, 0.0 }
 0x297   : > { %v4195_v33 = vadd.f32 %v4142_v8, %v3797_v45  ;;  %v2812_v10 = vpop.f32.mrf.mxu1  ;;  %v8023_v8 = vld [vmem:[#allocation30_spill] sm:$0xff] }
 0x298   : > { %v3565_v23 = vpop.f32.mrf.mxu2  ;;  %v2862_v32 = vadd.f32 %v2812_v10, %v7008_v62  ;;  %v4406_v10 = vsel %vm4373_vm6, %v7266_v49, 0.0 }
 0x299   : > { %v4259_v52 = vadd.f32 %v4195_v33, %v2924_v53 }
 0x29a   : > { %v2926_v51 = vadd.f32 %v2862_v32, %v8021_v54 }
 0x29b   : > { %v7626_v13 = vadd.f32 %v7249_v35, %v4259_v52  ;;  %v4408_v52 = vadd.f32 %v4407_v6, %v4406_v10 }
 0x29c   : > { %v3798_v17 = vpop.f32.mrf.mxu3  ;;  %v4149_v1 = vpop.f32.mrf.mxu0 }
 0x29d   : > { %4392 = vst.msk [vmem:[%s7259_s16 + $0x90] sm:$0xff] %vm4373_vm6, %v7626_v13  ;;  %v3799_v46 = vadd.f32 %v3798_v17, %v3565_v23  ;;  %v4409_v23 = vsel %vm4373_vm6, %v7325_v63, 0.0 }
 0x29f   : > { %v4196_v20 = vadd.f32 %v4144_v11, %v3799_v46  ;;  %v2814_v37 = vpop.f32.mrf.mxu1  ;;  %v4410_v46 = vadd.f32 %v4409_v23, %v4408_v52  ;;  %v4425_v23 = vsel %vm4373_vm6, %v7545_v47, 0.0 }
 0x2a0   : > { %v3568_v31 = vpop.f32.mrf.mxu2  ;;  %v2863_v48 = vadd.f32 %v2814_v37, %v8022_v34 }
 0x2a1   : > { %v4260_v62 = vadd.f32 %v4196_v20, %v2925_v58 }
 0x2a2   : > { %v2927_v7 = vadd.f32 %v2863_v48, %v8023_v8 }
 0x2a3   : > { %v7634_v41 = vadd.f32 %v7249_v35, %v4260_v62 }
 0x2a4   : > { %v3801_v42 = vpop.f32.mrf.mxu3  ;;  %v4152_v22 = vpop.f32.mrf.mxu0 }
 0x2a5   : > { %4393 = vst.msk [vmem:[%s7259_s16 + $0x98] sm:$0xff] %vm4373_vm6, %v7634_v41  ;;  %v3802_v43 = vadd.f32 %v3801_v42, %v3568_v31  ;;  %v4415_v31 = vsel %vm4373_vm6, %v7422_v30, 0.0 }
 0x2a7   : > { %v4197_v61 = vadd.f32 %v4147_v28, %v3802_v43  ;;  %v2817_v53 = vpop.f32.mrf.mxu1 }
 0x2a8   : > { %v3570_v18 = vpop.f32.mrf.mxu2  ;;  %v2864_v25 = vadd.f32 %v2817_v53, %v7042_v24 }
 0x2a9   : > { %v4261_v11 = vadd.f32 %v4197_v61, %v2926_v51  ;;  %v4411_v51 = vsel %vm4373_vm6, %v7359_v14, 0.0  ;;  %v8025_v61 = vld [vmem:[#allocation33_spill] sm:$0xff] }
 0x2aa   : > { %v2928_v56 = vadd.f32 %v2864_v25, %v8024_v15  ;;  %v4412_v37 = vadd.f32 %v4411_v51, %v4410_v46  ;;  %v4421_v15 = vsel %vm4373_vm6, %v7499_v44, 0.0  ;;  %v8027_v51 = vld [vmem:[#allocation34_spill] sm:$0xff] }
 0x2ab   : > { %v7642_v26 = vadd.f32 %v7249_v35, %v4261_v11 }
 0x2ac   : > { %v3803_v16 = vpop.f32.mrf.mxu3  ;;  %v4154_v58 = vpop.f32.mrf.mxu0 }
 0x2ad   : > { %4394 = vst.msk [vmem:[%s7259_s16 + $0xa0] sm:$0xff] %vm4373_vm6, %v7642_v26  ;;  %v3804_v36 = vadd.f32 %v3803_v16, %v3570_v18  ;;  %v4419_v18 = vsel %vm4373_vm6, %v7475_v40, 0.0 }
 0x2af   : > { %v4198_v45 = vadd.f32 %v4149_v1, %v3804_v36  ;;  %v2819_v28 = vpop.f32.mrf.mxu1  ;;  %v4423_v36 = vsel %vm4373_vm6, %v7531_v39, 0.0 }
 0x2b0   : > { %v3573_v33 = vpop.f32.mrf.mxu2  ;;  %v2865_v24 = vadd.f32 %v2819_v28, %v7050_v19  ;;  %v4413_v19 = vsel %vm4373_vm6, %v7386_v29, 0.0 }
 0x2b1   : > { %v4262_v32 = vadd.f32 %v4198_v45, %v2927_v7  ;;  %v4414_v48 = vadd.f32 %v4413_v19, %v4412_v37  ;;  %v4417_v7 = vsel %vm4373_vm6, %v7441_v57, 0.0  ;;  %v4427_v19 = vsel %vm4373_vm6, %v7568_v59, 0.0 }
 0x2b2   : > { %v2929_v54 = vadd.f32 %v2865_v24, %v7047_v55  ;;  %v8026_v24 = vld [vmem:[#allocation35_spill] sm:$0xff] }
 0x2b3   : > { %v7658_v17 = vadd.f32 %v7249_v35, %v4262_v32  ;;  %v4416_v43 = vadd.f32 %v4415_v31, %v4414_v48  ;;  %v4429_v31 = vsel %vm4373_vm6, %v7577_v9, 0.0 }
 0x2b4   : > { %v3806_v1 = vpop.f32.mrf.mxu3  ;;  %v4157_v8 = vpop.f32.mrf.mxu0 }
 0x2b5   : > { %4395 = vst.msk [vmem:[%s7259_s16 + $0xa8] sm:$0xff] %vm4373_vm6, %v7658_v17  ;;  %v3807_v20 = vadd.f32 %v3806_v1, %v3573_v33 }
 0x2b7   : > { %v4199_v55 = vadd.f32 %v4152_v22, %v3807_v20  ;;  %v2822_v34 = vpop.f32.mrf.mxu1  ;;  %v7676_v22 = vld [vmem:[%s7946_s3] ss:$0 sm:$0xff] }
 0x2b8   : > { %v3575_v62 = vpop.f32.mrf.mxu2  ;;  %v2866_v35 = vadd.f32 %v2822_v34, %v7070_v12  ;;  %v4418_v12 = vadd.f32 %v4417_v7, %v4416_v43  ;;  %v4431_v34 = vsel %vm4373_vm6, %v7586_v5, 0.0  ;;  %v4433_v43 = vsel %vm4373_vm6, %v7594_v21, 0.0 }
 0x2b9   : > { %v4263_v42 = vadd.f32 %v4199_v55, %v2928_v56 }
 0x2ba   : > { %v2930_v53 = vadd.f32 %v2866_v35, %v8025_v61  ;;  %v4420_v16 = vadd.f32 %v4419_v18, %v4418_v12  ;;  %v8028_v12 = vld [vmem:[#allocation36_spill] sm:$0xff] }
 0x2bb   : > { %v7679_v25 = vadd.f32 %v7676_v22, %v4263_v42 }
 0x2bc   : > { %v3808_v11 = vpop.f32.mrf.mxu3  ;;  %v4422_v28 = vadd.f32 %v4421_v15, %v4420_v16  ;;  %v4159_v1 = vpop.f32.mrf.mxu0  ;;  %v4435_v15 = vsel %vm4373_vm6, %v7602_v60, 0.0 }
 0x2bd   : > { %4396 = vst.msk [vmem:[%s7259_s16 + $0xb0] sm:$0xff] %vm4373_vm6, %v7679_v25  ;;  %v3809_v56 = vadd.f32 %v3808_v11, %v3575_v62 }
 0x2be   : > { %v4424_v52 = vadd.f32 %v4423_v36, %v4422_v28 }
 0x2bf   : > { %v4200_v6 = vadd.f32 %v4154_v58, %v3809_v56  ;;  %v2824_v45 = vpop.f32.mrf.mxu1 }
 0x2c0   : > { %v3578_v33 = vpop.f32.mrf.mxu2  ;;  %v2867_v10 = vadd.f32 %v2824_v45, %v8026_v24  ;;  %v4426_v58 = vadd.f32 %v4425_v23, %v4424_v52  ;;  %v4439_v45 = vsel %vm4373_vm6, %v7618_v38, 0.0 }
 0x2c1   : > { %v4264_v32 = vadd.f32 %v4200_v6, %v2929_v54  ;;  %v4437_v6 = vsel %vm4373_vm6, %v7610_v4, 0.0 }
 0x2c2   : > { %v2931_v46 = vadd.f32 %v2867_v10, %v8027_v51  ;;  %v4428_v54 = vadd.f32 %v4427_v19, %v4426_v58  ;;  %v4443_v58 = vsel %vm4373_vm6, %v7634_v41, 0.0 }
 0x2c3   : > { %v7695_v20 = vadd.f32 %v7676_v22, %v4264_v32  ;;  %v4441_v32 = vsel %vm4373_vm6, %v7626_v13, 0.0 }
 0x2c4   : > { %v3811_v37 = vpop.f32.mrf.mxu3  ;;  %v4430_v35 = vadd.f32 %v4429_v31, %v4428_v54  ;;  %v4162_v36 = vpop.f32.mrf.mxu0 }
 0x2c5   : > { %4397 = vst.msk [vmem:[%s7259_s16 + $0xb8] sm:$0xff] %vm4373_vm6, %v7695_v20  ;;  %v3812_v55 = vadd.f32 %v3811_v37, %v3578_v33 }
 0x2c6   : > { %v4432_v18 = vadd.f32 %v4431_v34, %v4430_v35 }
 0x2c7   : > { %v4201_v48 = vadd.f32 %v4157_v8, %v3812_v55  ;;  %v2827_v62 = vpop.f32.mrf.mxu1  ;;  %v4445_v55 = vsel %vm4373_vm6, %v7642_v26, 0.0 }
 0x2c8   : > { %v3580_v7 = vpop.f32.mrf.mxu2  ;;  %v2868_v42 = vadd.f32 %v2827_v62, %v7110_v27  ;;  %v4434_v16 = vadd.f32 %v4433_v43, %v4432_v18  ;;  %v8029_v18 = vld [vmem:[#allocation37_spill] sm:$0xff] }
 0x2c9   : > { %v4265_v61 = vadd.f32 %v4201_v48, %v2930_v53 }
 0x2ca   : > { %v2932_v11 = vadd.f32 %v2868_v42, %v8028_v12  ;;  %v4436_v53 = vadd.f32 %v4435_v15, %v4434_v16  ;;  %v4449_v42 = vsel %vm4373_vm6, %v7679_v25, 0.0  ;;  %v4451_v15 = vsel %vm4373_vm6, %v7695_v20, 0.0 }
 0x2cb   : > { %v7711_v56 = vadd.f32 %v7676_v22, %v4265_v61 }
 0x2cc   : > { %v3813_v8 = vpop.f32.mrf.mxu3  ;;  %v4438_v24 = vadd.f32 %v4437_v6, %v4436_v53 }
 0x2cd   : > { %4398 = vst.msk [vmem:[%s7259_s16 + $0xc0] sm:$0xff] %vm4373_vm6, %v7711_v56  ;;  %v3814_v27 = vadd.f32 %v3813_v8, %v3580_v7  ;;  %v4453_v6 = vsel %vm4373_vm6, %v7711_v56, 0.0 }
 0x2ce   : > { %v4440_v51 = vadd.f32 %v4439_v45, %v4438_v24 }
 0x2cf   : > { %v4202_v28 = vadd.f32 %v4159_v1, %v3814_v27  ;;  %v2829_v33 = vpop.f32.mrf.mxu1 }
 0x2d0   : > { %v3583_v10 = vpop.f32.mrf.mxu2  ;;  %v2869_v23 = vadd.f32 %v2829_v33, %v7121_v3  ;;  %v4442_v31 = vadd.f32 %v4441_v32, %v4440_v51 }
 0x2d1   : > { %v4266_v52 = vadd.f32 %v4202_v28, %v2931_v46  ;;  %v4164_v46 = vpop.f32.mrf.mxu0 }
 0x2d2   : > { %v2933_v19 = vadd.f32 %v2869_v23, %v7114_v50  ;;  %v4444_v54 = vadd.f32 %v4443_v58, %v4442_v31  ;;  %v4447_v50 = vsel %vm4373_vm6, %v7658_v17, 0.0  ;;  %v8031_v58 = vld [vmem:[#allocation38_spill] sm:$0xff] }
 0x2d3   : > { %v7727_v37 = vadd.f32 %v7676_v22, %v4266_v52 }
 0x2d4   : > { %v3816_v1 = vpop.f32.mrf.mxu3  ;;  %v4446_v62 = vadd.f32 %v4445_v55, %v4444_v54 }
 0x2d5   : > { %4399 = vst.msk [vmem:[%s7259_s16 + $0xc8] sm:$0xff] %vm4373_vm6, %v7727_v37  ;;  %v3817_v3 = vadd.f32 %v3816_v1, %v3583_v10  ;;  %v4455_v27 = vsel %vm4373_vm6, %v7727_v37, 0.0  ;;  %v8030_v10 = vld [vmem:[#allocation39_spill] sm:$0xff] }
 0x2d6   : > { %v4448_v61 = vadd.f32 %v4447_v50, %v4446_v62  ;;  %v8032_v62 = vld [vmem:[#allocation41_spill] sm:$0xff] }
 0x2d7   : > { %v4203_v34 = vadd.f32 %v4162_v36, %v3817_v3  ;;  %v2832_v48 = vpop.f32.mrf.mxu1 }
 0x2d8   : > { %v3585_v35 = vpop.f32.mrf.mxu2  ;;  %v2870_v7 = vadd.f32 %v2832_v48, %v7141_v2  ;;  %v4450_v8 = vadd.f32 %v4449_v42, %v4448_v61 }
 0x2d9   : > { %v4267_v43 = vadd.f32 %v4203_v34, %v2932_v11  ;;  %v4167_v33 = vpop.f32.mrf.mxu0 }
 0x2da   : > { %v2934_v12 = vadd.f32 %v2870_v7, %v8029_v18  ;;  %v4452_v11 = vadd.f32 %v4451_v15, %v4450_v8 }
 0x2db   : > { %v7743_v16 = vadd.f32 %v7676_v22, %v4267_v43  ;;  %v8033_v43 = vld [vmem:[#allocation40_spill] sm:$0xff] }
 0x2dc   : > { %v3818_v36 = vpop.f32.mrf.mxu3  ;;  %v4454_v28 = vadd.f32 %v4453_v6, %v4452_v11 }
 0x2dd   : > { %4400 = vst.msk [vmem:[%s7259_s16 + $0xd0] sm:$0xff] %vm4373_vm6, %v7743_v16  ;;  %v3819_v2 = vadd.f32 %v3818_v36, %v3585_v35  ;;  %v4457_v32 = vsel %vm4373_vm6, %v7743_v16, 0.0 }
 0x2de   : > { %v4456_v51 = vadd.f32 %v4455_v27, %v4454_v28  ;;  %v8035_v28 = vld [vmem:[#allocation42_spill] sm:$0xff] }
 0x2df   : > { %v4204_v53 = vadd.f32 %v4164_v46, %v3819_v2  ;;  %v2834_v45 = vpop.f32.mrf.mxu1 }
 0x2e0   : > { %v3588_v24 = vpop.f32.mrf.mxu2  ;;  %v2871_v23 = vadd.f32 %v2834_v45, %v8030_v10  ;;  %v4458_v55 = vadd.f32 %v4457_v32, %v4456_v51 }
 0x2e1   : > { %v4268_v52 = vadd.f32 %v4204_v53, %v2933_v19  ;;  %v4169_v42 = vpop.f32.mrf.mxu0 }
 0x2e2   : > { %v2935_v31 = vadd.f32 %v2871_v23, %v8031_v58 }
 0x2e3   : > { %v7757_v1 = vadd.f32 %v7676_v22, %v4268_v52 }
 0x2e4   : > { %v3821_v3 = vpop.f32.mrf.mxu3 }
 0x2e5   : > { %4401 = vst.msk [vmem:[%s7259_s16 + $0xd8] sm:$0xff] %vm4373_vm6, %v7757_v1  ;;  %v4459_v54 = vsel %vm4373_vm6, %v7757_v1, 0.0  ;;  %v3822_v46 = vadd.f32 %v3821_v3, %v3588_v24 }
 0x2e6   : > { %v4460_v50 = vadd.f32 %v4459_v54, %v4458_v55 }
 0x2e7   : > { %v4205_v34 = vadd.f32 %v4167_v33, %v3822_v46  ;;  %v2837_v48 = vpop.f32.mrf.mxu1 }
 0x2e8   : > { %v3590_v19 = vpop.f32.mrf.mxu2  ;;  %v2872_v35 = vadd.f32 %v2837_v48, %v8032_v62 }
 0x2e9   : > { %v4269_v7 = vadd.f32 %v4205_v34, %v2934_v12  ;;  %v8034_v12 = vld [vmem:[#allocation43_spill] sm:$0xff]  ;;  %v4172_v10 = vpop.f32.mrf.mxu0 }
 0x2ea   : > { %v2936_v61 = vadd.f32 %v2872_v35, %v8033_v43 }
 0x2eb   : > { %v7767_v18 = vadd.f32 %v7676_v22, %v4269_v7 }
 0x2ec   : > { %v3823_v15 = vpop.f32.mrf.mxu3 }
 0x2ed   : > { %4402 = vst.msk [vmem:[%s7259_s16 + $0xe0] sm:$0xff] %vm4373_vm6, %v7767_v18  ;;  %v4461_v8 = vsel %vm4373_vm6, %v7767_v18, 0.0  ;;  %v3824_v36 = vadd.f32 %v3823_v15, %v3590_v19  ;;  %v5908_v19 = vmov 256.0  }
 0x2ee   : > { %v4462_v6 = vadd.f32 %v4461_v8, %v4460_v50  ;;  %5757 = vrcp.f32 %v5908_v19 }
 0x2ef   : > { %v4206_v2 = vadd.f32 %v4169_v42, %v3824_v36  ;;  %v2839_v11 = vpop.f32.mrf.mxu1 }
 0x2f0   : > { %v3593_v27 = vpop.f32.mrf.mxu2  ;;  %v2873_v53 = vadd.f32 %v2839_v11, %v8034_v12 }
 0x2f1   : > { %v4270_v45 = vadd.f32 %v4206_v2, %v2935_v31  ;;  %v4174_v48 = vpop.f32.mrf.mxu0 }
 0x2f2   : > { %v2937_v33 = vadd.f32 %v2873_v53, %v8035_v28 }
 0x2f3   : > { %v7777_v24 = vadd.f32 %v7676_v22, %v4270_v45 }
 0x2f4   : > { %v3826_v23 = vpop.f32.mrf.mxu3  ;;  %v5758_v42 = vpop.eup %5757 }
 0x2f5   : > { %4403 = vst.msk [vmem:[%s7259_s16 + $0xe8] sm:$0xff] %vm4373_vm6, %v7777_v24  ;;  %v4463_v32 = vsel %vm4373_vm6, %v7777_v24, 0.0  ;;  %v3827_v52 = vadd.f32 %v3826_v23, %v3593_v27  ;;  %v4476_v15 = vmul.f32 256.0, %v5758_v42  ;;  %vm4480_vm7 = vweird.f32 %v5758_v42 }
 0x2f6   : > { %v4464_v51 = vadd.f32 %v4463_v32, %v4462_v6 }
 0x2f7   : > { %v4207_v58 = vadd.f32 %v4172_v10, %v3827_v52  ;;  %v4477_v6 = vsub.f32 1.0, %v4476_v15 }
 0x2f8   : > { %v3595_v3 = vpop.f32.mrf.mxu2 }
 0x2f9   : > { %v4271_v55 = vadd.f32 %v4207_v58, %v2936_v61  ;;  %v4478_v27 = vmul.f32 %v5758_v42, %v4477_v6 }
 0x2fb   : > { %v7785_v31 = vadd.f32 %v7676_v22, %v4271_v55  ;;  %v4479_v53 = vadd.f32 %v5758_v42, %v4478_v27 }
 0x2fc   : > { %v3828_v54 = vpop.f32.mrf.mxu3 }
 0x2fd   : > { %4404 = vst.msk [vmem:[%s7259_s16 + $0xf0] sm:$0xff] %vm4373_vm6, %v7785_v31  ;;  %v4465_v46 = vsel %vm4373_vm6, %v7785_v31, 0.0  ;;  %v3829_v50 = vadd.f32 %v3828_v54, %v3595_v3  ;;  %v4481_v45 = vsel %vm4480_vm7, %v5758_v42, %v4479_v53 }
 0x2fe   : > { %v4466_v34 = vadd.f32 %v4465_v46, %v4464_v51 }
 0x2ff   : > { %v4208_v62 = vadd.f32 %v4174_v48, %v3829_v50 }
 0x301   : > { %v4272_v35 = vadd.f32 %v4208_v62, %v2937_v33 }
 0x303   : > { %v7793_v7 = vadd.f32 %v7676_v22, %v4272_v35 }
 0x305   : > { %4405 = vst.msk [vmem:[%s7259_s16 + $0xf8] sm:$0xff] %vm4373_vm6, %v7793_v7  ;;  %v4467_v43 = vsel %vm4373_vm6, %v7793_v7, 0.0  ;;  %s5828_s16 = scalar_lea.hbm %s5827_s15, 2 }
 0x306   : > { %v4468_v61 = vadd.f32 %v4467_v43, %v4466_v34  ;;  %p5829_p2 = scmp.ne.s32.totalorder %s5827_s15, %s5828_s16  ;;  %p5834_p7 = scmp.lt.s32.totalorder %s5832_s29, %s5828_s16 }
 0x308   : > { %v4469_v8 = vrot.slane %v4468_v61, 4  ;;  %p5830_p4 = pnand %p5829_p2, %p5990_p3  ;;  %p5835_p9 = por %p5834_p7, %p5833_p6 }
 0x30a   : > { %v4470_v36 = vadd.f32 %v4469_v8, %v4468_v61  ;;  %p5831_p5 = pneg %p5830_p4 }
 0x30c   : > { %v4471_v2 = vrot.slane %v4470_v36, 2  ;;  %p5836_p10 = pnand %p5835_p9, %p5831_p5 }
 0x30e   : > { %v4472_v11 = vadd.f32 %v4471_v2, %v4470_v36 }
 0x310   : > { %v4473_v12 = vrot.slane %v4472_v11, 1 }
 0x312   : > { %v4474_v22 = vadd.f32 %v4473_v12, %v4472_v11 }
 0x314   : > { %v7800_v28 = vmul.f32 %v4481_v45, %v4474_v22 }
 0x316   : > { %v4483_v33 = vsub.f32 %v7266_v49, %v7800_v28  ;;  %v4484_v10 = vsub.f32 %v7304_v0, %v7800_v28  ;;  %v4485_v23 = vsub.f32 %v7325_v63, %v7800_v28  ;;  %v4486_v32 = vsub.f32 %v7359_v14, %v7800_v28 }
 0x317   : > { %v4487_v58 = vsub.f32 %v7386_v29, %v7800_v28  ;;  %v4488_v3 = vsub.f32 %v7422_v30, %v7800_v28  ;;  %v4489_v63 = vsub.f32 %v7441_v57, %v7800_v28  ;;  %v4490_v29 = vsub.f32 %v7475_v40, %v7800_v28 }
 0x318   : > { %v4515_v52 = vmul.f32 %v4483_v33, %v4483_v33  ;;  %v4516_v51 = vmul.f32 %v4484_v10, %v4484_v10  ;;  %v4517_v55 = vmul.f32 %v4485_v23, %v4485_v23  ;;  %v4518_v54 = vmul.f32 %v4486_v32, %v4486_v32 }
 0x319   : > { %v4519_v50 = vmul.f32 %v4487_v58, %v4487_v58  ;;  %v4520_v48 = vmul.f32 %v4488_v3, %v4488_v3  ;;  %v4491_v62 = vsub.f32 %v7499_v44, %v7800_v28  ;;  %v4521_v35 = vmul.f32 %v4489_v63, %v4489_v63 }
 0x31a   : > { %v4547_v49 = vsel %vm4373_vm6, %v4515_v52, 0.0  ;;  %v4548_v0 = vsel %vm4373_vm6, %v4516_v51, 0.0  ;;  %v4550_v14 = vsel %vm4373_vm6, %v4517_v55, 0.0  ;;  %v4552_v19 = vsel %vm4373_vm6, %v4518_v54, 0.0 }
 0x31b   : > { %v4549_v46 = vadd.f32 %v4548_v0, %v4547_v49  ;;  %v4554_v42 = vsel %vm4373_vm6, %v4519_v50, 0.0  ;;  %v4492_v57 = vsub.f32 %v7531_v39, %v7800_v28  ;;  %v4522_v61 = vmul.f32 %v4490_v29, %v4490_v29 }
 0x31c   : > { %v4556_v15 = vsel %vm4373_vm6, %v4520_v48, 0.0  ;;  %v4493_v40 = vsub.f32 %v7545_v47, %v7800_v28  ;;  %v4523_v36 = vmul.f32 %v4491_v62, %v4491_v62  ;;  %v4558_v6 = vsel %vm4373_vm6, %v4521_v35, 0.0 }
 0x31d   : > { %v4551_v34 = vadd.f32 %v4550_v14, %v4549_v46  ;;  %v4494_v44 = vsub.f32 %v7568_v59, %v7800_v28  ;;  %v4524_v11 = vmul.f32 %v4492_v57, %v4492_v57  ;;  %v4560_v27 = vsel %vm4373_vm6, %v4522_v61, 0.0 }
 0x31e   : > { %v4495_v39 = vsub.f32 %v7577_v9, %v7800_v28  ;;  %v4525_v53 = vmul.f32 %v4493_v40, %v4493_v40  ;;  %v4562_v22 = vsel %vm4373_vm6, %v4523_v36, 0.0  ;;  %v4496_v47 = vsub.f32 %v7586_v5, %v7800_v28 }
 0x31f   : > { %v4553_v30 = vadd.f32 %v4552_v19, %v4551_v34  ;;  %v4526_v33 = vmul.f32 %v4494_v44, %v4494_v44  ;;  %v4564_v10 = vsel %vm4373_vm6, %v4524_v11, 0.0  ;;  %v4497_v59 = vsub.f32 %v7594_v21, %v7800_v28 }
 0x320   : > { %v4527_v32 = vmul.f32 %v4495_v39, %v4495_v39  ;;  %v4566_v52 = vsel %vm4373_vm6, %v4525_v53, 0.0  ;;  %v4498_v9 = vsub.f32 %v7602_v60, %v7800_v28  ;;  %v4528_v58 = vmul.f32 %v4496_v47, %v4496_v47 }
 0x321   : > { %v4555_v43 = vadd.f32 %v4554_v42, %v4553_v30  ;;  %v4568_v55 = vsel %vm4373_vm6, %v4526_v33, 0.0  ;;  %v4499_v5 = vsub.f32 %v7610_v4, %v7800_v28  ;;  %v4529_v54 = vmul.f32 %v4497_v59, %v4497_v59 }
 0x322   : > { %v4570_v49 = vsel %vm4373_vm6, %v4527_v32, 0.0  ;;  %v4500_v21 = vsub.f32 %v7618_v38, %v7800_v28  ;;  %v4530_v46 = vmul.f32 %v4498_v9, %v4498_v9  ;;  %v4572_v63 = vsel %vm4373_vm6, %v4528_v58, 0.0 }
 0x323   : > { %v4557_v8 = vadd.f32 %v4556_v15, %v4555_v43  ;;  %v4501_v60 = vsub.f32 %v7626_v13, %v7800_v28  ;;  %v4531_v14 = vmul.f32 %v4499_v5, %v4499_v5  ;;  %v4574_v34 = vsel %vm4373_vm6, %v4529_v54, 0.0 }
 0x324   : > { %v4502_v4 = vsub.f32 %v7634_v41, %v7800_v28  ;;  %v4532_v48 = vmul.f32 %v4500_v21, %v4500_v21  ;;  %v4576_v19 = vsel %vm4373_vm6, %v4530_v46, 0.0  ;;  %v4503_v38 = vsub.f32 %v7642_v26, %v7800_v28 }
 0x325   : > { %v4559_v2 = vadd.f32 %v4558_v6, %v4557_v8  ;;  %v4533_v62 = vmul.f32 %v4501_v60, %v4501_v60  ;;  %v4578_v35 = vsel %vm4373_vm6, %v4531_v14, 0.0  ;;  %v4504_v13 = vsub.f32 %v7658_v17, %v7800_v28 }
 0x326   : > { %v4534_v43 = vmul.f32 %v4502_v4, %v4502_v4  ;;  %v4580_v57 = vsel %vm4373_vm6, %v4532_v48, 0.0  ;;  %v4505_v41 = vsub.f32 %v7679_v25, %v7800_v28  ;;  %v4535_v15 = vmul.f32 %v4503_v38, %v4503_v38 }
 0x327   : > { %v4561_v12 = vadd.f32 %v4560_v27, %v4559_v2  ;;  %v4582_v8 = vsel %vm4373_vm6, %v4533_v62, 0.0  ;;  %v4506_v26 = vsub.f32 %v7695_v20, %v7800_v28  ;;  %v4536_v36 = vmul.f32 %v4504_v13, %v4504_v13 }
 0x328   : > { %v4584_v6 = vsel %vm4373_vm6, %v4534_v43, 0.0  ;;  %v4507_v17 = vsub.f32 %v7711_v56, %v7800_v28  ;;  %v4537_v44 = vmul.f32 %v4505_v41, %v4505_v41  ;;  %v4586_v11 = vsel %vm4373_vm6, %v4535_v15, 0.0 }
 0x329   : > { %v4563_v45 = vadd.f32 %v4562_v22, %v4561_v12  ;;  %v4508_v25 = vsub.f32 %v7727_v37, %v7800_v28  ;;  %v4538_v12 = vmul.f32 %v4506_v26, %v4506_v26  ;;  %v4588_v39 = vsel %vm4373_vm6, %v4536_v36, 0.0 }
 0x32a   : > { %v4509_v20 = vsub.f32 %v7743_v16, %v7800_v28  ;;  %v4539_v22 = vmul.f32 %v4507_v17, %v4507_v17  ;;  %v4510_v56 = vsub.f32 %v7757_v1, %v7800_v28  ;;  %v4511_v37 = vsub.f32 %v7767_v18, %v7800_v28 }
 0x32b   : > { %v4565_v23 = vadd.f32 %v4564_v10, %v4563_v45  ;;  %v4590_v45 = vsel %vm4373_vm6, %v4537_v44, 0.0  ;;  %v4540_v33 = vmul.f32 %v4508_v25, %v4508_v25  ;;  %v4592_v10 = vsel %vm4373_vm6, %v4538_v12, 0.0 }
 0x32c   : > { %v4541_v59 = vmul.f32 %v4509_v20, %v4509_v20  ;;  %v4594_v32 = vsel %vm4373_vm6, %v4539_v22, 0.0  ;;  %v4512_v16 = vsub.f32 %v7777_v24, %v7800_v28  ;;  %v4513_v1 = vsub.f32 %v7785_v31, %v7800_v28 }
 0x32d   : > { %v4567_v51 = vadd.f32 %v4566_v52, %v4565_v23  ;;  %v4596_v9 = vsel %vm4373_vm6, %v4540_v33, 0.0  ;;  %v4514_v18 = vsub.f32 %v7793_v7, %v7800_v28 }
 0x32e   : > { %v4544_v54 = vmul.f32 %v4512_v16, %v4512_v16 }
 0x32f   : > { %v4569_v3 = vadd.f32 %v4568_v55, %v4567_v51  ;;  %v4542_v51 = vmul.f32 %v4510_v56, %v4510_v56  ;;  %v4543_v55 = vmul.f32 %v4511_v37, %v4511_v37 }
 0x330   : > { %v4604_v31 = vsel %vm4373_vm6, %v4544_v54, 0.0 }
 0x331   : > { %v4571_v0 = vadd.f32 %v4570_v49, %v4569_v3  ;;  %v4598_v3 = vsel %vm4373_vm6, %v4541_v59, 0.0  ;;  %v4600_v24 = vsel %vm4373_vm6, %v4542_v51, 0.0  ;;  %v4602_v21 = vsel %vm4373_vm6, %v4543_v55, 0.0 }
 0x333   : > { %v4573_v50 = vadd.f32 %v4572_v63, %v4571_v0  ;;  %v4545_v0 = vmul.f32 %v4513_v1, %v4513_v1  ;;  %v4546_v63 = vmul.f32 %v4514_v18, %v4514_v18 }
 0x335   : > { %v4575_v29 = vadd.f32 %v4574_v34, %v4573_v50  ;;  %v4606_v60 = vsel %vm4373_vm6, %v4545_v0, 0.0  ;;  %v4608_v34 = vsel %vm4373_vm6, %v4546_v63, 0.0 }
 0x337   : > { %v4577_v30 = vadd.f32 %v4576_v19, %v4575_v29 }
 0x339   : > { %v4579_v42 = vadd.f32 %v4578_v35, %v4577_v30 }
 0x33b   : > { %v4581_v61 = vadd.f32 %v4580_v57, %v4579_v42 }
 0x33d   : > { %v4583_v40 = vadd.f32 %v4582_v8, %v4581_v61 }
 0x33f   : > { %v4585_v2 = vadd.f32 %v4584_v6, %v4583_v40 }
 0x341   : > { %v4587_v27 = vadd.f32 %v4586_v11, %v4585_v2 }
 0x343   : > { %v4589_v53 = vadd.f32 %v4588_v39, %v4587_v27 }
 0x345   : > { %v4591_v47 = vadd.f32 %v4590_v45, %v4589_v53 }
 0x347   : > { %v4593_v23 = vadd.f32 %v4592_v10, %v4591_v47 }
 0x349   : > { %v4595_v52 = vadd.f32 %v4594_v32, %v4593_v23 }
 0x34b   : > { %v4597_v58 = vadd.f32 %v4596_v9, %v4595_v52 }
 0x34d   : > { %v4599_v5 = vadd.f32 %v4598_v3, %v4597_v58 }
 0x34f   : > { %v4601_v49 = vadd.f32 %v4600_v24, %v4599_v5 }
 0x351   : > { %v4603_v46 = vadd.f32 %v4602_v21, %v4601_v49 }
 0x353   : > { %v4605_v50 = vadd.f32 %v4604_v31, %v4603_v46 }
 0x355   : > { %v4607_v14 = vadd.f32 %v4606_v60, %v4605_v50 }
 0x357   : > { %v4609_v7 = vadd.f32 %v4608_v34, %v4607_v14 }
 0x359   : > { %v4610_v29 = vrot.slane %v4609_v7, 4 }
 0x35b   : > { %v4611_v4 = vadd.f32 %v4610_v29, %v4609_v7 }
 0x35d   : > { %v4612_v48 = vrot.slane %v4611_v4, 2 }
 0x35f   : > { %v4613_v19 = vadd.f32 %v4612_v48, %v4611_v4 }
 0x361   : > { %v4614_v30 = vrot.slane %v4613_v19, 1 }
 0x363   : > { %v4615_v38 = vadd.f32 %v4614_v30, %v4613_v19 }
 0x365   : > { %v4617_v62 = vsel %vm4616_vm8, %v7800_v28, %v4615_v38 }
 0x366   : > { %4619 = vst.msk [vmem:[%s312_s12] sm:$0x3] %vm4618_vm9, %v4617_v62 }
 0x367   : > { %5839 = shalt.err (!%p5836_p10)
}
 0x368   : > { %5684 = dma.vmem_to_hbm [thread:$0]  (%p5990_p3), %s4650_s13, 32, %s4652_s22, %s4631_s21  }
 0x369 PF: > { %p5690_p11 = scmp.ge.s32.totalorder %s5906_s25, 2  ;;  %s4676_s26 = sand.u32 1, %s5878_s18  }
 0x36a   : > { %s4677_s8 = scalar_lea.sflag [#allocation4], %s4676_s26 }
 0x36b   : > { %p5687_p12 = pnand %p5690_p11, %p5999_p8 }
 0x36d   : > { %p5688_p13 = pneg %p5687_p12 }
 0x36f   : > { %5873 = dma.done.wait (%p5688_p13), %s4677_s8, 32  }
 0x370   : > { %5875 = vsyncadd (%p5688_p13), %s4677_s8, 4294967264  ;;  %s19_s25 = sadd.s32 1, %s5906_s25   ;;  %s8036_s6 = sld [smem:[#allocation6_spill]] }
 0x371   : > { %p16_p0 = scmp.ge.s32.totalorder %s19_s25, 10   ;;  %s8037_s10 = sld [smem:[#allocation7_spill]] }
 0x372   : > { %s8038_s18 = smov %s5882_s19  ;;  %s8039_s19 = smov %s5886_s20 }
 0x373   : > { %s8040_s20 = smov %s6008_s11  ;;  %s8041_s21 = smov %s5898_s23 }
 0x374   : > { %s8042_s22 = smov %s5902_s24  ;;  %18 = sbr.rel (!%p16_p0) target bundleno = 5 (0x5), region = 96 }
 0x376   : > { %s8043_s23 = smov %s8036_s6 }
 0x377   : > { %s8044_s24 = smov %s8037_s10 }
 0x379   :  { %4683 = vsyncpa [#allocation4], 1 }
 0x37a   :  { %4685 = vsyncpa [#allocation4 + $0x1], 1 }

</bundles_post_ra>
